<compile_context>
chip_gen: v5e
topology: v5e:2x2
jax: 0.10.0
libtpu: 0.0.40
codegen_flags: <defaults>
</compile_context>

<pallas_src>
import functools
import math

import jax
import jax.numpy as jnp
from jax import lax
from jax.experimental import pallas as pl
from jax.experimental.pallas import tpu as pltpu

N_HEAD = 4
EPS = 1e-5
NEG_INF = -1e30   # finite "minus infinity": no NaN risk from exp/max on masked rows


def _layernorm_f32(x, w, b):
    # x: (rows, C) f32; w, b: (1, C) f32
    mu = jnp.mean(x, axis=-1, keepdims=True)
    var = jnp.mean((x - mu) ** 2, axis=-1, keepdims=True)
    return (x - mu) * lax.rsqrt(var + EPS) * w + b


def _fast_recip(x):
    # EUP reciprocal + one Newton step -> ~f32 accurate, stays off the VALU divide.
    inv = pl.reciprocal(x, approx=True)
    return inv * (2.0 - x * inv)


# ---------------------------------------------------------------------------
# Fused kernel: one batch element per grid step, whole Block in one body.
# ---------------------------------------------------------------------------
def fused_block_kernel(x_ref, ln1w_ref, ln1b_ref,
                       wqkv_ref, bqkv_ref, wp_ref, bp_ref,
                       ln2w_ref, ln2b_ref, w1_ref, b1_ref, w2_ref, b2_ref,
                       o_ref,
                       qh_s, kh_s, vh_s, m_s, l_s, acc_s,
                       *, T, C, H, TQ, TK, CH):
    hd = C // H
    n_q = T // TQ
    x_view = x_ref.at[0]        # (T, C) view of this batch element
    o_view = o_ref.at[0]

    # ---------------- LN1 + fused QKV projection (full sequence) ----------------
    x_full = x_view[...]                                        # (T, C) f32
    xn = _layernorm_f32(x_full, ln1w_ref[...], ln1b_ref[...])
    qkv = jnp.dot(xn.astype(jnp.bfloat16), wqkv_ref[...],
                  preferred_element_type=jnp.float32) + bqkv_ref[...]   # (T, 3C) f32
    # 1/sqrt(hd) is already folded into the Q columns of wqkv / bqkv at prep time.

    # (T, C) -> (H, T, hd) bf16 scratch (MXU operands for the attention matmuls).
    # TODO(synk): try pltpu.einshape('thd->htd', ...) here once its lowering is
    #             verified for hd < 128; jnp.transpose is the proven path.
    qh_s[...] = jnp.transpose(qkv[:, 0 * C:1 * C].reshape(T, H, hd), (1, 0, 2)).astype(jnp.bfloat16)
    kh_s[...] = jnp.transpose(qkv[:, 1 * C:2 * C].reshape(T, H, hd), (1, 0, 2)).astype(jnp.bfloat16)
    vh_s[...] = jnp.transpose(qkv[:, 2 * C:3 * C].reshape(T, H, hd), (1, 0, 2)).astype(jnp.bfloat16)

    # ------ per query tile: flash attention + residual + LN2 + tiled MLP ------
    @pl.loop(0, n_q)
    def _(qi):
        row0 = pl.multiple_of(qi * TQ, TQ)
        q_t = qh_s[:, pl.ds(row0, TQ), :]                       # (H, TQ, hd) bf16

        m_s[...] = jnp.full((H, TQ, 1), NEG_INF, jnp.float32)
        l_s[...] = jnp.zeros((H, TQ, 1), jnp.float32)
        acc_s[...] = jnp.zeros((H, TQ, hd), jnp.float32)
        rows = row0 + lax.broadcasted_iota(jnp.int32, (TQ, TK), 0)

        # Causal tile skipping: only kv tiles 0..qi contribute (requires TQ == TK).
        @pl.loop(0, qi + 1)
        def _(ki):
            col0 = pl.multiple_of(ki * TK, TK)
            k_t = kh_s[:, pl.ds(col0, TK), :]                   # (H, TK, hd) bf16
            v_t = vh_s[:, pl.ds(col0, TK), :]
            s = jnp.einsum('htd,hsd->hts', q_t, k_t,
                           preferred_element_type=jnp.float32)  # (H, TQ, TK) f32
            cols = col0 + lax.broadcasted_iota(jnp.int32, (TQ, TK), 1)
            s = jnp.where((cols <= rows)[None], s, NEG_INF)

            m_prev = m_s[...]
            m_new = jnp.maximum(m_prev, jnp.max(s, axis=-1, keepdims=True))
            alpha = jnp.exp(m_prev - m_new)
            p = jnp.exp(s - m_new)                              # f32 softmax math
            l_s[...] = alpha * l_s[...] + jnp.sum(p, axis=-1, keepdims=True)
            acc_s[...] = alpha * acc_s[...] + jnp.einsum(
                'hts,hsd->htd', p.astype(jnp.bfloat16), v_t,
                preferred_element_type=jnp.float32)
            m_s[...] = m_new

        ctx = acc_s[...] * _fast_recip(l_s[...])                # (H, TQ, hd) f32
        # attn_drop: identity (eval)

        # Head-merge folded into the output projection: y = sum_h ctx[h] @ wp[h]
        # (no (H,TQ,hd)->(TQ,C) relayout; contraction rides the MXU accumulation).
        y = jnp.zeros((TQ, C), jnp.float32)
        for h in range(H):
            y = y + jnp.dot(ctx[h].astype(jnp.bfloat16), wp_ref[h],
                            preferred_element_type=jnp.float32)
        x_mid = x_view[pl.ds(row0, TQ), :] + y + bp_ref[...]    # resid_drop: identity

        # ---------------- MLP sub-block (hidden dim tiled in chunks of CH) ------
        xn2 = _layernorm_f32(x_mid, ln2w_ref[...], ln2b_ref[...])
        xn2_b = xn2.astype(jnp.bfloat16)
        y2 = jnp.zeros((TQ, C), jnp.float32)
        for c0 in range(0, 4 * C, CH):                          # static chunk loop
            h1 = jnp.dot(xn2_b, w1_ref[:, c0:c0 + CH],
                         preferred_element_type=jnp.float32) + b1_ref[:, c0:c0 + CH]
            # exact (erf-based) GELU, matching torch.nn.GELU() default
            h1 = 0.5 * h1 * (1.0 + lax.erf(h1 * jnp.float32(1.0 / math.sqrt(2.0))))
            y2 = y2 + jnp.dot(h1.astype(jnp.bfloat16), w2_ref[c0:c0 + CH, :],
                              preferred_element_type=jnp.float32)
        # Dropout(resid_pdrop): identity (eval)
        o_view[pl.ds(row0, TQ), :] = (x_mid + y2 + b2_ref[...]).astype(o_ref.dtype)


# ---------------------------------------------------------------------------
# One-time weight preparation (hoisted out of the per-call path)
# ---------------------------------------------------------------------------
def prepare_block_params(p, n_head=N_HEAD, compute_dtype=jnp.bfloat16):
    C = p["wq"].shape[0]
    hd = C // n_head
    scale = 1.0 / math.sqrt(hd)
    # Fused QKV in (in, out) layout, with the attention scale folded into Q.
    w_qkv = jnp.concatenate([p["wq"].T * scale, p["wk"].T, p["wv"].T], axis=1)
    b_qkv = jnp.concatenate([p["bq"] * scale, p["bk"], p["bv"]]).reshape(1, 3 * C)
    wp_h = p["wp"].T.reshape(n_head, hd, C)      # output projection split per head
    f32 = jnp.float32
    return dict(
        ln1_w=p["ln1_w"].reshape(1, C).astype(f32),
        ln1_b=p["ln1_b"].reshape(1, C).astype(f32),
        w_qkv=w_qkv.astype(compute_dtype),
        b_qkv=b_qkv.astype(f32),
        wp_h=wp_h.astype(compute_dtype),
        bp=p["bp"].reshape(1, C).astype(f32),
        ln2_w=p["ln2_w"].reshape(1, C).astype(f32),
        ln2_b=p["ln2_b"].reshape(1, C).astype(f32),
        w1=p["w1"].T.astype(compute_dtype),
        b1=p["b1"].reshape(1, 4 * C).astype(f32),
        w2=p["w2"].T.astype(compute_dtype),
        b2=p["b2"].reshape(1, C).astype(f32),
    )


def _pick_tile(total, target):
    """Largest divisor of `total` that is <= target (prefer multiples of 8)."""
    if total <= target:
        return total
    for cand in range(target, 7, -1):
        if total % cand == 0 and cand % 8 == 0:
            return cand
    for cand in range(target, 0, -1):
        if total % cand == 0:
            return cand
    return total


# ---------------------------------------------------------------------------
# Wrapper
# ---------------------------------------------------------------------------
def block_forward(x, prepped, *, n_head=N_HEAD, q_tile=256, mlp_tile=1024,
                  single_buffer_weights=True, donate_input=False,
                  vmem_limit_bytes=None):
    B, T, C = x.shape
    assert C % n_head == 0
    hd = C // n_head
    TQ = _pick_tile(T, q_tile)
    TK = TQ                              # causal tile skipping assumes TQ == TK
    CH = _pick_tile(4 * C, mlp_tile)

    args = (prepped["ln1_w"], prepped["ln1_b"],
            prepped["w_qkv"], prepped["b_qkv"],
            prepped["wp_h"], prepped["bp"],
            prepped["ln2_w"], prepped["ln2_b"],
            prepped["w1"], prepped["b1"], prepped["w2"], prepped["b2"])

    xspec = pl.BlockSpec((1, T, C), lambda b: (b, 0, 0))

    def rep_spec(shape):
        nd = len(shape)
        idx = lambda b, _nd=nd: (0,) * _nd
        if single_buffer_weights:
            # Constant index_map -> one resident copy suffices; halves weight VMEM
            # vs the default double buffering (matters inside v7x's 64 MiB VMEM).
            return pl.BlockSpec(shape, idx, pipeline_mode=pl.Buffered(1))
        return pl.BlockSpec(shape, idx)

    if vmem_limit_bytes is None:
        try:
            cap = pltpu.get_tpu_info().vmem_capacity_bytes
        except Exception:
            cap = 128 * 1024 * 1024
        # ~85% of physical (=> ~54 MiB on v7x), capped at 100 MiB on v5e/v6e.
        vmem_limit_bytes = min(int(cap * 0.85), 100 * 1024 * 1024)

    kernel = functools.partial(fused_block_kernel,
                               T=T, C=C, H=n_head, TQ=TQ, TK=TK, CH=CH)

    return pl.pallas_call(
        kernel,
        out_shape=jax.ShapeDtypeStruct((B, T, C), x.dtype),
        grid=(B,),
        in_specs=[xspec] + [rep_spec(a.shape) for a in args],
        out_specs=xspec,
        scratch_shapes=[
            pltpu.VMEM((n_head, T, hd), jnp.bfloat16),   # q heads
            pltpu.VMEM((n_head, T, hd), jnp.bfloat16),   # k heads
            pltpu.VMEM((n_head, T, hd), jnp.bfloat16),   # v heads
            pltpu.VMEM((n_head, TQ, 1), jnp.float32),    # online-softmax m
            pltpu.VMEM((n_head, TQ, 1), jnp.float32),    # online-softmax l
            pltpu.VMEM((n_head, TQ, hd), jnp.float32),   # online-softmax acc
        ],
        input_output_aliases=({0: 0} if donate_input else {}),
        compiler_params=pltpu.CompilerParams(
            dimension_semantics=("parallel",),           # batch axis -> megacore
            vmem_limit_bytes=vmem_limit_bytes),
    )(x, *args)


# ---------------------------------------------------------------------------
# Pure-JAX reference (mirrors the PyTorch forward, eval mode, f32)
# ---------------------------------------------------------------------------
def block_reference(x, p):
    B, T, C = x.shape
    hd = C // N_HEAD

    def ln(v, w, b):
        mu = v.mean(-1, keepdims=True)
        var = ((v - mu) ** 2).mean(-1, keepdims=True)
        return (v - mu) * lax.rsqrt(var + EPS) * w + b

    xn = ln(x, p["ln1_w"], p["ln1_b"])
    q = xn @ p["wq"].T + p["bq"]
    k = xn @ p["wk"].T + p["bk"]
    v = xn @ p["wv"].T + p["bv"]
    q = q.reshape(B, T, N_HEAD, hd).transpose(0, 2, 1, 3)
    k = k.reshape(B, T, N_HEAD, hd).transpose(0, 2, 1, 3)
    v = v.reshape(B, T, N_HEAD, hd).transpose(0, 2, 1, 3)
    att = (q @ k.transpose(0, 1, 3, 2)) / math.sqrt(hd)
    mask = jnp.tril(jnp.ones((T, T), dtype=bool))
    att = jnp.where(mask[None, None], att, -jnp.inf)
    att = jax.nn.softmax(att, axis=-1)
    y = (att @ v).transpose(0, 2, 1, 3).reshape(B, T, C)
    x = x + (y @ p["wp"].T + p["bp"])

    xn = ln(x, p["ln2_w"], p["ln2_b"])
    h = xn @ p["w1"].T + p["b1"]
    h = 0.5 * h * (1.0 + lax.erf(h / jnp.sqrt(jnp.float32(2.0))))
    x = x + (h @ p["w2"].T + p["b2"])
    return x


# ---------------------------------------------------------------------------
def init_params(key, C):
    keys = jax.random.split(key, 6)

    def linear(k, out_f, in_f):
        bound = 1.0 / math.sqrt(in_f)
        kw, kb = jax.random.split(k)
        w = jax.random.uniform(kw, (out_f, in_f), jnp.float32, -bound, bound)
        b = jax.random.uniform(kb, (out_f,), jnp.float32, -bound, bound)
        return w, b

    p = {}
    p["ln1_w"], p["ln1_b"] = jnp.ones((C,), jnp.float32), jnp.zeros((C,), jnp.float32)
    p["ln2_w"], p["ln2_b"] = jnp.ones((C,), jnp.float32), jnp.zeros((C,), jnp.float32)
    p["wq"], p["bq"] = linear(keys[0], C, C)
    p["wk"], p["bk"] = linear(keys[1], C, C)
    p["wv"], p["bv"] = linear(keys[2], C, C)
    p["wp"], p["bp"] = linear(keys[3], C, C)
    p["w1"], p["b1"] = linear(keys[4], 4 * C, C)
    p["w2"], p["b2"] = linear(keys[5], C, 4 * C)
    return p


if __name__ == "__main__":
    # Small correctness-check shapes only; benchmark/tune at production shapes
    # (e.g. T=1024, C=768), where the tiling/bf16 choices actually matter.
    B, T, C = 2, 8, 32                     # batch=2, seq=8, n_embd=32, n_head=4
    key = jax.random.PRNGKey(0)
    kx, kp = jax.random.split(key)
    x = jax.random.normal(kx, (B, T, C), jnp.float32)
    params = init_params(kp, C)
    prepped = prepare_block_params(params)     # one-time weight prep (bf16, fused QKV)

    ref = block_reference(x, params)

    try:
        out = jax.block_until_ready(block_forward(x, prepped))
    except Exception:
        # pl.Buffered(1) single-buffered weights not supported on this jax/libtpu:
        # fall back to default double buffering (functionally identical).
        out = jax.block_until_ready(block_forward(x, prepped, single_buffer_weights=False))

    assert out.shape == (B, T, C)
    err = jnp.max(jnp.abs(out - ref))
    # bf16 MXU operands (f32 accumulation, f32 LN/softmax/GELU) -> looser tolerance
    # than the old all-f32 kernel.
    assert jnp.allclose(out, ref, atol=5e-2, rtol=5e-2), f"max abs err {err}"
    print("KERNEL_OK")
</pallas_src>

<mosaic_0001>
module attributes {stable_mosaic.version = 11 : i64} {
  func.func @fused_block_kernel(%arg0: i32, %arg1: memref<1x8x32xf32, #tpu.memory_space<vmem>>, %arg2: memref<1x32xf32, #tpu.memory_space<vmem>>, %arg3: memref<1x32xf32, #tpu.memory_space<vmem>>, %arg4: memref<32x96xbf16, #tpu.memory_space<vmem>>, %arg5: memref<1x96xf32, #tpu.memory_space<vmem>>, %arg6: memref<4x8x32xbf16, #tpu.memory_space<vmem>>, %arg7: memref<1x32xf32, #tpu.memory_space<vmem>>, %arg8: memref<1x32xf32, #tpu.memory_space<vmem>>, %arg9: memref<1x32xf32, #tpu.memory_space<vmem>>, %arg10: memref<32x128xbf16, #tpu.memory_space<vmem>>, %arg11: memref<1x128xf32, #tpu.memory_space<vmem>>, %arg12: memref<128x32xbf16, #tpu.memory_space<vmem>>, %arg13: memref<1x32xf32, #tpu.memory_space<vmem>>, %arg14: memref<1x8x32xf32, #tpu.memory_space<vmem>>, %arg15: memref<4x8x8xbf16, #tpu.memory_space<vmem>>, %arg16: memref<4x8x8xbf16, #tpu.memory_space<vmem>>, %arg17: memref<4x8x8xbf16, #tpu.memory_space<vmem>>, %arg18: memref<4x8x1xf32, #tpu.memory_space<vmem>>, %arg19: memref<4x8x1xf32, #tpu.memory_space<vmem>>, %arg20: memref<4x8x8xf32, #tpu.memory_space<vmem>>) attributes {dimension_semantics = [#tpu.dimension_semantics<parallel>], iteration_bounds = array<i64: 2>, scalar_prefetch = 0 : i64, scratch_operands = 6 : i64, tpu.core_type = #tpu.core_type<tc>, window_params = [{transform_indices = @transform_0, window_bounds = array<i64: 1, 8, 32>}, {pipeline_mode = #tpu.pipeline_mode<synchronous>, transform_indices = @transform_1, window_bounds = array<i64: 1, 32>}, {pipeline_mode = #tpu.pipeline_mode<synchronous>, transform_indices = @transform_2, window_bounds = array<i64: 1, 32>}, {pipeline_mode = #tpu.pipeline_mode<synchronous>, transform_indices = @transform_3, window_bounds = array<i64: 32, 96>}, {pipeline_mode = #tpu.pipeline_mode<synchronous>, transform_indices = @transform_4, window_bounds = array<i64: 1, 96>}, {pipeline_mode = #tpu.pipeline_mode<synchronous>, transform_indices = @transform_5, window_bounds = array<i64: 4, 8, 32>}, {pipeline_mode = #tpu.pipeline_mode<synchronous>, transform_indices = @transform_6, window_bounds = array<i64: 1, 32>}, {pipeline_mode = #tpu.pipeline_mode<synchronous>, transform_indices = @transform_7, window_bounds = array<i64: 1, 32>}, {pipeline_mode = #tpu.pipeline_mode<synchronous>, transform_indices = @transform_8, window_bounds = array<i64: 1, 32>}, {pipeline_mode = #tpu.pipeline_mode<synchronous>, transform_indices = @transform_9, window_bounds = array<i64: 32, 128>}, {pipeline_mode = #tpu.pipeline_mode<synchronous>, transform_indices = @transform_10, window_bounds = array<i64: 1, 128>}, {pipeline_mode = #tpu.pipeline_mode<synchronous>, transform_indices = @transform_11, window_bounds = array<i64: 128, 32>}, {pipeline_mode = #tpu.pipeline_mode<synchronous>, transform_indices = @transform_12, window_bounds = array<i64: 1, 32>}, {transform_indices = @transform_13, window_bounds = array<i64: 1, 8, 32>}]} {
    %c0 = arith.constant 0 : index
    %c0_0 = arith.constant 0 : index
    %c0_1 = arith.constant 0 : index
    %0 = vector.load %arg1[%c0, %c0_0, %c0_1] : memref<1x8x32xf32, #tpu.memory_space<vmem>>, vector<1x8x32xf32>
    %1 = vector.shape_cast %0 : vector<1x8x32xf32> to vector<8x32xf32>
    %c0_2 = arith.constant 0 : index
    %c0_3 = arith.constant 0 : index
    %2 = vector.load %arg2[%c0_2, %c0_3] : memref<1x32xf32, #tpu.memory_space<vmem>>, vector<1x32xf32>
    %c0_4 = arith.constant 0 : index
    %c0_5 = arith.constant 0 : index
    %3 = vector.load %arg3[%c0_4, %c0_5] : memref<1x32xf32, #tpu.memory_space<vmem>>, vector<1x32xf32>
    %cst = arith.constant dense<0.000000e+00> : vector<8xf32>
    %4 = vector.multi_reduction <add>, %1, %cst [1] : vector<8x32xf32> to vector<8xf32>
    %5 = vector.shape_cast %4 : vector<8xf32> to vector<8x1xf32>
    %cst_6 = arith.constant 3.200000e+01 : f32
    %6 = vector.broadcast %cst_6 : f32 to vector<8x1xf32>
    %7 = arith.divf %5, %6 : vector<8x1xf32>
    %8 = vector.broadcast %7 : vector<8x1xf32> to vector<8x32xf32>
    %9 = arith.subf %1, %8 : vector<8x32xf32>
    %10 = arith.mulf %9, %9 : vector<8x32xf32>
    %cst_7 = arith.constant dense<0.000000e+00> : vector<8xf32>
    %11 = vector.multi_reduction <add>, %10, %cst_7 [1] : vector<8x32xf32> to vector<8xf32>
    %12 = vector.shape_cast %11 : vector<8xf32> to vector<8x1xf32>
    %cst_8 = arith.constant 3.200000e+01 : f32
    %13 = vector.broadcast %cst_8 : f32 to vector<8x1xf32>
    %14 = arith.divf %12, %13 : vector<8x1xf32>
    %15 = vector.broadcast %7 : vector<8x1xf32> to vector<8x32xf32>
    %16 = arith.subf %1, %15 : vector<8x32xf32>
    %cst_9 = arith.constant 9.99999974E-6 : f32
    %17 = vector.broadcast %cst_9 : f32 to vector<8x1xf32>
    %18 = arith.addf %14, %17 : vector<8x1xf32>
    %19 = math.rsqrt %18 : vector<8x1xf32>
    %20 = vector.broadcast %19 : vector<8x1xf32> to vector<8x32xf32>
    %21 = arith.mulf %16, %20 : vector<8x32xf32>
    %22 = vector.broadcast %2 : vector<1x32xf32> to vector<8x32xf32>
    %23 = arith.mulf %21, %22 : vector<8x32xf32>
    %24 = vector.broadcast %3 : vector<1x32xf32> to vector<8x32xf32>
    %25 = arith.addf %23, %24 : vector<8x32xf32>
    %26 = arith.truncf %25 : vector<8x32xf32> to vector<8x32xbf16>
    %c0_10 = arith.constant 0 : index
    %c0_11 = arith.constant 0 : index
    %27 = vector.load %arg4[%c0_10, %c0_11] : memref<32x96xbf16, #tpu.memory_space<vmem>>, vector<32x96xbf16>
    %cst_12 = arith.constant dense<0.000000e+00> : vector<8x96xf32>
    %28 = tpu.matmul %26, %27, %cst_12 {dimension_numbers = #tpu.dot_dimension_numbers<[1], [0], [0], [1], [0, 0, 1, 1], [], []>} : vector<8x32xbf16>, vector<32x96xbf16>, vector<8x96xf32> -> vector<8x96xf32>
    %c0_13 = arith.constant 0 : index
    %c0_14 = arith.constant 0 : index
    %29 = vector.load %arg5[%c0_13, %c0_14] : memref<1x96xf32, #tpu.memory_space<vmem>>, vector<1x96xf32>
    %30 = vector.broadcast %29 : vector<1x96xf32> to vector<8x96xf32>
    %31 = arith.addf %28, %30 : vector<8x96xf32>
    %32 = vector.extract_strided_slice %31 {offsets = [0, 0], sizes = [8, 32], strides = [1, 1]} : vector<8x96xf32> to vector<8x32xf32>
    %33 = vector.shape_cast %32 : vector<8x32xf32> to vector<8x4x8xf32>
    %34 = tpu.transpose %33, [1, 0, 2] : vector<8x4x8xf32> -> vector<4x8x8xf32>
    %35 = arith.truncf %34 : vector<4x8x8xf32> to vector<4x8x8xbf16>
    %c0_15 = arith.constant 0 : index
    %c0_16 = arith.constant 0 : index
    %c0_17 = arith.constant 0 : index
    %36 = vector.load %arg15[%c0_15, %c0_16, %c0_17] : memref<4x8x8xbf16, #tpu.memory_space<vmem>>, vector<4x8x8xbf16>
    tpu.vector_store %arg15[%c0_15, %c0_16, %c0_17], %35 {strides = array<i32>} : memref<4x8x8xbf16, #tpu.memory_space<vmem>>, vector<4x8x8xbf16>,
    %37 = vector.extract_strided_slice %31 {offsets = [0, 32], sizes = [8, 32], strides = [1, 1]} : vector<8x96xf32> to vector<8x32xf32>
    %38 = vector.shape_cast %37 : vector<8x32xf32> to vector<8x4x8xf32>
    %39 = tpu.transpose %38, [1, 0, 2] : vector<8x4x8xf32> -> vector<4x8x8xf32>
    %40 = arith.truncf %39 : vector<4x8x8xf32> to vector<4x8x8xbf16>
    %c0_18 = arith.constant 0 : index
    %c0_19 = arith.constant 0 : index
    %c0_20 = arith.constant 0 : index
    %41 = vector.load %arg16[%c0_18, %c0_19, %c0_20] : memref<4x8x8xbf16, #tpu.memory_space<vmem>>, vector<4x8x8xbf16>
    tpu.vector_store %arg16[%c0_18, %c0_19, %c0_20], %40 {strides = array<i32>} : memref<4x8x8xbf16, #tpu.memory_space<vmem>>, vector<4x8x8xbf16>,
    %42 = vector.extract_strided_slice %31 {offsets = [0, 64], sizes = [8, 32], strides = [1, 1]} : vector<8x96xf32> to vector<8x32xf32>
    %43 = vector.shape_cast %42 : vector<8x32xf32> to vector<8x4x8xf32>
    %44 = tpu.transpose %43, [1, 0, 2] : vector<8x4x8xf32> -> vector<4x8x8xf32>
    %45 = arith.truncf %44 : vector<4x8x8xf32> to vector<4x8x8xbf16>
    %c0_21 = arith.constant 0 : index
    %c0_22 = arith.constant 0 : index
    %c0_23 = arith.constant 0 : index
    %46 = vector.load %arg17[%c0_21, %c0_22, %c0_23] : memref<4x8x8xbf16, #tpu.memory_space<vmem>>, vector<4x8x8xbf16>
    tpu.vector_store %arg17[%c0_21, %c0_22, %c0_23], %45 {strides = array<i32>} : memref<4x8x8xbf16, #tpu.memory_space<vmem>>, vector<4x8x8xbf16>,
    %c0_i32 = arith.constant 0 : i32
    %c0_i32_24 = arith.constant 0 : i32
    %c0_i32_25 = arith.constant 0 : i32
    %c1_i32 = arith.constant 1 : i32
    %47 = arith.muli %c0_i32_25, %c1_i32 : i32
    %c0_i32_26 = arith.constant 0 : i32
    %48 = arith.addi %c0_i32_26, %47 : i32
    %c8_i32 = arith.constant 8 : i32
    %49 = arith.muli %48, %c8_i32 : i32
    %50 = tpu.assume_multiple %49, 8 : i32
    %c0_27 = arith.constant 0 : index
    %51 = arith.index_cast %50 : i32 to index
    %c0_28 = arith.constant 0 : index
    %52 = vector.load %arg15[%c0_27, %51, %c0_28] : memref<4x8x8xbf16, #tpu.memory_space<vmem>>, vector<4x8x8xbf16>
    %cst_29 = arith.constant -1.000000e+30 : f32
    %53 = vector.broadcast %cst_29 : f32 to vector<4x8x1xf32>
    %c0_30 = arith.constant 0 : index
    %c0_31 = arith.constant 0 : index
    %c0_32 = arith.constant 0 : index
    %54 = vector.load %arg18[%c0_30, %c0_31, %c0_32] : memref<4x8x1xf32, #tpu.memory_space<vmem>>, vector<4x8x1xf32>
    tpu.vector_store %arg18[%c0_30, %c0_31, %c0_32], %53 {strides = array<i32>} : memref<4x8x1xf32, #tpu.memory_space<vmem>>, vector<4x8x1xf32>,
    %cst_33 = arith.constant 0.000000e+00 : f32
    %55 = vector.broadcast %cst_33 : f32 to vector<4x8x1xf32>
    %c0_34 = arith.constant 0 : index
    %c0_35 = arith.constant 0 : index
    %c0_36 = arith.constant 0 : index
    %56 = vector.load %arg19[%c0_34, %c0_35, %c0_36] : memref<4x8x1xf32, #tpu.memory_space<vmem>>, vector<4x8x1xf32>
    tpu.vector_store %arg19[%c0_34, %c0_35, %c0_36], %55 {strides = array<i32>} : memref<4x8x1xf32, #tpu.memory_space<vmem>>, vector<4x8x1xf32>,
    %cst_37 = arith.constant 0.000000e+00 : f32
    %57 = vector.broadcast %cst_37 : f32 to vector<4x8x8xf32>
    %c0_38 = arith.constant 0 : index
    %c0_39 = arith.constant 0 : index
    %c0_40 = arith.constant 0 : index
    %58 = vector.load %arg20[%c0_38, %c0_39, %c0_40] : memref<4x8x8xf32, #tpu.memory_space<vmem>>, vector<4x8x8xf32>
    tpu.vector_store %arg20[%c0_38, %c0_39, %c0_40], %57 {strides = array<i32>} : memref<4x8x8xf32, #tpu.memory_space<vmem>>, vector<4x8x8xf32>,
    %59 = tpu.iota {dimensions = array<i32: 0>} : vector<8x8xi32>
    %60 = vector.broadcast %50 : i32 to vector<8x8xi32>
    %61 = arith.addi %60, %59 : vector<8x8xi32>
    %c1_i32_41 = arith.constant 1 : i32
    %62 = arith.addi %48, %c1_i32_41 : i32
    %c0_i32_42 = arith.constant 0 : i32
    %63 = arith.subi %62, %c0_i32_42 : i32
    %c1_i32_43 = arith.constant 1 : i32
    %c1_i32_44 = arith.constant 1 : i32
    %64 = arith.subi %c1_i32_43, %c1_i32_44 : i32
    %65 = arith.addi %63, %64 : i32
    %c1_i32_45 = arith.constant 1 : i32
    %66 = arith.divsi %65, %c1_i32_45 : i32
    %c1_i32_46 = arith.constant 1 : i32
    %c0_i32_47 = arith.constant 0 : i32
    %c0_i32_48 = arith.constant 0 : i32
    %67 = arith.subi %66, %c0_i32_48 : i32
    %68 = arith.addi %c0_i32_48, %67 : i32
    %c1_i32_49 = arith.constant 1 : i32
    scf.for %arg21 = %c0_i32_48 to %68 step %c1_i32_49  : i32 {
      %166 = arith.muli %arg21, %c1_i32_46 : i32
      %167 = arith.addi %c0_i32_47, %166 : i32
      %c8_i32_103 = arith.constant 8 : i32
      %168 = arith.muli %167, %c8_i32_103 : i32
      %169 = tpu.assume_multiple %168, 8 : i32
      %c0_104 = arith.constant 0 : index
      %170 = arith.index_cast %169 : i32 to index
      %c0_105 = arith.constant 0 : index
      %171 = vector.load %arg16[%c0_104, %170, %c0_105] : memref<4x8x8xbf16, #tpu.memory_space<vmem>>, vector<4x8x8xbf16>
      %c0_106 = arith.constant 0 : index
      %172 = arith.index_cast %169 : i32 to index
      %c0_107 = arith.constant 0 : index
      %173 = vector.load %arg17[%c0_106, %172, %c0_107] : memref<4x8x8xbf16, #tpu.memory_space<vmem>>, vector<4x8x8xbf16>
      "tpu.trace_start"() <{level = 10 : i32, message = "htd,hsd->hts"}> : () -> ()
      %cst_108 = arith.constant dense<0.000000e+00> : vector<4x8x8xf32>
      %174 = tpu.matmul %52, %171, %cst_108 {dimension_numbers = #tpu.dot_dimension_numbers<[2], [2], [1], [1], [0, 0, 0, 1, 1, 1], [0], [0]>} : vector<4x8x8xbf16>, vector<4x8x8xbf16>, vector<4x8x8xf32> -> vector<4x8x8xf32>
      "tpu.trace_stop"() : () -> ()
      %175 = tpu.iota {dimensions = array<i32: 1>} : vector<8x8xi32>
      %176 = vector.broadcast %169 : i32 to vector<8x8xi32>
      %177 = arith.addi %176, %175 : vector<8x8xi32>
      %178 = arith.cmpi sle, %177, %61 : vector<8x8xi32>
      %179 = vector.shape_cast %178 : vector<8x8xi1> to vector<1x8x8xi1>
      %cst_109 = arith.constant -1.000000e+30 : f32
      %180 = vector.shape_cast %179 : vector<1x8x8xi1> to vector<1x8x8xi1>
      %181 = vector.broadcast %180 : vector<1x8x8xi1> to vector<4x8x8xi1>
      %182 = vector.broadcast %cst_109 : f32 to vector<4x8x8xf32>
      %183 = arith.select %181, %174, %182 : vector<4x8x8xi1>, vector<4x8x8xf32>
      %c0_110 = arith.constant 0 : index
      %c0_111 = arith.constant 0 : index
      %c0_112 = arith.constant 0 : index
      %184 = vector.load %arg18[%c0_110, %c0_111, %c0_112] : memref<4x8x1xf32, #tpu.memory_space<vmem>>, vector<4x8x1xf32>
      %cst_113 = arith.constant dense<0xFF800000> : vector<4x8xf32>
      %185 = vector.multi_reduction <maximumf>, %183, %cst_113 [2] : vector<4x8x8xf32> to vector<4x8xf32>
      %186 = vector.shape_cast %185 : vector<4x8xf32> to vector<4x8x1xf32>
      %187 = arith.maximumf %184, %186 : vector<4x8x1xf32>
      %188 = arith.subf %184, %187 : vector<4x8x1xf32>
      %189 = math.exp %188 : vector<4x8x1xf32>
      %190 = vector.broadcast %187 : vector<4x8x1xf32> to vector<4x8x8xf32>
      %191 = arith.subf %183, %190 : vector<4x8x8xf32>
      %192 = math.exp %191 : vector<4x8x8xf32>
      %c0_114 = arith.constant 0 : index
      %c0_115 = arith.constant 0 : index
      %c0_116 = arith.constant 0 : index
      %193 = vector.load %arg19[%c0_114, %c0_115, %c0_116] : memref<4x8x1xf32, #tpu.memory_space<vmem>>, vector<4x8x1xf32>
      %194 = arith.mulf %189, %193 : vector<4x8x1xf32>
      %cst_117 = arith.constant dense<0.000000e+00> : vector<4x8xf32>
      %195 = vector.multi_reduction <add>, %192, %cst_117 [2] : vector<4x8x8xf32> to vector<4x8xf32>
      %196 = vector.shape_cast %195 : vector<4x8xf32> to vector<4x8x1xf32>
      %197 = arith.addf %194, %196 : vector<4x8x1xf32>
      %c0_118 = arith.constant 0 : index
      %c0_119 = arith.constant 0 : index
      %c0_120 = arith.constant 0 : index
      %198 = vector.load %arg19[%c0_118, %c0_119, %c0_120] : memref<4x8x1xf32, #tpu.memory_space<vmem>>, vector<4x8x1xf32>
      tpu.vector_store %arg19[%c0_118, %c0_119, %c0_120], %197 {strides = array<i32>} : memref<4x8x1xf32, #tpu.memory_space<vmem>>, vector<4x8x1xf32>,
      %c0_121 = arith.constant 0 : index
      %c0_122 = arith.constant 0 : index
      %c0_123 = arith.constant 0 : index
      %199 = vector.load %arg20[%c0_121, %c0_122, %c0_123] : memref<4x8x8xf32, #tpu.memory_space<vmem>>, vector<4x8x8xf32>
      %200 = vector.broadcast %189 : vector<4x8x1xf32> to vector<4x8x8xf32>
      %201 = arith.mulf %200, %199 : vector<4x8x8xf32>
      %202 = arith.truncf %192 : vector<4x8x8xf32> to vector<4x8x8xbf16>
      "tpu.trace_start"() <{level = 10 : i32, message = "hts,hsd->htd"}> : () -> ()
      %cst_124 = arith.constant dense<0.000000e+00> : vector<4x8x8xf32>
      %203 = tpu.matmul %202, %173, %cst_124 {dimension_numbers = #tpu.dot_dimension_numbers<[2], [1], [1], [2], [0, 0, 0, 1, 1, 2], [0], [0]>} : vector<4x8x8xbf16>, vector<4x8x8xbf16>, vector<4x8x8xf32> -> vector<4x8x8xf32>
      "tpu.trace_stop"() : () -> ()
      %204 = arith.addf %201, %203 : vector<4x8x8xf32>
      %c0_125 = arith.constant 0 : index
      %c0_126 = arith.constant 0 : index
      %c0_127 = arith.constant 0 : index
      %205 = vector.load %arg20[%c0_125, %c0_126, %c0_127] : memref<4x8x8xf32, #tpu.memory_space<vmem>>, vector<4x8x8xf32>
      tpu.vector_store %arg20[%c0_125, %c0_126, %c0_127], %204 {strides = array<i32>} : memref<4x8x8xf32, #tpu.memory_space<vmem>>, vector<4x8x8xf32>,
      %c0_128 = arith.constant 0 : index
      %c0_129 = arith.constant 0 : index
      %c0_130 = arith.constant 0 : index
      %206 = vector.load %arg18[%c0_128, %c0_129, %c0_130] : memref<4x8x1xf32, #tpu.memory_space<vmem>>, vector<4x8x1xf32>
      tpu.vector_store %arg18[%c0_128, %c0_129, %c0_130], %187 {strides = array<i32>} : memref<4x8x1xf32, #tpu.memory_space<vmem>>, vector<4x8x1xf32>,
    }
    %c0_50 = arith.constant 0 : index
    %c0_51 = arith.constant 0 : index
    %c0_52 = arith.constant 0 : index
    %69 = vector.load %arg20[%c0_50, %c0_51, %c0_52] : memref<4x8x8xf32, #tpu.memory_space<vmem>>, vector<4x8x8xf32>
    %c0_53 = arith.constant 0 : index
    %c0_54 = arith.constant 0 : index
    %c0_55 = arith.constant 0 : index
    %70 = vector.load %arg19[%c0_53, %c0_54, %c0_55] : memref<4x8x1xf32, #tpu.memory_space<vmem>>, vector<4x8x1xf32>
    %71 = tpu.reciprocal %70 {approx = true} : vector<4x8x1xf32> -> vector<4x8x1xf32>
    %72 = arith.mulf %70, %71 : vector<4x8x1xf32>
    %cst_56 = arith.constant 2.000000e+00 : f32
    %73 = vector.broadcast %cst_56 : f32 to vector<4x8x1xf32>
    %74 = arith.subf %73, %72 : vector<4x8x1xf32>
    %75 = arith.mulf %71, %74 : vector<4x8x1xf32>
    %76 = vector.broadcast %75 : vector<4x8x1xf32> to vector<4x8x8xf32>
    %77 = arith.mulf %69, %76 : vector<4x8x8xf32>
    %cst_57 = arith.constant 0.000000e+00 : f32
    %78 = vector.broadcast %cst_57 : f32 to vector<8x32xf32>
    %79 = vector.extract_strided_slice %77 {offsets = [0, 0, 0], sizes = [1, 8, 8], strides = [1, 1, 1]} : vector<4x8x8xf32> to vector<1x8x8xf32>
    %80 = vector.shape_cast %79 : vector<1x8x8xf32> to vector<8x8xf32>
    %81 = arith.truncf %80 : vector<8x8xf32> to vector<8x8xbf16>
    %c0_58 = arith.constant 0 : index
    %c0_59 = arith.constant 0 : index
    %c0_60 = arith.constant 0 : index
    %82 = vector.load %arg6[%c0_58, %c0_59, %c0_60] : memref<4x8x32xbf16, #tpu.memory_space<vmem>>, vector<1x8x32xbf16>
    %83 = vector.shape_cast %82 : vector<1x8x32xbf16> to vector<8x32xbf16>
    %cst_61 = arith.constant dense<0.000000e+00> : vector<8x32xf32>
    %84 = tpu.matmul %81, %83, %cst_61 {dimension_numbers = #tpu.dot_dimension_numbers<[1], [0], [0], [1], [0, 0, 1, 1], [], []>} : vector<8x8xbf16>, vector<8x32xbf16>, vector<8x32xf32> -> vector<8x32xf32>
    %85 = arith.addf %78, %84 : vector<8x32xf32>
    %86 = vector.extract_strided_slice %77 {offsets = [1, 0, 0], sizes = [1, 8, 8], strides = [1, 1, 1]} : vector<4x8x8xf32> to vector<1x8x8xf32>
    %87 = vector.shape_cast %86 : vector<1x8x8xf32> to vector<8x8xf32>
    %88 = arith.truncf %87 : vector<8x8xf32> to vector<8x8xbf16>
    %c1 = arith.constant 1 : index
    %c0_62 = arith.constant 0 : index
    %c0_63 = arith.constant 0 : index
    %89 = vector.load %arg6[%c1, %c0_62, %c0_63] : memref<4x8x32xbf16, #tpu.memory_space<vmem>>, vector<1x8x32xbf16>
    %90 = vector.shape_cast %89 : vector<1x8x32xbf16> to vector<8x32xbf16>
    %cst_64 = arith.constant dense<0.000000e+00> : vector<8x32xf32>
    %91 = tpu.matmul %88, %90, %cst_64 {dimension_numbers = #tpu.dot_dimension_numbers<[1], [0], [0], [1], [0, 0, 1, 1], [], []>} : vector<8x8xbf16>, vector<8x32xbf16>, vector<8x32xf32> -> vector<8x32xf32>
    %92 = arith.addf %85, %91 : vector<8x32xf32>
    %93 = vector.extract_strided_slice %77 {offsets = [2, 0, 0], sizes = [1, 8, 8], strides = [1, 1, 1]} : vector<4x8x8xf32> to vector<1x8x8xf32>
    %94 = vector.shape_cast %93 : vector<1x8x8xf32> to vector<8x8xf32>
    %95 = arith.truncf %94 : vector<8x8xf32> to vector<8x8xbf16>
    %c2 = arith.constant 2 : index
    %c0_65 = arith.constant 0 : index
    %c0_66 = arith.constant 0 : index
    %96 = vector.load %arg6[%c2, %c0_65, %c0_66] : memref<4x8x32xbf16, #tpu.memory_space<vmem>>, vector<1x8x32xbf16>
    %97 = vector.shape_cast %96 : vector<1x8x32xbf16> to vector<8x32xbf16>
    %cst_67 = arith.constant dense<0.000000e+00> : vector<8x32xf32>
    %98 = tpu.matmul %95, %97, %cst_67 {dimension_numbers = #tpu.dot_dimension_numbers<[1], [0], [0], [1], [0, 0, 1, 1], [], []>} : vector<8x8xbf16>, vector<8x32xbf16>, vector<8x32xf32> -> vector<8x32xf32>
    %99 = arith.addf %92, %98 : vector<8x32xf32>
    %100 = vector.extract_strided_slice %77 {offsets = [3, 0, 0], sizes = [1, 8, 8], strides = [1, 1, 1]} : vector<4x8x8xf32> to vector<1x8x8xf32>
    %101 = vector.shape_cast %100 : vector<1x8x8xf32> to vector<8x8xf32>
    %102 = arith.truncf %101 : vector<8x8xf32> to vector<8x8xbf16>
    %c3 = arith.constant 3 : index
    %c0_68 = arith.constant 0 : index
    %c0_69 = arith.constant 0 : index
    %103 = vector.load %arg6[%c3, %c0_68, %c0_69] : memref<4x8x32xbf16, #tpu.memory_space<vmem>>, vector<1x8x32xbf16>
    %104 = vector.shape_cast %103 : vector<1x8x32xbf16> to vector<8x32xbf16>
    %cst_70 = arith.constant dense<0.000000e+00> : vector<8x32xf32>
    %105 = tpu.matmul %102, %104, %cst_70 {dimension_numbers = #tpu.dot_dimension_numbers<[1], [0], [0], [1], [0, 0, 1, 1], [], []>} : vector<8x8xbf16>, vector<8x32xbf16>, vector<8x32xf32> -> vector<8x32xf32>
    %106 = arith.addf %99, %105 : vector<8x32xf32>
    %c0_i32_71 = arith.constant 0 : i32
    %c0_i32_72 = arith.constant 0 : i32
    %107 = tpu.memref_slice %arg1[%c0_i32, %c0_i32_71, %c0_i32_72] : memref<1x8x32xf32, #tpu.memory_space<vmem>> -> memref<1x8x32xf32, #tpu.memory_space<vmem>>
    %108 = tpu.memref_squeeze %107 : memref<1x8x32xf32, #tpu.memory_space<vmem>> -> memref<8x32xf32, #tpu.memory_space<vmem>>
    %109 = arith.index_cast %50 : i32 to index
    %c0_73 = arith.constant 0 : index
    %110 = vector.load %108[%109, %c0_73] : memref<8x32xf32, #tpu.memory_space<vmem>>, vector<8x32xf32>
    %111 = arith.addf %110, %106 : vector<8x32xf32>
    %c0_74 = arith.constant 0 : index
    %c0_75 = arith.constant 0 : index
    %112 = vector.load %arg7[%c0_74, %c0_75] : memref<1x32xf32, #tpu.memory_space<vmem>>, vector<1x32xf32>
    %113 = vector.broadcast %112 : vector<1x32xf32> to vector<8x32xf32>
    %114 = arith.addf %111, %113 : vector<8x32xf32>
    %c0_76 = arith.constant 0 : index
    %c0_77 = arith.constant 0 : index
    %115 = vector.load %arg8[%c0_76, %c0_77] : memref<1x32xf32, #tpu.memory_space<vmem>>, vector<1x32xf32>
    %c0_78 = arith.constant 0 : index
    %c0_79 = arith.constant 0 : index
    %116 = vector.load %arg9[%c0_78, %c0_79] : memref<1x32xf32, #tpu.memory_space<vmem>>, vector<1x32xf32>
    %cst_80 = arith.constant dense<0.000000e+00> : vector<8xf32>
    %117 = vector.multi_reduction <add>, %114, %cst_80 [1] : vector<8x32xf32> to vector<8xf32>
    %118 = vector.shape_cast %117 : vector<8xf32> to vector<8x1xf32>
    %cst_81 = arith.constant 3.200000e+01 : f32
    %119 = vector.broadcast %cst_81 : f32 to vector<8x1xf32>
    %120 = arith.divf %118, %119 : vector<8x1xf32>
    %121 = vector.broadcast %120 : vector<8x1xf32> to vector<8x32xf32>
    %122 = arith.subf %114, %121 : vector<8x32xf32>
    %123 = arith.mulf %122, %122 : vector<8x32xf32>
    %cst_82 = arith.constant dense<0.000000e+00> : vector<8xf32>
    %124 = vector.multi_reduction <add>, %123, %cst_82 [1] : vector<8x32xf32> to vector<8xf32>
    %125 = vector.shape_cast %124 : vector<8xf32> to vector<8x1xf32>
    %cst_83 = arith.constant 3.200000e+01 : f32
    %126 = vector.broadcast %cst_83 : f32 to vector<8x1xf32>
    %127 = arith.divf %125, %126 : vector<8x1xf32>
    %128 = vector.broadcast %120 : vector<8x1xf32> to vector<8x32xf32>
    %129 = arith.subf %114, %128 : vector<8x32xf32>
    %cst_84 = arith.constant 9.99999974E-6 : f32
    %130 = vector.broadcast %cst_84 : f32 to vector<8x1xf32>
    %131 = arith.addf %127, %130 : vector<8x1xf32>
    %132 = math.rsqrt %131 : vector<8x1xf32>
    %133 = vector.broadcast %132 : vector<8x1xf32> to vector<8x32xf32>
    %134 = arith.mulf %129, %133 : vector<8x32xf32>
    %135 = vector.broadcast %115 : vector<1x32xf32> to vector<8x32xf32>
    %136 = arith.mulf %134, %135 : vector<8x32xf32>
    %137 = vector.broadcast %116 : vector<1x32xf32> to vector<8x32xf32>
    %138 = arith.addf %136, %137 : vector<8x32xf32>
    %139 = arith.truncf %138 : vector<8x32xf32> to vector<8x32xbf16>
    %cst_85 = arith.constant 0.000000e+00 : f32
    %140 = vector.broadcast %cst_85 : f32 to vector<8x32xf32>
    %c0_86 = arith.constant 0 : index
    %c0_87 = arith.constant 0 : index
    %141 = vector.load %arg10[%c0_86, %c0_87] : memref<32x128xbf16, #tpu.memory_space<vmem>>, vector<32x128xbf16>
    %cst_88 = arith.constant dense<0.000000e+00> : vector<8x128xf32>
    %142 = tpu.matmul %139, %141, %cst_88 {dimension_numbers = #tpu.dot_dimension_numbers<[1], [0], [0], [1], [0, 0, 1, 1], [], []>} : vector<8x32xbf16>, vector<32x128xbf16>, vector<8x128xf32> -> vector<8x128xf32>
    %c0_89 = arith.constant 0 : index
    %c0_90 = arith.constant 0 : index
    %143 = vector.load %arg11[%c0_89, %c0_90] : memref<1x128xf32, #tpu.memory_space<vmem>>, vector<1x128xf32>
    %144 = vector.broadcast %143 : vector<1x128xf32> to vector<8x128xf32>
    %145 = arith.addf %142, %144 : vector<8x128xf32>
    %cst_91 = arith.constant 5.000000e-01 : f32
    %146 = vector.broadcast %cst_91 : f32 to vector<8x128xf32>
    %147 = arith.mulf %146, %145 : vector<8x128xf32>
    %cst_92 = arith.constant 0.707106769 : f32
    %148 = vector.broadcast %cst_92 : f32 to vector<8x128xf32>
    %149 = arith.mulf %145, %148 : vector<8x128xf32>
    %150 = math.erf %149 : vector<8x128xf32>
    %cst_93 = arith.constant 1.000000e+00 : f32
    %151 = vector.broadcast %cst_93 : f32 to vector<8x128xf32>
    %152 = arith.addf %151, %150 : vector<8x128xf32>
    %153 = arith.mulf %147, %152 : vector<8x128xf32>
    %154 = arith.truncf %153 : vector<8x128xf32> to vector<8x128xbf16>
    %c0_94 = arith.constant 0 : index
    %c0_95 = arith.constant 0 : index
    %155 = vector.load %arg12[%c0_94, %c0_95] : memref<128x32xbf16, #tpu.memory_space<vmem>>, vector<128x32xbf16>
    %cst_96 = arith.constant dense<0.000000e+00> : vector<8x32xf32>
    %156 = tpu.matmul %154, %155, %cst_96 {dimension_numbers = #tpu.dot_dimension_numbers<[1], [0], [0], [1], [0, 0, 1, 1], [], []>} : vector<8x128xbf16>, vector<128x32xbf16>, vector<8x32xf32> -> vector<8x32xf32>
    %157 = arith.addf %140, %156 : vector<8x32xf32>
    %158 = arith.addf %114, %157 : vector<8x32xf32>
    %c0_97 = arith.constant 0 : index
    %c0_98 = arith.constant 0 : index
    %159 = vector.load %arg13[%c0_97, %c0_98] : memref<1x32xf32, #tpu.memory_space<vmem>>, vector<1x32xf32>
    %160 = vector.broadcast %159 : vector<1x32xf32> to vector<8x32xf32>
    %161 = arith.addf %158, %160 : vector<8x32xf32>
    %c0_i32_99 = arith.constant 0 : i32
    %c0_i32_100 = arith.constant 0 : i32
    %162 = tpu.memref_slice %arg14[%c0_i32_24, %c0_i32_99, %c0_i32_100] : memref<1x8x32xf32, #tpu.memory_space<vmem>> -> memref<1x8x32xf32, #tpu.memory_space<vmem>>
    %163 = tpu.memref_squeeze %162 : memref<1x8x32xf32, #tpu.memory_space<vmem>> -> memref<8x32xf32, #tpu.memory_space<vmem>>
    %164 = arith.index_cast %50 : i32 to index
    %c0_101 = arith.constant 0 : index
    %165 = vector.load %163[%164, %c0_101] : memref<8x32xf32, #tpu.memory_space<vmem>>, vector<8x32xf32>
    tpu.vector_store %163[%164, %c0_101], %161 {strides = array<i32>} : memref<8x32xf32, #tpu.memory_space<vmem>>, vector<8x32xf32>,
    %c1_i32_102 = arith.constant 1 : i32
    return
  }
  func.func @transform_0(%arg0: i32) -> (i32, i32, i32) {
    %c0_i32 = arith.constant 0 : i32
    %c0_i32_0 = arith.constant 0 : i32
    %c0_i32_1 = arith.constant 0 : i32
    return %arg0, %c0_i32, %c0_i32_0 : i32, i32, i32
  }
  func.func @transform_1(%arg0: i32) -> (i32, i32) {
    %c0_i32 = arith.constant 0 : i32
    %c0_i32_0 = arith.constant 0 : i32
    %c0_i32_1 = arith.constant 0 : i32
    return %c0_i32, %c0_i32_0 : i32, i32
  }
  func.func @transform_2(%arg0: i32) -> (i32, i32) {
    %c0_i32 = arith.constant 0 : i32
    %c0_i32_0 = arith.constant 0 : i32
    %c0_i32_1 = arith.constant 0 : i32
    return %c0_i32, %c0_i32_0 : i32, i32
  }
  func.func @transform_3(%arg0: i32) -> (i32, i32) {
    %c0_i32 = arith.constant 0 : i32
    %c0_i32_0 = arith.constant 0 : i32
    %c0_i32_1 = arith.constant 0 : i32
    return %c0_i32, %c0_i32_0 : i32, i32
  }
  func.func @transform_4(%arg0: i32) -> (i32, i32) {
    %c0_i32 = arith.constant 0 : i32
    %c0_i32_0 = arith.constant 0 : i32
    %c0_i32_1 = arith.constant 0 : i32
    return %c0_i32, %c0_i32_0 : i32, i32
  }
  func.func @transform_5(%arg0: i32) -> (i32, i32, i32) {
    %c0_i32 = arith.constant 0 : i32
    %c0_i32_0 = arith.constant 0 : i32
    %c0_i32_1 = arith.constant 0 : i32
    %c0_i32_2 = arith.constant 0 : i32
    return %c0_i32, %c0_i32_0, %c0_i32_1 : i32, i32, i32
  }
  func.func @transform_6(%arg0: i32) -> (i32, i32) {
    %c0_i32 = arith.constant 0 : i32
    %c0_i32_0 = arith.constant 0 : i32
    %c0_i32_1 = arith.constant 0 : i32
    return %c0_i32, %c0_i32_0 : i32, i32
  }
  func.func @transform_7(%arg0: i32) -> (i32, i32) {
    %c0_i32 = arith.constant 0 : i32
    %c0_i32_0 = arith.constant 0 : i32
    %c0_i32_1 = arith.constant 0 : i32
    return %c0_i32, %c0_i32_0 : i32, i32
  }
  func.func @transform_8(%arg0: i32) -> (i32, i32) {
    %c0_i32 = arith.constant 0 : i32
    %c0_i32_0 = arith.constant 0 : i32
    %c0_i32_1 = arith.constant 0 : i32
    return %c0_i32, %c0_i32_0 : i32, i32
  }
  func.func @transform_9(%arg0: i32) -> (i32, i32) {
    %c0_i32 = arith.constant 0 : i32
    %c0_i32_0 = arith.constant 0 : i32
    %c0_i32_1 = arith.constant 0 : i32
    return %c0_i32, %c0_i32_0 : i32, i32
  }
  func.func @transform_10(%arg0: i32) -> (i32, i32) {
    %c0_i32 = arith.constant 0 : i32
    %c0_i32_0 = arith.constant 0 : i32
    %c0_i32_1 = arith.constant 0 : i32
    return %c0_i32, %c0_i32_0 : i32, i32
  }
  func.func @transform_11(%arg0: i32) -> (i32, i32) {
    %c0_i32 = arith.constant 0 : i32
    %c0_i32_0 = arith.constant 0 : i32
    %c0_i32_1 = arith.constant 0 : i32
    return %c0_i32, %c0_i32_0 : i32, i32
  }
  func.func @transform_12(%arg0: i32) -> (i32, i32) {
    %c0_i32 = arith.constant 0 : i32
    %c0_i32_0 = arith.constant 0 : i32
    %c0_i32_1 = arith.constant 0 : i32
    return %c0_i32, %c0_i32_0 : i32, i32
  }
  func.func @transform_13(%arg0: i32) -> (i32, i32, i32) {
    %c0_i32 = arith.constant 0 : i32
    %c0_i32_0 = arith.constant 0 : i32
    %c0_i32_1 = arith.constant 0 : i32
    return %arg0, %c0_i32, %c0_i32_0 : i32, i32, i32
  }
}

module attributes {stable_mosaic.version = 11 : i64} {
  func.func @fused_block_kernel(%arg0: i32, %arg1: memref<1x8x32xf32, #tpu.memory_space<vmem>>, %arg2: memref<1x32xf32, #tpu.memory_space<vmem>>, %arg3: memref<1x32xf32, #tpu.memory_space<vmem>>, %arg4: memref<32x96xbf16, #tpu.memory_space<vmem>>, %arg5: memref<1x96xf32, #tpu.memory_space<vmem>>, %arg6: memref<4x8x32xbf16, #tpu.memory_space<vmem>>, %arg7: memref<1x32xf32, #tpu.memory_space<vmem>>, %arg8: memref<1x32xf32, #tpu.memory_space<vmem>>, %arg9: memref<1x32xf32, #tpu.memory_space<vmem>>, %arg10: memref<32x128xbf16, #tpu.memory_space<vmem>>, %arg11: memref<1x128xf32, #tpu.memory_space<vmem>>, %arg12: memref<128x32xbf16, #tpu.memory_space<vmem>>, %arg13: memref<1x32xf32, #tpu.memory_space<vmem>>, %arg14: memref<1x8x32xf32, #tpu.memory_space<vmem>>, %arg15: memref<4x8x8xbf16, #tpu.memory_space<vmem>>, %arg16: memref<4x8x8xbf16, #tpu.memory_space<vmem>>, %arg17: memref<4x8x8xbf16, #tpu.memory_space<vmem>>, %arg18: memref<4x8x1xf32, #tpu.memory_space<vmem>>, %arg19: memref<4x8x1xf32, #tpu.memory_space<vmem>>, %arg20: memref<4x8x8xf32, #tpu.memory_space<vmem>>) attributes {dimension_semantics = [#tpu.dimension_semantics<parallel>], iteration_bounds = array<i64: 2>, scalar_prefetch = 0 : i64, scratch_operands = 6 : i64, tpu.core_type = #tpu.core_type<tc>, window_params = [{transform_indices = @transform_0, window_bounds = array<i64: 1, 8, 32>}, {pipeline_mode = #tpu.pipeline_mode<synchronous>, transform_indices = @transform_1, window_bounds = array<i64: 1, 32>}, {pipeline_mode = #tpu.pipeline_mode<synchronous>, transform_indices = @transform_2, window_bounds = array<i64: 1, 32>}, {pipeline_mode = #tpu.pipeline_mode<synchronous>, transform_indices = @transform_3, window_bounds = array<i64: 32, 96>}, {pipeline_mode = #tpu.pipeline_mode<synchronous>, transform_indices = @transform_4, window_bounds = array<i64: 1, 96>}, {pipeline_mode = #tpu.pipeline_mode<synchronous>, transform_indices = @transform_5, window_bounds = array<i64: 4, 8, 32>}, {pipeline_mode = #tpu.pipeline_mode<synchronous>, transform_indices = @transform_6, window_bounds = array<i64: 1, 32>}, {pipeline_mode = #tpu.pipeline_mode<synchronous>, transform_indices = @transform_7, window_bounds = array<i64: 1, 32>}, {pipeline_mode = #tpu.pipeline_mode<synchronous>, transform_indices = @transform_8, window_bounds = array<i64: 1, 32>}, {pipeline_mode = #tpu.pipeline_mode<synchronous>, transform_indices = @transform_9, window_bounds = array<i64: 32, 128>}, {pipeline_mode = #tpu.pipeline_mode<synchronous>, transform_indices = @transform_10, window_bounds = array<i64: 1, 128>}, {pipeline_mode = #tpu.pipeline_mode<synchronous>, transform_indices = @transform_11, window_bounds = array<i64: 128, 32>}, {pipeline_mode = #tpu.pipeline_mode<synchronous>, transform_indices = @transform_12, window_bounds = array<i64: 1, 32>}, {transform_indices = @transform_13, window_bounds = array<i64: 1, 8, 32>}]} {
    %c0 = arith.constant 0 : index
    %c0_0 = arith.constant 0 : index
    %c0_1 = arith.constant 0 : index
    %0 = vector.load %arg1[%c0, %c0_0, %c0_1] : memref<1x8x32xf32, #tpu.memory_space<vmem>>, vector<1x8x32xf32>
    %1 = vector.shape_cast %0 : vector<1x8x32xf32> to vector<8x32xf32>
    %c0_2 = arith.constant 0 : index
    %c0_3 = arith.constant 0 : index
    %2 = vector.load %arg2[%c0_2, %c0_3] : memref<1x32xf32, #tpu.memory_space<vmem>>, vector<1x32xf32>
    %c0_4 = arith.constant 0 : index
    %c0_5 = arith.constant 0 : index
    %3 = vector.load %arg3[%c0_4, %c0_5] : memref<1x32xf32, #tpu.memory_space<vmem>>, vector<1x32xf32>
    %cst = arith.constant dense<0.000000e+00> : vector<8xf32>
    %4 = vector.multi_reduction <add>, %1, %cst [1] : vector<8x32xf32> to vector<8xf32>
    %5 = vector.shape_cast %4 : vector<8xf32> to vector<8x1xf32>
    %cst_6 = arith.constant 3.200000e+01 : f32
    %6 = vector.broadcast %cst_6 : f32 to vector<8x1xf32>
    %7 = arith.divf %5, %6 : vector<8x1xf32>
    %8 = vector.broadcast %7 : vector<8x1xf32> to vector<8x32xf32>
    %9 = arith.subf %1, %8 : vector<8x32xf32>
    %10 = arith.mulf %9, %9 : vector<8x32xf32>
    %cst_7 = arith.constant dense<0.000000e+00> : vector<8xf32>
    %11 = vector.multi_reduction <add>, %10, %cst_7 [1] : vector<8x32xf32> to vector<8xf32>
    %12 = vector.shape_cast %11 : vector<8xf32> to vector<8x1xf32>
    %cst_8 = arith.constant 3.200000e+01 : f32
    %13 = vector.broadcast %cst_8 : f32 to vector<8x1xf32>
    %14 = arith.divf %12, %13 : vector<8x1xf32>
    %15 = vector.broadcast %7 : vector<8x1xf32> to vector<8x32xf32>
    %16 = arith.subf %1, %15 : vector<8x32xf32>
    %cst_9 = arith.constant 9.99999974E-6 : f32
    %17 = vector.broadcast %cst_9 : f32 to vector<8x1xf32>
    %18 = arith.addf %14, %17 : vector<8x1xf32>
    %19 = math.rsqrt %18 : vector<8x1xf32>
    %20 = vector.broadcast %19 : vector<8x1xf32> to vector<8x32xf32>
    %21 = arith.mulf %16, %20 : vector<8x32xf32>
    %22 = vector.broadcast %2 : vector<1x32xf32> to vector<8x32xf32>
    %23 = arith.mulf %21, %22 : vector<8x32xf32>
    %24 = vector.broadcast %3 : vector<1x32xf32> to vector<8x32xf32>
    %25 = arith.addf %23, %24 : vector<8x32xf32>
    %26 = arith.truncf %25 : vector<8x32xf32> to vector<8x32xbf16>
    %c0_10 = arith.constant 0 : index
    %c0_11 = arith.constant 0 : index
    %27 = vector.load %arg4[%c0_10, %c0_11] : memref<32x96xbf16, #tpu.memory_space<vmem>>, vector<32x96xbf16>
    %cst_12 = arith.constant dense<0.000000e+00> : vector<8x96xf32>
    %28 = tpu.matmul %26, %27, %cst_12 {dimension_numbers = #tpu.dot_dimension_numbers<[1], [0], [0], [1], [0, 0, 1, 1], [], []>} : vector<8x32xbf16>, vector<32x96xbf16>, vector<8x96xf32> -> vector<8x96xf32>
    %c0_13 = arith.constant 0 : index
    %c0_14 = arith.constant 0 : index
    %29 = vector.load %arg5[%c0_13, %c0_14] : memref<1x96xf32, #tpu.memory_space<vmem>>, vector<1x96xf32>
    %30 = vector.broadcast %29 : vector<1x96xf32> to vector<8x96xf32>
    %31 = arith.addf %28, %30 : vector<8x96xf32>
    %32 = vector.extract_strided_slice %31 {offsets = [0, 0], sizes = [8, 32], strides = [1, 1]} : vector<8x96xf32> to vector<8x32xf32>
    %33 = vector.shape_cast %32 : vector<8x32xf32> to vector<8x4x8xf32>
    %34 = tpu.transpose %33, [1, 0, 2] : vector<8x4x8xf32> -> vector<4x8x8xf32>
    %35 = arith.truncf %34 : vector<4x8x8xf32> to vector<4x8x8xbf16>
    %c0_15 = arith.constant 0 : index
    %c0_16 = arith.constant 0 : index
    %c0_17 = arith.constant 0 : index
    %36 = vector.load %arg15[%c0_15, %c0_16, %c0_17] : memref<4x8x8xbf16, #tpu.memory_space<vmem>>, vector<4x8x8xbf16>
    tpu.vector_store %arg15[%c0_15, %c0_16, %c0_17], %35 {strides = array<i32>} : memref<4x8x8xbf16, #tpu.memory_space<vmem>>, vector<4x8x8xbf16>,
    %37 = vector.extract_strided_slice %31 {offsets = [0, 32], sizes = [8, 32], strides = [1, 1]} : vector<8x96xf32> to vector<8x32xf32>
    %38 = vector.shape_cast %37 : vector<8x32xf32> to vector<8x4x8xf32>
    %39 = tpu.transpose %38, [1, 0, 2] : vector<8x4x8xf32> -> vector<4x8x8xf32>
    %40 = arith.truncf %39 : vector<4x8x8xf32> to vector<4x8x8xbf16>
    %c0_18 = arith.constant 0 : index
    %c0_19 = arith.constant 0 : index
    %c0_20 = arith.constant 0 : index
    %41 = vector.load %arg16[%c0_18, %c0_19, %c0_20] : memref<4x8x8xbf16, #tpu.memory_space<vmem>>, vector<4x8x8xbf16>
    tpu.vector_store %arg16[%c0_18, %c0_19, %c0_20], %40 {strides = array<i32>} : memref<4x8x8xbf16, #tpu.memory_space<vmem>>, vector<4x8x8xbf16>,
    %42 = vector.extract_strided_slice %31 {offsets = [0, 64], sizes = [8, 32], strides = [1, 1]} : vector<8x96xf32> to vector<8x32xf32>
    %43 = vector.shape_cast %42 : vector<8x32xf32> to vector<8x4x8xf32>
    %44 = tpu.transpose %43, [1, 0, 2] : vector<8x4x8xf32> -> vector<4x8x8xf32>
    %45 = arith.truncf %44 : vector<4x8x8xf32> to vector<4x8x8xbf16>
    %c0_21 = arith.constant 0 : index
    %c0_22 = arith.constant 0 : index
    %c0_23 = arith.constant 0 : index
    %46 = vector.load %arg17[%c0_21, %c0_22, %c0_23] : memref<4x8x8xbf16, #tpu.memory_space<vmem>>, vector<4x8x8xbf16>
    tpu.vector_store %arg17[%c0_21, %c0_22, %c0_23], %45 {strides = array<i32>} : memref<4x8x8xbf16, #tpu.memory_space<vmem>>, vector<4x8x8xbf16>,
    %c0_i32 = arith.constant 0 : i32
    %c0_i32_24 = arith.constant 0 : i32
    %c0_i32_25 = arith.constant 0 : i32
    %c1_i32 = arith.constant 1 : i32
    %47 = arith.muli %c0_i32_25, %c1_i32 : i32
    %c0_i32_26 = arith.constant 0 : i32
    %48 = arith.addi %c0_i32_26, %47 : i32
    %c8_i32 = arith.constant 8 : i32
    %49 = arith.muli %48, %c8_i32 : i32
    %50 = tpu.assume_multiple %49, 8 : i32
    %c0_27 = arith.constant 0 : index
    %51 = arith.index_cast %50 : i32 to index
    %c0_28 = arith.constant 0 : index
    %52 = vector.load %arg15[%c0_27, %51, %c0_28] : memref<4x8x8xbf16, #tpu.memory_space<vmem>>, vector<4x8x8xbf16>
    %cst_29 = arith.constant -1.000000e+30 : f32
    %53 = vector.broadcast %cst_29 : f32 to vector<4x8x1xf32>
    %c0_30 = arith.constant 0 : index
    %c0_31 = arith.constant 0 : index
    %c0_32 = arith.constant 0 : index
    %54 = vector.load %arg18[%c0_30, %c0_31, %c0_32] : memref<4x8x1xf32, #tpu.memory_space<vmem>>, vector<4x8x1xf32>
    tpu.vector_store %arg18[%c0_30, %c0_31, %c0_32], %53 {strides = array<i32>} : memref<4x8x1xf32, #tpu.memory_space<vmem>>, vector<4x8x1xf32>,
    %cst_33 = arith.constant 0.000000e+00 : f32
    %55 = vector.broadcast %cst_33 : f32 to vector<4x8x1xf32>
    %c0_34 = arith.constant 0 : index
    %c0_35 = arith.constant 0 : index
    %c0_36 = arith.constant 0 : index
    %56 = vector.load %arg19[%c0_34, %c0_35, %c0_36] : memref<4x8x1xf32, #tpu.memory_space<vmem>>, vector<4x8x1xf32>
    tpu.vector_store %arg19[%c0_34, %c0_35, %c0_36], %55 {strides = array<i32>} : memref<4x8x1xf32, #tpu.memory_space<vmem>>, vector<4x8x1xf32>,
    %cst_37 = arith.constant 0.000000e+00 : f32
    %57 = vector.broadcast %cst_37 : f32 to vector<4x8x8xf32>
    %c0_38 = arith.constant 0 : index
    %c0_39 = arith.constant 0 : index
    %c0_40 = arith.constant 0 : index
    %58 = vector.load %arg20[%c0_38, %c0_39, %c0_40] : memref<4x8x8xf32, #tpu.memory_space<vmem>>, vector<4x8x8xf32>
    tpu.vector_store %arg20[%c0_38, %c0_39, %c0_40], %57 {strides = array<i32>} : memref<4x8x8xf32, #tpu.memory_space<vmem>>, vector<4x8x8xf32>,
    %59 = tpu.iota {dimensions = array<i32: 0>} : vector<8x8xi32>
    %60 = vector.broadcast %50 : i32 to vector<8x8xi32>
    %61 = arith.addi %60, %59 : vector<8x8xi32>
    %c1_i32_41 = arith.constant 1 : i32
    %62 = arith.addi %48, %c1_i32_41 : i32
    %c0_i32_42 = arith.constant 0 : i32
    %63 = arith.subi %62, %c0_i32_42 : i32
    %c1_i32_43 = arith.constant 1 : i32
    %c1_i32_44 = arith.constant 1 : i32
    %64 = arith.subi %c1_i32_43, %c1_i32_44 : i32
    %65 = arith.addi %63, %64 : i32
    %c1_i32_45 = arith.constant 1 : i32
    %66 = arith.divsi %65, %c1_i32_45 : i32
    %c1_i32_46 = arith.constant 1 : i32
    %c0_i32_47 = arith.constant 0 : i32
    %c0_i32_48 = arith.constant 0 : i32
    %67 = arith.subi %66, %c0_i32_48 : i32
    %68 = arith.addi %c0_i32_48, %67 : i32
    %c1_i32_49 = arith.constant 1 : i32
    scf.for %arg21 = %c0_i32_48 to %68 step %c1_i32_49  : i32 {
      %166 = arith.muli %arg21, %c1_i32_46 : i32
      %167 = arith.addi %c0_i32_47, %166 : i32
      %c8_i32_103 = arith.constant 8 : i32
      %168 = arith.muli %167, %c8_i32_103 : i32
      %169 = tpu.assume_multiple %168, 8 : i32
      %c0_104 = arith.constant 0 : index
      %170 = arith.index_cast %169 : i32 to index
      %c0_105 = arith.constant 0 : index
      %171 = vector.load %arg16[%c0_104, %170, %c0_105] : memref<4x8x8xbf16, #tpu.memory_space<vmem>>, vector<4x8x8xbf16>
      %c0_106 = arith.constant 0 : index
      %172 = arith.index_cast %169 : i32 to index
      %c0_107 = arith.constant 0 : index
      %173 = vector.load %arg17[%c0_106, %172, %c0_107] : memref<4x8x8xbf16, #tpu.memory_space<vmem>>, vector<4x8x8xbf16>
      "tpu.trace_start"() <{level = 10 : i32, message = "htd,hsd->hts"}> : () -> ()
      %cst_108 = arith.constant dense<0.000000e+00> : vector<4x8x8xf32>
      %174 = tpu.matmul %52, %171, %cst_108 {dimension_numbers = #tpu.dot_dimension_numbers<[2], [2], [1], [1], [0, 0, 0, 1, 1, 1], [0], [0]>} : vector<4x8x8xbf16>, vector<4x8x8xbf16>, vector<4x8x8xf32> -> vector<4x8x8xf32>
      "tpu.trace_stop"() : () -> ()
      %175 = tpu.iota {dimensions = array<i32: 1>} : vector<8x8xi32>
      %176 = vector.broadcast %169 : i32 to vector<8x8xi32>
      %177 = arith.addi %176, %175 : vector<8x8xi32>
      %178 = arith.cmpi sle, %177, %61 : vector<8x8xi32>
      %179 = vector.shape_cast %178 : vector<8x8xi1> to vector<1x8x8xi1>
      %cst_109 = arith.constant -1.000000e+30 : f32
      %180 = vector.shape_cast %179 : vector<1x8x8xi1> to vector<1x8x8xi1>
      %181 = vector.broadcast %180 : vector<1x8x8xi1> to vector<4x8x8xi1>
      %182 = vector.broadcast %cst_109 : f32 to vector<4x8x8xf32>
      %183 = arith.select %181, %174, %182 : vector<4x8x8xi1>, vector<4x8x8xf32>
      %c0_110 = arith.constant 0 : index
      %c0_111 = arith.constant 0 : index
      %c0_112 = arith.constant 0 : index
      %184 = vector.load %arg18[%c0_110, %c0_111, %c0_112] : memref<4x8x1xf32, #tpu.memory_space<vmem>>, vector<4x8x1xf32>
      %cst_113 = arith.constant dense<0xFF800000> : vector<4x8xf32>
      %185 = vector.multi_reduction <maximumf>, %183, %cst_113 [2] : vector<4x8x8xf32> to vector<4x8xf32>
      %186 = vector.shape_cast %185 : vector<4x8xf32> to vector<4x8x1xf32>
      %187 = arith.maximumf %184, %186 : vector<4x8x1xf32>
      %188 = arith.subf %184, %187 : vector<4x8x1xf32>
      %189 = math.exp %188 : vector<4x8x1xf32>
      %190 = vector.broadcast %187 : vector<4x8x1xf32> to vector<4x8x8xf32>
      %191 = arith.subf %183, %190 : vector<4x8x8xf32>
      %192 = math.exp %191 : vector<4x8x8xf32>
      %c0_114 = arith.constant 0 : index
      %c0_115 = arith.constant 0 : index
      %c0_116 = arith.constant 0 : index
      %193 = vector.load %arg19[%c0_114, %c0_115, %c0_116] : memref<4x8x1xf32, #tpu.memory_space<vmem>>, vector<4x8x1xf32>
      %194 = arith.mulf %189, %193 : vector<4x8x1xf32>
      %cst_117 = arith.constant dense<0.000000e+00> : vector<4x8xf32>
      %195 = vector.multi_reduction <add>, %192, %cst_117 [2] : vector<4x8x8xf32> to vector<4x8xf32>
      %196 = vector.shape_cast %195 : vector<4x8xf32> to vector<4x8x1xf32>
      %197 = arith.addf %194, %196 : vector<4x8x1xf32>
      %c0_118 = arith.constant 0 : index
      %c0_119 = arith.constant 0 : index
      %c0_120 = arith.constant 0 : index
      %198 = vector.load %arg19[%c0_118, %c0_119, %c0_120] : memref<4x8x1xf32, #tpu.memory_space<vmem>>, vector<4x8x1xf32>
      tpu.vector_store %arg19[%c0_118, %c0_119, %c0_120], %197 {strides = array<i32>} : memref<4x8x1xf32, #tpu.memory_space<vmem>>, vector<4x8x1xf32>,
      %c0_121 = arith.constant 0 : index
      %c0_122 = arith.constant 0 : index
      %c0_123 = arith.constant 0 : index
      %199 = vector.load %arg20[%c0_121, %c0_122, %c0_123] : memref<4x8x8xf32, #tpu.memory_space<vmem>>, vector<4x8x8xf32>
      %200 = vector.broadcast %189 : vector<4x8x1xf32> to vector<4x8x8xf32>
      %201 = arith.mulf %200, %199 : vector<4x8x8xf32>
      %202 = arith.truncf %192 : vector<4x8x8xf32> to vector<4x8x8xbf16>
      "tpu.trace_start"() <{level = 10 : i32, message = "hts,hsd->htd"}> : () -> ()
      %cst_124 = arith.constant dense<0.000000e+00> : vector<4x8x8xf32>
      %203 = tpu.matmul %202, %173, %cst_124 {dimension_numbers = #tpu.dot_dimension_numbers<[2], [1], [1], [2], [0, 0, 0, 1, 1, 2], [0], [0]>} : vector<4x8x8xbf16>, vector<4x8x8xbf16>, vector<4x8x8xf32> -> vector<4x8x8xf32>
      "tpu.trace_stop"() : () -> ()
      %204 = arith.addf %201, %203 : vector<4x8x8xf32>
      %c0_125 = arith.constant 0 : index
      %c0_126 = arith.constant 0 : index
      %c0_127 = arith.constant 0 : index
      %205 = vector.load %arg20[%c0_125, %c0_126, %c0_127] : memref<4x8x8xf32, #tpu.memory_space<vmem>>, vector<4x8x8xf32>
      tpu.vector_store %arg20[%c0_125, %c0_126, %c0_127], %204 {strides = array<i32>} : memref<4x8x8xf32, #tpu.memory_space<vmem>>, vector<4x8x8xf32>,
      %c0_128 = arith.constant 0 : index
      %c0_129 = arith.constant 0 : index
      %c0_130 = arith.constant 0 : index
      %206 = vector.load %arg18[%c0_128, %c0_129, %c0_130] : memref<4x8x1xf32, #tpu.memory_space<vmem>>, vector<4x8x1xf32>
      tpu.vector_store %arg18[%c0_128, %c0_129, %c0_130], %187 {strides = array<i32>} : memref<4x8x1xf32, #tpu.memory_space<vmem>>, vector<4x8x1xf32>,
    }
    %c0_50 = arith.constant 0 : index
    %c0_51 = arith.constant 0 : index
    %c0_52 = arith.constant 0 : index
    %69 = vector.load %arg20[%c0_50, %c0_51, %c0_52] : memref<4x8x8xf32, #tpu.memory_space<vmem>>, vector<4x8x8xf32>
    %c0_53 = arith.constant 0 : index
    %c0_54 = arith.constant 0 : index
    %c0_55 = arith.constant 0 : index
    %70 = vector.load %arg19[%c0_53, %c0_54, %c0_55] : memref<4x8x1xf32, #tpu.memory_space<vmem>>, vector<4x8x1xf32>
    %71 = tpu.reciprocal %70 {approx = true} : vector<4x8x1xf32> -> vector<4x8x1xf32>
    %72 = arith.mulf %70, %71 : vector<4x8x1xf32>
    %cst_56 = arith.constant 2.000000e+00 : f32
    %73 = vector.broadcast %cst_56 : f32 to vector<4x8x1xf32>
    %74 = arith.subf %73, %72 : vector<4x8x1xf32>
    %75 = arith.mulf %71, %74 : vector<4x8x1xf32>
    %76 = vector.broadcast %75 : vector<4x8x1xf32> to vector<4x8x8xf32>
    %77 = arith.mulf %69, %76 : vector<4x8x8xf32>
    %cst_57 = arith.constant 0.000000e+00 : f32
    %78 = vector.broadcast %cst_57 : f32 to vector<8x32xf32>
    %79 = vector.extract_strided_slice %77 {offsets = [0, 0, 0], sizes = [1, 8, 8], strides = [1, 1, 1]} : vector<4x8x8xf32> to vector<1x8x8xf32>
    %80 = vector.shape_cast %79 : vector<1x8x8xf32> to vector<8x8xf32>
    %81 = arith.truncf %80 : vector<8x8xf32> to vector<8x8xbf16>
    %c0_58 = arith.constant 0 : index
    %c0_59 = arith.constant 0 : index
    %c0_60 = arith.constant 0 : index
    %82 = vector.load %arg6[%c0_58, %c0_59, %c0_60] : memref<4x8x32xbf16, #tpu.memory_space<vmem>>, vector<1x8x32xbf16>
    %83 = vector.shape_cast %82 : vector<1x8x32xbf16> to vector<8x32xbf16>
    %cst_61 = arith.constant dense<0.000000e+00> : vector<8x32xf32>
    %84 = tpu.matmul %81, %83, %cst_61 {dimension_numbers = #tpu.dot_dimension_numbers<[1], [0], [0], [1], [0, 0, 1, 1], [], []>} : vector<8x8xbf16>, vector<8x32xbf16>, vector<8x32xf32> -> vector<8x32xf32>
    %85 = arith.addf %78, %84 : vector<8x32xf32>
    %86 = vector.extract_strided_slice %77 {offsets = [1, 0, 0], sizes = [1, 8, 8], strides = [1, 1, 1]} : vector<4x8x8xf32> to vector<1x8x8xf32>
    %87 = vector.shape_cast %86 : vector<1x8x8xf32> to vector<8x8xf32>
    %88 = arith.truncf %87 : vector<8x8xf32> to vector<8x8xbf16>
    %c1 = arith.constant 1 : index
    %c0_62 = arith.constant 0 : index
    %c0_63 = arith.constant 0 : index
    %89 = vector.load %arg6[%c1, %c0_62, %c0_63] : memref<4x8x32xbf16, #tpu.memory_space<vmem>>, vector<1x8x32xbf16>
    %90 = vector.shape_cast %89 : vector<1x8x32xbf16> to vector<8x32xbf16>
    %cst_64 = arith.constant dense<0.000000e+00> : vector<8x32xf32>
    %91 = tpu.matmul %88, %90, %cst_64 {dimension_numbers = #tpu.dot_dimension_numbers<[1], [0], [0], [1], [0, 0, 1, 1], [], []>} : vector<8x8xbf16>, vector<8x32xbf16>, vector<8x32xf32> -> vector<8x32xf32>
    %92 = arith.addf %85, %91 : vector<8x32xf32>
    %93 = vector.extract_strided_slice %77 {offsets = [2, 0, 0], sizes = [1, 8, 8], strides = [1, 1, 1]} : vector<4x8x8xf32> to vector<1x8x8xf32>
    %94 = vector.shape_cast %93 : vector<1x8x8xf32> to vector<8x8xf32>
    %95 = arith.truncf %94 : vector<8x8xf32> to vector<8x8xbf16>
    %c2 = arith.constant 2 : index
    %c0_65 = arith.constant 0 : index
    %c0_66 = arith.constant 0 : index
    %96 = vector.load %arg6[%c2, %c0_65, %c0_66] : memref<4x8x32xbf16, #tpu.memory_space<vmem>>, vector<1x8x32xbf16>
    %97 = vector.shape_cast %96 : vector<1x8x32xbf16> to vector<8x32xbf16>
    %cst_67 = arith.constant dense<0.000000e+00> : vector<8x32xf32>
    %98 = tpu.matmul %95, %97, %cst_67 {dimension_numbers = #tpu.dot_dimension_numbers<[1], [0], [0], [1], [0, 0, 1, 1], [], []>} : vector<8x8xbf16>, vector<8x32xbf16>, vector<8x32xf32> -> vector<8x32xf32>
    %99 = arith.addf %92, %98 : vector<8x32xf32>
    %100 = vector.extract_strided_slice %77 {offsets = [3, 0, 0], sizes = [1, 8, 8], strides = [1, 1, 1]} : vector<4x8x8xf32> to vector<1x8x8xf32>
    %101 = vector.shape_cast %100 : vector<1x8x8xf32> to vector<8x8xf32>
    %102 = arith.truncf %101 : vector<8x8xf32> to vector<8x8xbf16>
    %c3 = arith.constant 3 : index
    %c0_68 = arith.constant 0 : index
    %c0_69 = arith.constant 0 : index
    %103 = vector.load %arg6[%c3, %c0_68, %c0_69] : memref<4x8x32xbf16, #tpu.memory_space<vmem>>, vector<1x8x32xbf16>
    %104 = vector.shape_cast %103 : vector<1x8x32xbf16> to vector<8x32xbf16>
    %cst_70 = arith.constant dense<0.000000e+00> : vector<8x32xf32>
    %105 = tpu.matmul %102, %104, %cst_70 {dimension_numbers = #tpu.dot_dimension_numbers<[1], [0], [0], [1], [0, 0, 1, 1], [], []>} : vector<8x8xbf16>, vector<8x32xbf16>, vector<8x32xf32> -> vector<8x32xf32>
    %106 = arith.addf %99, %105 : vector<8x32xf32>
    %c0_i32_71 = arith.constant 0 : i32
    %c0_i32_72 = arith.constant 0 : i32
    %107 = tpu.memref_slice %arg1[%c0_i32, %c0_i32_71, %c0_i32_72] : memref<1x8x32xf32, #tpu.memory_space<vmem>> -> memref<1x8x32xf32, #tpu.memory_space<vmem>>
    %108 = tpu.memref_squeeze %107 : memref<1x8x32xf32, #tpu.memory_space<vmem>> -> memref<8x32xf32, #tpu.memory_space<vmem>>
    %109 = arith.index_cast %50 : i32 to index
    %c0_73 = arith.constant 0 : index
    %110 = vector.load %108[%109, %c0_73] : memref<8x32xf32, #tpu.memory_space<vmem>>, vector<8x32xf32>
    %111 = arith.addf %110, %106 : vector<8x32xf32>
    %c0_74 = arith.constant 0 : index
    %c0_75 = arith.constant 0 : index
    %112 = vector.load %arg7[%c0_74, %c0_75] : memref<1x32xf32, #tpu.memory_space<vmem>>, vector<1x32xf32>
    %113 = vector.broadcast %112 : vector<1x32xf32> to vector<8x32xf32>
    %114 = arith.addf %111, %113 : vector<8x32xf32>
    %c0_76 = arith.constant 0 : index
    %c0_77 = arith.constant 0 : index
    %115 = vector.load %arg8[%c0_76, %c0_77] : memref<1x32xf32, #tpu.memory_space<vmem>>, vector<1x32xf32>
    %c0_78 = arith.constant 0 : index
    %c0_79 = arith.constant 0 : index
    %116 = vector.load %arg9[%c0_78, %c0_79] : memref<1x32xf32, #tpu.memory_space<vmem>>, vector<1x32xf32>
    %cst_80 = arith.constant dense<0.000000e+00> : vector<8xf32>
    %117 = vector.multi_reduction <add>, %114, %cst_80 [1] : vector<8x32xf32> to vector<8xf32>
    %118 = vector.shape_cast %117 : vector<8xf32> to vector<8x1xf32>
    %cst_81 = arith.constant 3.200000e+01 : f32
    %119 = vector.broadcast %cst_81 : f32 to vector<8x1xf32>
    %120 = arith.divf %118, %119 : vector<8x1xf32>
    %121 = vector.broadcast %120 : vector<8x1xf32> to vector<8x32xf32>
    %122 = arith.subf %114, %121 : vector<8x32xf32>
    %123 = arith.mulf %122, %122 : vector<8x32xf32>
    %cst_82 = arith.constant dense<0.000000e+00> : vector<8xf32>
    %124 = vector.multi_reduction <add>, %123, %cst_82 [1] : vector<8x32xf32> to vector<8xf32>
    %125 = vector.shape_cast %124 : vector<8xf32> to vector<8x1xf32>
    %cst_83 = arith.constant 3.200000e+01 : f32
    %126 = vector.broadcast %cst_83 : f32 to vector<8x1xf32>
    %127 = arith.divf %125, %126 : vector<8x1xf32>
    %128 = vector.broadcast %120 : vector<8x1xf32> to vector<8x32xf32>
    %129 = arith.subf %114, %128 : vector<8x32xf32>
    %cst_84 = arith.constant 9.99999974E-6 : f32
    %130 = vector.broadcast %cst_84 : f32 to vector<8x1xf32>
    %131 = arith.addf %127, %130 : vector<8x1xf32>
    %132 = math.rsqrt %131 : vector<8x1xf32>
    %133 = vector.broadcast %132 : vector<8x1xf32> to vector<8x32xf32>
    %134 = arith.mulf %129, %133 : vector<8x32xf32>
    %135 = vector.broadcast %115 : vector<1x32xf32> to vector<8x32xf32>
    %136 = arith.mulf %134, %135 : vector<8x32xf32>
    %137 = vector.broadcast %116 : vector<1x32xf32> to vector<8x32xf32>
    %138 = arith.addf %136, %137 : vector<8x32xf32>
    %139 = arith.truncf %138 : vector<8x32xf32> to vector<8x32xbf16>
    %cst_85 = arith.constant 0.000000e+00 : f32
    %140 = vector.broadcast %cst_85 : f32 to vector<8x32xf32>
    %c0_86 = arith.constant 0 : index
    %c0_87 = arith.constant 0 : index
    %141 = vector.load %arg10[%c0_86, %c0_87] : memref<32x128xbf16, #tpu.memory_space<vmem>>, vector<32x128xbf16>
    %cst_88 = arith.constant dense<0.000000e+00> : vector<8x128xf32>
    %142 = tpu.matmul %139, %141, %cst_88 {dimension_numbers = #tpu.dot_dimension_numbers<[1], [0], [0], [1], [0, 0, 1, 1], [], []>} : vector<8x32xbf16>, vector<32x128xbf16>, vector<8x128xf32> -> vector<8x128xf32>
    %c0_89 = arith.constant 0 : index
    %c0_90 = arith.constant 0 : index
    %143 = vector.load %arg11[%c0_89, %c0_90] : memref<1x128xf32, #tpu.memory_space<vmem>>, vector<1x128xf32>
    %144 = vector.broadcast %143 : vector<1x128xf32> to vector<8x128xf32>
    %145 = arith.addf %142, %144 : vector<8x128xf32>
    %cst_91 = arith.constant 5.000000e-01 : f32
    %146 = vector.broadcast %cst_91 : f32 to vector<8x128xf32>
    %147 = arith.mulf %146, %145 : vector<8x128xf32>
    %cst_92 = arith.constant 0.707106769 : f32
    %148 = vector.broadcast %cst_92 : f32 to vector<8x128xf32>
    %149 = arith.mulf %145, %148 : vector<8x128xf32>
    %150 = math.erf %149 : vector<8x128xf32>
    %cst_93 = arith.constant 1.000000e+00 : f32
    %151 = vector.broadcast %cst_93 : f32 to vector<8x128xf32>
    %152 = arith.addf %151, %150 : vector<8x128xf32>
    %153 = arith.mulf %147, %152 : vector<8x128xf32>
    %154 = arith.truncf %153 : vector<8x128xf32> to vector<8x128xbf16>
    %c0_94 = arith.constant 0 : index
    %c0_95 = arith.constant 0 : index
    %155 = vector.load %arg12[%c0_94, %c0_95] : memref<128x32xbf16, #tpu.memory_space<vmem>>, vector<128x32xbf16>
    %cst_96 = arith.constant dense<0.000000e+00> : vector<8x32xf32>
    %156 = tpu.matmul %154, %155, %cst_96 {dimension_numbers = #tpu.dot_dimension_numbers<[1], [0], [0], [1], [0, 0, 1, 1], [], []>} : vector<8x128xbf16>, vector<128x32xbf16>, vector<8x32xf32> -> vector<8x32xf32>
    %157 = arith.addf %140, %156 : vector<8x32xf32>
    %158 = arith.addf %114, %157 : vector<8x32xf32>
    %c0_97 = arith.constant 0 : index
    %c0_98 = arith.constant 0 : index
    %159 = vector.load %arg13[%c0_97, %c0_98] : memref<1x32xf32, #tpu.memory_space<vmem>>, vector<1x32xf32>
    %160 = vector.broadcast %159 : vector<1x32xf32> to vector<8x32xf32>
    %161 = arith.addf %158, %160 : vector<8x32xf32>
    %c0_i32_99 = arith.constant 0 : i32
    %c0_i32_100 = arith.constant 0 : i32
    %162 = tpu.memref_slice %arg14[%c0_i32_24, %c0_i32_99, %c0_i32_100] : memref<1x8x32xf32, #tpu.memory_space<vmem>> -> memref<1x8x32xf32, #tpu.memory_space<vmem>>
    %163 = tpu.memref_squeeze %162 : memref<1x8x32xf32, #tpu.memory_space<vmem>> -> memref<8x32xf32, #tpu.memory_space<vmem>>
    %164 = arith.index_cast %50 : i32 to index
    %c0_101 = arith.constant 0 : index
    %165 = vector.load %163[%164, %c0_101] : memref<8x32xf32, #tpu.memory_space<vmem>>, vector<8x32xf32>
    tpu.vector_store %163[%164, %c0_101], %161 {strides = array<i32>} : memref<8x32xf32, #tpu.memory_space<vmem>>, vector<8x32xf32>,
    %c1_i32_102 = arith.constant 1 : i32
    return
  }
  func.func @transform_0(%arg0: i32) -> (i32, i32, i32) {
    %c0_i32 = arith.constant 0 : i32
    %c0_i32_0 = arith.constant 0 : i32
    %c0_i32_1 = arith.constant 0 : i32
    return %arg0, %c0_i32, %c0_i32_0 : i32, i32, i32
  }
  func.func @transform_1(%arg0: i32) -> (i32, i32) {
    %c0_i32 = arith.constant 0 : i32
    %c0_i32_0 = arith.constant 0 : i32
    %c0_i32_1 = arith.constant 0 : i32
    return %c0_i32, %c0_i32_0 : i32, i32
  }
  func.func @transform_2(%arg0: i32) -> (i32, i32) {
    %c0_i32 = arith.constant 0 : i32
    %c0_i32_0 = arith.constant 0 : i32
    %c0_i32_1 = arith.constant 0 : i32
    return %c0_i32, %c0_i32_0 : i32, i32
  }
  func.func @transform_3(%arg0: i32) -> (i32, i32) {
    %c0_i32 = arith.constant 0 : i32
    %c0_i32_0 = arith.constant 0 : i32
    %c0_i32_1 = arith.constant 0 : i32
    return %c0_i32, %c0_i32_0 : i32, i32
  }
  func.func @transform_4(%arg0: i32) -> (i32, i32) {
    %c0_i32 = arith.constant 0 : i32
    %c0_i32_0 = arith.constant 0 : i32
    %c0_i32_1 = arith.constant 0 : i32
    return %c0_i32, %c0_i32_0 : i32, i32
  }
  func.func @transform_5(%arg0: i32) -> (i32, i32, i32) {
    %c0_i32 = arith.constant 0 : i32
    %c0_i32_0 = arith.constant 0 : i32
    %c0_i32_1 = arith.constant 0 : i32
    %c0_i32_2 = arith.constant 0 : i32
    return %c0_i32, %c0_i32_0, %c0_i32_1 : i32, i32, i32
  }
  func.func @transform_6(%arg0: i32) -> (i32, i32) {
    %c0_i32 = arith.constant 0 : i32
    %c0_i32_0 = arith.constant 0 : i32
    %c0_i32_1 = arith.constant 0 : i32
    return %c0_i32, %c0_i32_0 : i32, i32
  }
  func.func @transform_7(%arg0: i32) -> (i32, i32) {
    %c0_i32 = arith.constant 0 : i32
    %c0_i32_0 = arith.constant 0 : i32
    %c0_i32_1 = arith.constant 0 : i32
    return %c0_i32, %c0_i32_0 : i32, i32
  }
  func.func @transform_8(%arg0: i32) -> (i32, i32) {
    %c0_i32 = arith.constant 0 : i32
    %c0_i32_0 = arith.constant 0 : i32
    %c0_i32_1 = arith.constant 0 : i32
    return %c0_i32, %c0_i32_0 : i32, i32
  }
  func.func @transform_9(%arg0: i32) -> (i32, i32) {
    %c0_i32 = arith.constant 0 : i32
    %c0_i32_0 = arith.constant 0 : i32
    %c0_i32_1 = arith.constant 0 : i32
    return %c0_i32, %c0_i32_0 : i32, i32
  }
  func.func @transform_10(%arg0: i32) -> (i32, i32) {
    %c0_i32 = arith.constant 0 : i32
    %c0_i32_0 = arith.constant 0 : i32
    %c0_i32_1 = arith.constant 0 : i32
    return %c0_i32, %c0_i32_0 : i32, i32
  }
  func.func @transform_11(%arg0: i32) -> (i32, i32) {
    %c0_i32 = arith.constant 0 : i32
    %c0_i32_0 = arith.constant 0 : i32
    %c0_i32_1 = arith.constant 0 : i32
    return %c0_i32, %c0_i32_0 : i32, i32
  }
  func.func @transform_12(%arg0: i32) -> (i32, i32) {
    %c0_i32 = arith.constant 0 : i32
    %c0_i32_0 = arith.constant 0 : i32
    %c0_i32_1 = arith.constant 0 : i32
    return %c0_i32, %c0_i32_0 : i32, i32
  }
  func.func @transform_13(%arg0: i32) -> (i32, i32, i32) {
    %c0_i32 = arith.constant 0 : i32
    %c0_i32_0 = arith.constant 0 : i32
    %c0_i32_1 = arith.constant 0 : i32
    return %arg0, %c0_i32, %c0_i32_0 : i32, i32, i32
  }
}

</mosaic_0001>

<bundles_post_ra>
// kernel: tpu_custom_call.1
= control target key start
LH: loop header
LB: loop body
LE: loop exit
PB: predicated region body
PF: predicated region fallthrough
CT: control target
= control target key end

     0   :  { %s2464_s0 = inlined_call_operand.vmem [shape: f32[2,8,32], index: 0, kind: input, shape index: {}]   ;;  %s2465_s1 = inlined_call_operand.vmem [shape: f32[1,32], index: 1, kind: input, shape index: {}]   ;;  %s2466_s2 = inlined_call_operand.vmem [shape: f32[1,32], index: 2, kind: input, shape index: {}]   ;;  %s2467_s3 = inlined_call_operand.vmem [shape: bf16[32,96], index: 3, kind: input, shape index: {}]   ;;  %s2468_s4 = inlined_call_operand.vmem [shape: f32[1,96], index: 4, kind: input, shape index: {}]   ;;  %s2469_s5 = inlined_call_operand.vmem [shape: bf16[4,8,32], index: 5, kind: input, shape index: {}]   ;;  %s2470_s6 = inlined_call_operand.vmem [shape: f32[1,32], index: 6, kind: input, shape index: {}]   ;;  %s2471_s7 = inlined_call_operand.vmem [shape: f32[1,32], index: 7, kind: input, shape index: {}]   ;;  %s2472_s8 = inlined_call_operand.vmem [shape: f32[1,32], index: 8, kind: input, shape index: {}]   ;;  %s2473_s9 = inlined_call_operand.vmem [shape: bf16[32,128], index: 9, kind: input, shape index: {}]   ;;  %s2474_s10 = inlined_call_operand.vmem [shape: f32[1,128], index: 10, kind: input, shape index: {}]   ;;  %s2475_s11 = inlined_call_operand.vmem [shape: bf16[128,32], index: 11, kind: input, shape index: {}]   ;;  %s2476_s12 = inlined_call_operand.vmem [shape: f32[1,32], index: 12, kind: input, shape index: {}]   ;;  %s2477_s13 = inlined_call_operand.hbm [shape: f32[2,8,32], index: 13, kind: output, shape index: {}]  }
   0x1   :  { %2478 = sst [smem:[#allocation11_spill]] %s2464_s0 }
   0x2   :  { %2479 = sst [smem:[#allocation12_spill]] %s2465_s1 }
   0x3   :  { %2480 = sst [smem:[#allocation13_spill]] %s2466_s2 }
   0x4   :  { %2481 = sst [smem:[#allocation14_spill]] %s2467_s3 }
   0x5   :  { %18 = vsyncpa [#allocation9], 0 }
   0x6   :  { %20 = vsyncpa [#allocation9 + $0x1], 0  ;;  %s1998_s25 = smov 0   ;;  %s2000_s26 = smov 0  }
   0x7   :  { %s2002_s27 = smov 0   ;;  %s2004_s28 = smov 0  }
   0x8 LB: > { %s2019_s29 = sadd.s32 4294967295, %s1915_s28   ;;  %s1651_s30 = sadd.s32 4294967294, %s1915_s28   ;;  %s1915_s28 = sphi %s2004_s28, %s2491_s28   ;;  %s1911_s27 = sphi %s2002_s27, %s2490_s27   ;;  %s1907_s26 = sphi %s2000_s26, %s2489_s26   ;;  %s1903_s25 = sphi %s1998_s25, %s2488_s25  }
   0x9   : > { %s2023_s14 = sadd.s32 1, %s1915_s28   ;;  %s311_s15 = sadd.s32 1, %s1911_s27 }
   0xa   : > { %s308_s16 = ssub.s32 %s1915_s28, %s2023_s14  ;;  %p321_p0 = scmp.ne.s32.totalorder %s1911_s27, %s1907_s26 }
   0xb   : > { %p309_p1 = scmp.eq.s32.totalorder %s308_s16, 0  ;;  %p322_p2 = scmp.eq.s32.totalorder %s2019_s29, 1 }
   0xc   : > { %p327_p3 = scmp.ne.s32.totalorder %s1907_s26, %s1903_s25  ;;  %p328_p4 = scmp.eq.s32.totalorder %s1651_s30, 1 }
   0xd   : > { %s2034_s17 = scalar_select %p309_p1, %s1911_s27, %s311_s15  }
   0xe   : > { %p2036_p5 = por %p322_p2, %p321_p0  ;;  %p2040_p6 = por %p328_p4, %p327_p3 }
   0xf   : > { %p1654_p7 = scmp.ge.s32.totalorder %s1915_s28, 1  ;;  %p389_p8 = scmp.lt.s32.totalorder %s1915_s28, 3 }
  0x11   : > { %p390_p9 = pnand %p1654_p7, %p389_p8 }
  0x12   : > { %p432_p10 = scmp.lt.s32.totalorder (!%p390_p9), %s2019_s29, 1  ;;  %s2484_s0 = sld [smem:[#allocation11_spill]] (!%p390_p9) }
  0x13   : > { %393 = sbr.rel (%p390_p9) target bundleno = 2096 (0x830), region = 72  ;;  %s2485_s3 = sld [smem:[#allocation14_spill]] (!%p390_p9) }
  0x14   : > { %s2486_s1 = sld [smem:[#allocation12_spill]] (!%p390_p9)  ;;  %s1920_s22 = smov (!%p390_p9), 104  }
  0x15   : > { %s2487_s2 = sld [smem:[#allocation13_spill]] (!%p390_p9)  ;;  %s1922_s23 = smov (!%p390_p9), 96  }
  0x16   : > { %s1925_s30 = smov (!%p390_p9), 64  }
  0x18   : > { %s433_s20 = scalar_select %p432_p10, %s2019_s29, 1  ;;  %vm440_vm0 = vcmask 261120   ;;  %v1917_v2 = vmov 32.0   ;;  %v1814_v32 = vld [vmem:[%s2468_s4] ss:$0 sm:$0xff]  ;;  %vm526_vm5 = vcmask 1047556  }
  0x19   : > { %1820 = vrcp.f32 %v1917_v2  ;;  %v1728_v14 = vld [vmem:[%s2485_s3 + $0x8] sm:$0xff]  ;;  %v1727_v15 = vld [vmem:[%s2485_s3] sm:$0xff]  ;;  %v1921_v36 = vmov 1983009808   ;;  %v1923_v46 = vmov 1934713408  }
  0x1a   : > { %s1656_s21 = sshll.u32 %s433_s20, 3  ;;  %508 = vmatpush.bf16.msra.mxu0 %v1728_v14  ;;  %v1812_v25 = vld [vmem:[%s2486_s1] ss:$0 sm:$0xff]  ;;  %s1918_s20 = smov 120   ;;  %v531_v37 = vunpack.c.l.s4 %v1921_v36  ;;  %v555_v47 = vunpack.c.l.s4 %v1923_v46  ;;  %vm640_vm6 = vcmask 60416   ;;  %vm918_vm7 = vcmask 64512  }
  0x1b   : > { %s2051_s24 = scalar_lea.vmem %s2484_s0, %s1656_s21  ;;  %v1813_v28 = vld [vmem:[%s2487_s2] ss:$0 sm:$0xff]  ;;  %s1919_s21 = smov 112   ;;  %vm909_vm9 = vcmask 7168   ;;  %vm1148_vm10 = vcmask 1043456  }
  0x1c   : > { %v437_v0 = vld [vmem:[%s2051_s24] sm:$0xff]  ;;  %v2087_v42 = vunpack.c.0.s8 %v531_v37  ;;  %v2100_v52 = vunpack.c.0.s8 %v555_v47 }
  0x1d   : > { %v441_v1 = vsel %vm440_vm0, %v437_v0, 0.0 }
  0x1e   : > { %442 = vadd.xlane.f32.xlu0 %v441_v1  ;;  %509 = vmatpush.bf16.msra.mxu0 %v1727_v15 }
  0x1f   : > { %v1821_v3 = vpop.eup %1820 }
  0x20   : > { %v445_v4 = vmul.f32 32.0, %v1821_v3  ;;  %vm449_vm1 = vweird.f32 %v1821_v3 }
  0x22   : > { %v446_v5 = vsub.f32 1.0, %v445_v4 }
  0x24   : > { %v447_v6 = vmul.f32 %v1821_v3, %v446_v5 }
  0x26   : > { %v448_v7 = vadd.f32 %v1821_v3, %v447_v6 }
  0x28   : > { %v2055_v8 = vsel %vm449_vm1, %v1821_v3, %v448_v7 }
  0x91   : > { %v443_v9 = vpop.xlane.xlu0 %442 }
  0x92   : > { %v451_v10 = vmul.f32 %v2055_v8, %v443_v9 }
  0x94   : > { %v452_v11 = vsub.f32 %v437_v0, %v451_v10 }
  0x96   : > { %v453_v12 = vmul.f32 %v452_v11, %v452_v11 }
  0x98   : > { %v454_v13 = vsel %vm440_vm0, %v453_v12, 0.0 }
  0x99   : > { %455 = vadd.xlane.f32.xlu0 %v454_v13 }
 0x10c   : > { %v456_v16 = vpop.xlane.xlu0 %455 }
 0x10d   : > { %v457_v17 = vmul.f32 %v456_v16, %v2055_v8 }
 0x10f   : > { %v458_v18 = vadd.f32 1e-05, %v457_v17 }
 0x111   : > { %1822 = vrsqrt.f32 %v458_v18  ;;  %vm465_vm3 = vweird.f32 %v458_v18 }
 0x117   : > { %v1823_v19 = vpop.eup %1822 }
 0x118   : > { %v460_v20 = vmul.f32 %v1823_v19, %v458_v18  ;;  %vm466_vm2 = vweird.f32 %v1823_v19 }
 0x119   : > { %vm467_vm4 = vmor %vm465_vm3, %vm466_vm2 }
 0x11a   : > { %v461_v21 = vmul.f32 %v1823_v19, %v460_v20 }
 0x11c   : > { %v462_v22 = vmul.f32 0.5, %v461_v21 }
 0x11e   : > { %v463_v23 = vsub.f32 1.5, %v462_v22 }
 0x120   : > { %v464_v24 = vmul.f32 %v1823_v19, %v463_v23 }
 0x122   : > { %v468_v26 = vsel %vm467_vm4, %v1823_v19, %v464_v24 }
 0x123   : > { %v469_v27 = vmul.f32 %v468_v26, %v452_v11 }
 0x125   : > { %v473_v29 = vmul.f32 %v1812_v25, %v469_v27 }
 0x127   : > { %v477_v30 = vadd.f32 %v1813_v28, %v473_v29 }
 0x129   : > { %v478_v31 = vpack.c.bf16 %v477_v30, %v477_v30 }
 0x12b   : > { %1665 = vmatmul.msk.bf16.vlgmr.msra.gmra.mxu0 %vm440_vm0, %v478_v31 }
 0x1a8   : > { %v511_v33 = vpop.f32.mrf.mxu0 }
 0x1a9   : > { %v2076_v34 = vadd.f32 %v1814_v32, %v511_v33 }
 0x1ab   : > { %516 = vrot.lane.b32.xlu2 %v2076_v34, %s1918_s20  ;;  %519 = vrot.lane.b32.xlu1 %v2076_v34, %s1919_s21  ;;  %v528_v40 = vrot.slane %v2076_v34, 4 }
 0x1b0   : > { %v513_v35 = vpop.f32.mrf.mxu0 }
 0x1b3   : > { %522 = vrot.lane.b32.xlu1 %v2076_v34, %s1920_s22 }
 0x205   : > { %v2091_v44 = vpop.permute.xlu2 %516 }
 0x206   : > { %v540_v49 = vrot.slane %v2091_v44, 4 }
 0x21d   : > { %v2081_v38 = vpop.permute.xlu1 %519 }
 0x21e   : > { %v525_v39 = vrot.slane %v2081_v38, 4  ;;  %v1789_v41 = vpack.i.bf16 %v2076_v34, %v2081_v38  ;;  %v529_v43 = vsel %vm526_vm5, %v2081_v38, %v528_v40 }
 0x21f   : > { %v537_v48 = vperm.slane %v529_v43, %v2087_v42 }
 0x220   : > { %1790 = vrot.lane.b32.xlu2 %v1789_v41, %s1922_s23  ;;  %v527_v45 = vsel %vm526_vm5, %v525_v39, %v2076_v34 }
 0x221   : > { %v533_v50 = vperm.slane %v527_v45, %v2087_v42  ;;  %v564_v56 = vrot.slane %v537_v48, 4 }
 0x223   : > { %v552_v59 = vrot.slane %v533_v50, 4 }
 0x225   : > { %v2098_v51 = vpop.permute.xlu1 %522 }
 0x226   : > { %v538_v53 = vrot.slane %v2098_v51, 4  ;;  %v541_v54 = vsel %vm526_vm5, %v2098_v51, %v540_v49  ;;  %v1794_v55 = vpack.i.bf16 %v2091_v44, %v2098_v51 }
 0x227   : > { %v549_v57 = vperm.slane %v541_v54, %v2087_v42 }
 0x228   : > { %v539_v58 = vsel %vm526_vm5, %v538_v53, %v2091_v44  ;;  %1795 = vrot.lane.b32.xlu0 %v1794_v55, %s1922_s23 }
 0x229   : > { %v545_v60 = vperm.slane %v539_v58, %v2087_v42  ;;  %v562_v61 = vrot.slane %v549_v57, 4  ;;  %v565_v62 = vsel %vm526_vm5, %v549_v57, %v564_v56 }
 0x22a   : > { %v573_v63 = vperm.slane %v565_v62, %v2100_v52 }
 0x22b   : > { %v550_v0 = vrot.slane %v545_v60, 4  ;;  %v553_v1 = vsel %vm526_vm5, %v545_v60, %v552_v59  ;;  %v563_v2 = vsel %vm526_vm5, %v562_v61, %v537_v48 }
 0x22c   : > { %v561_v3 = vperm.slane %v553_v1, %v2100_v52  ;;  %v569_v4 = vperm.slane %v563_v2, %v2100_v52  ;;  %v580_v5 = vrot.slane %v573_v63, 4 }
 0x22d   : > { %v551_v6 = vsel %vm526_vm5, %v550_v0, %v533_v50 }
 0x22e   : > { %v557_v7 = vperm.slane %v551_v6, %v2100_v52  ;;  %v576_v9 = vrot.slane %v561_v3, 4  ;;  %v578_v10 = vrot.slane %v569_v4, 4  ;;  %v581_v11 = vsel %vm526_vm5, 0.0, %v580_v5 }
 0x22f   : > { %v593_v12 = vsel %vm526_vm5, %v580_v5, %v569_v4  ;;  %v598_v13 = vrot.slane %v581_v11, 4 }
 0x230   : > { %v574_v14 = vrot.slane %v557_v7, 4  ;;  %v577_v15 = vsel %vm526_vm5, 0.0, %v576_v9  ;;  %v579_v16 = vsel %vm526_vm5, 0.0, %v578_v10  ;;  %v582_v17 = vsel %vm526_vm5, %v576_v9, %v557_v7 }
 0x231   : > { %v586_v18 = vperm.slane %v582_v17, %v2087_v42  ;;  %v587_v19 = vrot.slane %v577_v15, 4  ;;  %v597_v20 = vperm.slane %v593_v12, %v2087_v42  ;;  %v599_v21 = vsel %vm526_vm5, %v598_v13, %v579_v16 }
 0x232   : > { %v575_v22 = vsel %vm526_vm5, 0.0, %v574_v14  ;;  %v603_v23 = vperm.slane %v599_v21, %v2087_v42 }
 0x233   : > { %v588_v24 = vsel %vm526_vm5, %v587_v19, %v575_v22  ;;  %v606_v25 = vrot.slane %v586_v18, 4  ;;  %v618_v26 = vrot.slane %v597_v20, 4 }
 0x234   : > { %v592_v27 = vperm.slane %v588_v24, %v2087_v42  ;;  %v616_v28 = vrot.slane %v603_v23, 4 }
 0x235   : > { %v619_v29 = vsel %vm526_vm5, %v603_v23, %v618_v26 }
 0x236   : > { %v604_v30 = vrot.slane %v592_v27, 4  ;;  %v607_v31 = vsel %vm526_vm5, %v592_v27, %v606_v25  ;;  %v617_v32 = vsel %vm526_vm5, %v616_v28, %v597_v20  ;;  %v627_v33 = vperm.slane %v619_v29, %v2100_v52 }
 0x237   : > { %v615_v35 = vperm.slane %v607_v31, %v2100_v52  ;;  %v623_v36 = vperm.slane %v617_v32, %v2100_v52 }
 0x238   : > { %v605_v37 = vsel %vm526_vm5, %v604_v30, %v586_v18  ;;  %v632_v39 = vrot.slane %v627_v33, 4 }
 0x239   : > { %v611_v40 = vperm.slane %v605_v37, %v2100_v52  ;;  %v628_v41 = vrot.slane %v623_v36, 4  ;;  %v634_v43 = vrot.slane %v615_v35, 4 }
 0x23a   : > { %v633_v45 = vsel %vm526_vm5, %v632_v39, %v615_v35 }
 0x23b   : > { %v629_v46 = vsel %vm526_vm5, %v628_v41, %v611_v40  ;;  %v630_v47 = vrot.slane %v611_v40, 4  ;;  %v635_v48 = vsel %vm526_vm5, %v627_v33, %v634_v43  ;;  %v638_v49 = vpack.c.bf16 %v633_v45, %v633_v45 }
 0x23c   : > { %v636_v50 = vpack.c.bf16 %v629_v46, %v629_v46  ;;  %v639_v53 = vpack.c.bf16 %v635_v48, %v635_v48 }
 0x23d   : > { %v631_v54 = vsel %vm526_vm5, %v623_v36, %v630_v47  ;;  %643 = vst.msk [vmem:[#allocation2 + $0x8] sm:$0xf] %vm640_vm6, %v638_v49 }
 0x23e   : > { %v637_v55 = vpack.c.bf16 %v631_v54, %v631_v54  ;;  %641 = vst.msk [vmem:[#allocation2] sm:$0xf] %vm640_vm6, %v636_v50 }
 0x23f   : > { %644 = vst.msk [vmem:[#allocation2 + $0xc] sm:$0xf] %vm640_vm6, %v639_v53 }
 0x240   : > { %642 = vst.msk [vmem:[#allocation2 + $0x4] sm:$0xf] %vm640_vm6, %v637_v55 }
 0x27a   : > { %v1791_v56 = vpop.permute.xlu2 %1790 }
 0x27b   : > { %v1793_v57 = vunpack.i.h.bf16 %v1791_v56  ;;  %v1792_v58 = vunpack.i.l.bf16 %v1791_v56 }
 0x27d   : > { %v659_v59 = vrot.slane %v1793_v57, 4  ;;  %v657_v60 = vrot.slane %v1792_v58, 4 }
 0x27f   : > { %v658_v61 = vsel %vm526_vm5, %v657_v60, %v1793_v57  ;;  %v660_v62 = vsel %vm526_vm5, %v1792_v58, %v659_v59 }
 0x280   : > { %v664_v2 = vperm.slane %v658_v61, %v2087_v42  ;;  %v668_v3 = vperm.slane %v660_v62, %v2087_v42 }
 0x282   : > { %v683_v9 = vrot.slane %v664_v2, 4  ;;  %v695_v10 = vrot.slane %v668_v3, 4 }
 0x29a   : > { %v1796_v63 = vpop.permute.xlu0 %1795 }
 0x29b   : > { %v1798_v0 = vunpack.i.h.bf16 %v1796_v63  ;;  %v1797_v1 = vunpack.i.l.bf16 %v1796_v63 }
 0x29d   : > { %v671_v4 = vrot.slane %v1798_v0, 4  ;;  %v669_v5 = vrot.slane %v1797_v1, 4 }
 0x29f   : > { %v670_v6 = vsel %vm526_vm5, %v669_v5, %v1798_v0  ;;  %v672_v7 = vsel %vm526_vm5, %v1797_v1, %v671_v4 }
 0x2a0   : > { %v676_v11 = vperm.slane %v670_v6, %v2087_v42  ;;  %v680_v12 = vperm.slane %v672_v7, %v2087_v42 }
 0x2a2   : > { %v681_v13 = vrot.slane %v676_v11, 4  ;;  %v684_v14 = vsel %vm526_vm5, %v676_v11, %v683_v9  ;;  %v693_v15 = vrot.slane %v680_v12, 4  ;;  %v696_v16 = vsel %vm526_vm5, %v680_v12, %v695_v10 }
 0x2a3   : > { %v692_v17 = vperm.slane %v684_v14, %v2100_v52  ;;  %v704_v18 = vperm.slane %v696_v16, %v2100_v52  ;;  %v908_v16 = vld [vmem:[#allocation2 + $0xc] sm:$0xf] }
 0x2a4   : > { %v682_v19 = vsel %vm526_vm5, %v681_v13, %v664_v2  ;;  %v694_v20 = vsel %vm526_vm5, %v693_v15, %v668_v3 }
 0x2a5   : > { %v688_v21 = vperm.slane %v682_v19, %v2100_v52  ;;  %v700_v22 = vperm.slane %v694_v20, %v2100_v52  ;;  %v707_v23 = vrot.slane %v692_v17, 4  ;;  %v711_v24 = vrot.slane %v704_v18, 4  ;;  %v905_v17 = vld [vmem:[#allocation2] sm:$0xf]  ;;  %v906_v18 = vld [vmem:[#allocation2 + $0x4] sm:$0xf] }
 0x2a6   : > { %v907_v19 = vld [vmem:[#allocation2 + $0x8] sm:$0xf]  ;;  %v923_v20 = vlaneseq }
 0x2a7   : > { %v705_v25 = vrot.slane %v688_v21, 4  ;;  %v708_v26 = vsel %vm526_vm5, 0.0, %v707_v23  ;;  %v709_v27 = vrot.slane %v700_v22, 4  ;;  %v712_v28 = vsel %vm526_vm5, 0.0, %v711_v24 }
 0x2a8   : > { %v713_v29 = vsel %vm526_vm5, %v707_v23, %v688_v21  ;;  %v718_v30 = vrot.slane %v708_v26, 4  ;;  %v724_v31 = vsel %vm526_vm5, %v711_v24, %v700_v22  ;;  %v729_v32 = vrot.slane %v712_v28, 4 }
 0x2a9   : > { %v706_v33 = vsel %vm526_vm5, 0.0, %v705_v25  ;;  %v710_v35 = vsel %vm526_vm5, 0.0, %v709_v27  ;;  %v717_v36 = vperm.slane %v713_v29, %v2087_v42  ;;  %v728_v37 = vperm.slane %v724_v31, %v2087_v42 }
 0x2aa   : > { %v719_v39 = vsel %vm526_vm5, %v718_v30, %v706_v33  ;;  %v730_v40 = vsel %vm526_vm5, %v729_v32, %v710_v35  ;;  %v924_v21 = vshrl.u32 %v923_v20, 7  ;;  %v1012_v22 = vand.u32 127, %v923_v20 }
 0x2ab   : > { %v723_v41 = vperm.slane %v719_v39, %v2087_v42  ;;  %v734_v43 = vperm.slane %v730_v40, %v2087_v42  ;;  %v737_v45 = vrot.slane %v717_v36, 4  ;;  %v749_v46 = vrot.slane %v728_v37, 4 }
 0x2ac   : > { %vm1014_vm8 = vcmp.le.s32.totalorder %v1012_v22, %v924_v21 }
 0x2ad   : > { %v735_v47 = vrot.slane %v723_v41, 4  ;;  %v738_v48 = vsel %vm526_vm5, %v723_v41, %v737_v45  ;;  %v747_v49 = vrot.slane %v734_v43, 4  ;;  %v750_v50 = vsel %vm526_vm5, %v734_v43, %v749_v46 }
 0x2ae   : > { %v746_v53 = vperm.slane %v738_v48, %v2100_v52  ;;  %v758_v54 = vperm.slane %v750_v50, %v2100_v52  ;;  %v1804_v43 = vpack.i.bf16 %v2098_v51, %v2081_v38  ;;  %v1799_v45 = vpack.i.bf16 %v2091_v44, %v2076_v34 }
 0x2af   : > { %v736_v55 = vsel %vm526_vm5, %v735_v47, %v717_v36  ;;  %v748_v56 = vsel %vm526_vm5, %v747_v49, %v728_v37  ;;  %v1924_v36 = vmov -1e+30   ;;  %v1926_v46 = vmov 0  }
 0x2b0   : > { %v742_v57 = vperm.slane %v736_v55, %v2100_v52  ;;  %v754_v58 = vperm.slane %v748_v56, %v2100_v52  ;;  %v763_v59 = vrot.slane %v758_v54, 4  ;;  %v765_v60 = vrot.slane %v746_v53, 4  ;;  %910 = vst.msk [vmem:[#allocation5] sm:$0xff] %vm909_vm9, %v1924_v36  ;;  %1810 = vset.pattern.permute.xlu1 %v1926_v46  ;;  %1811 = vset.pattern.permute.xlu2 %v1926_v46 }
 0x2b1   : > { %911 = vst.msk [vmem:[#allocation5 + $0x8] sm:$0xff] %vm909_vm9, %v1924_v36  ;;  %1809 = vset.pattern.permute.xlu0 %v1926_v46  ;;  %v1927_v47 = vmov 0.0  }
 0x2b2   : > { %v759_v61 = vrot.slane %v754_v58, 4  ;;  %v761_v62 = vrot.slane %v742_v57, 4  ;;  %v764_v63 = vsel %vm526_vm5, %v763_v59, %v746_v53  ;;  %v766_v0 = vsel %vm526_vm5, %v758_v54, %v765_v60  ;;  %912 = vst.msk [vmem:[#allocation5 + $0x10] sm:$0xff] %vm909_vm9, %v1924_v36 }
 0x2b3   : > { %v769_v1 = vpack.c.bf16 %v764_v63, %v764_v63  ;;  %v770_v2 = vpack.c.bf16 %v766_v0, %v766_v0  ;;  %913 = vst.msk [vmem:[#allocation5 + $0x18] sm:$0xff] %vm909_vm9, %v1924_v36 }
 0x2b4   : > { %v760_v3 = vsel %vm526_vm5, %v759_v61, %v742_v57  ;;  %v762_v4 = vsel %vm526_vm5, %v754_v58, %v761_v62  ;;  %915 = vst.msk [vmem:[#allocation6 + $0x8] sm:$0xff] %vm909_vm9, %v1927_v47 }
 0x2b5   : > { %v767_v5 = vpack.c.bf16 %v760_v3, %v760_v3  ;;  %v768_v6 = vpack.c.bf16 %v762_v4, %v762_v4  ;;  %773 = vst.msk [vmem:[#allocation3 + $0x8] sm:$0xf] %vm640_vm6, %v769_v1 }
 0x2b6   : > { %774 = vst.msk [vmem:[#allocation3 + $0xc] sm:$0xf] %vm640_vm6, %v770_v2 }
 0x2b7   : > { %771 = vst.msk [vmem:[#allocation3] sm:$0xf] %vm640_vm6, %v767_v5  ;;  %v2235_v34 = vld [vmem:[#allocation5] sm:$0xff] }
 0x2b8   : > { %772 = vst.msk [vmem:[#allocation3 + $0x4] sm:$0xf] %vm640_vm6, %v768_v6  ;;  %v2245_v48 = vld [vmem:[#allocation5 + $0x8] sm:$0xff] }
 0x2b9   : > { %914 = vst.msk [vmem:[#allocation6] sm:$0xff] %vm909_vm9, %v1927_v47  ;;  %v2265_v58 = vld [vmem:[#allocation5 + $0x10] sm:$0xff] }
 0x2ba   : > { %916 = vst.msk [vmem:[#allocation6 + $0x10] sm:$0xff] %vm909_vm9, %v1927_v47  ;;  %v2247_v49 = vld [vmem:[#allocation5 + $0x18] sm:$0xff] }
 0x2bb   : > { %917 = vst.msk [vmem:[#allocation6 + $0x18] sm:$0xff] %vm909_vm9, %v1927_v47 }
 0x2bc   : > { %v929_v11 = vld [vmem:[#allocation3 + $0x8] sm:$0xf]  ;;  %919 = vst.msk [vmem:[#allocation7] sm:$0xff] %vm918_vm7, %v1927_v47 }
 0x2bd   : > { %v930_v7 = vld [vmem:[#allocation3 + $0xc] sm:$0xf]  ;;  %v977_v15 = vsel %vm918_vm7, %v929_v11, 0  ;;  %920 = vst.msk [vmem:[#allocation7 + $0x8] sm:$0xff] %vm918_vm7, %v1927_v47 }
 0x2be   : > { %v996_v9 = vsel %vm918_vm7, %v930_v7, 0  ;;  %v927_v10 = vld [vmem:[#allocation3] sm:$0xf]  ;;  %921 = vst.msk [vmem:[#allocation7 + $0x10] sm:$0xff] %vm918_vm7, %v1927_v47 }
 0x2bf   : > { %1005 = vmatpush.bf16.xpose.msrb.mxu0 %v996_v9  ;;  %v939_v12 = vsel %vm918_vm7, %v927_v10, 0  ;;  %v928_v13 = vld [vmem:[#allocation3 + $0x4] sm:$0xf]  ;;  %922 = vst.msk [vmem:[#allocation7 + $0x18] sm:$0xff] %vm918_vm7, %v1927_v47 }
 0x2c0   : > { %948 = vmatpush.bf16.xpose.msra.mxu1 %v939_v12  ;;  %v958_v14 = vsel %vm918_vm7, %v928_v13, 0 }
 0x2c1   : > { %967 = vmatpush.bf16.xpose.msra.mxu3 %v958_v14 }
 0x2c6   : > { %1669 = vmatmul.msk.bf16.vlgmr.msrb.gmra.mxu0 %vm918_vm7, %v908_v16 }
 0x2c7   : > { %1666 = vmatmul.msk.bf16.vlgmr.msra.gmra.mxu1 %vm918_vm7, %v905_v17 }
 0x2c8   : > { %1667 = vmatmul.msk.bf16.vlgmr.msra.gmra.mxu3 %vm918_vm7, %v906_v18 }
 0x2c9   : > { %986 = vmatpush.bf16.xpose.msrb.mxu3 %v977_v15 }
 0x2d8   : > { %1668 = vmatmul.msk.bf16.vlgmr.msrb.gmra.mxu3 %vm918_vm7, %v907_v19 }
 0x343   : > { %v1007_v23 = vpop.f32.mrf.mxu0 }
 0x344   : > { %v950_v24 = vpop.f32.mrf.mxu1  ;;  %v2205_v27 = vsel %vm1014_vm8, %v1007_v23, -1e+30 }
 0x345   : > { %v2200_v25 = vsel %vm1014_vm8, %v950_v24, -1e+30  ;;  %v1034_v33 = vsel %vm918_vm7, %v2205_v27, -inf }
 0x346   : > { %v1025_v26 = vsel %vm918_vm7, %v2200_v25, -inf }
 0x347   : > { %1026 = vmax.xlane.f32.xlu2 %v1025_v26 }
 0x34b   : > { %v969_v28 = vpop.f32.mrf.mxu3  ;;  %v1009_v29 = vpop.f32.mrf.mxu0 }
 0x34c   : > { %v2208_v30 = vsel %vm1014_vm8, %v969_v28, -1e+30  ;;  %v952_v31 = vpop.f32.mrf.mxu1 }
 0x34d   : > { %v1028_v32 = vsel %vm918_vm7, %v2208_v30, -inf }
 0x34e   : > { %1029 = vmax.xlane.f32.xlu0 %v1028_v32 }
 0x34f   : > { %1035 = vmax.xlane.f32.xlu2 %v1034_v33 }
 0x353   : > { %v971_v35 = vpop.f32.mrf.mxu3 }
 0x35b   : > { %v988_v37 = vpop.f32.mrf.mxu3 }
 0x35c   : > { %v2219_v39 = vsel %vm1014_vm8, %v988_v37, -1e+30 }
 0x35d   : > { %v1031_v40 = vsel %vm918_vm7, %v2219_v39, -inf }
 0x35e   : > { %1032 = vmax.xlane.f32.xlu1 %v1031_v40 }
 0x363   : > { %v990_v41 = vpop.f32.mrf.mxu3 }
 0x367   : > { %1805 = vrot.lane.b32.xlu2 %v1804_v43, %s1925_s30 }
 0x377   : > { %1800 = vrot.lane.b32.xlu1 %v1799_v45, %s1925_s30  ;;  %s1724_s30 = sshll.u32 %s2019_s29, 3 }
 0x378   : > { %s1587_s20 = scalar_lea.hbm %s2477_s13, %s1724_s30 }
 0x379   : > { %s1591_s2 = sshll.u32 %s1587_s20, 4  ;;  %s1592_s2 = int_to_ptr.hbm [resolvable:$true] %s1591_s2 }
 0x37a   : > { %s1867_s3 = sshra.s32 %s1592_s2, 4  ;;  %s1868_s3 = int_to_ptr.hbm [resolvable:$true] %s1867_s3 }
 0x37b   : > { %s1869_s30 = scalar_lea.hbm %s1868_s3, 8  ;;  %p1874_p0 = scmp.lt.s32.totalorder %s1868_s3, %s2477_s13 }
 0x37c   : > { %p1870_p11 = scmp.ne.s32.totalorder %s1868_s3, %s1869_s30 }
 0x37e   : > { %p1871_p12 = pnand %p1870_p11, %p2036_p5 }
 0x380   : > { %p1872_p13 = pneg %p1871_p12 }
 0x3ba   : > { %v1027_v38 = vpop.xlane.xlu2 %1026 }
 0x3bb   : > { %v2238_v44 = vmax.f32 %v2235_v34, %v1027_v38 }
 0x3bd   : > { %v1041_v51 = vsub.f32 %v2235_v34, %v2238_v44  ;;  %1230 = vst.msk [vmem:[#allocation5] sm:$0xff] %vm909_vm9, %v2238_v44  ;;  %1055 = vperm.xlu1 %1810, %v2238_v44  }
 0x3c1   : > { %v1030_v50 = vpop.xlane.xlu0 %1029 }
 0x3c2   : > { %v2250_v53 = vmax.f32 %v2245_v48, %v1030_v50  ;;  %v1036_v54 = vpop.xlane.xlu2 %1035 }
 0x3c3   : > { %v2253_v55 = vmax.f32 %v2247_v49, %v1036_v54 }
 0x3c4   : > { %v1042_v56 = vsub.f32 %v2245_v48, %v2250_v53  ;;  %1231 = vst.msk [vmem:[#allocation5 + $0x8] sm:$0xff] %vm909_vm9, %v2250_v53  ;;  %1060 = vperm.xlu2 %1811, %v2250_v53  }
 0x3c5   : > { %v1044_v57 = vsub.f32 %v2247_v49, %v2253_v55  ;;  %1233 = vst.msk [vmem:[#allocation5 + $0x18] sm:$0xff] %vm909_vm9, %v2253_v55  ;;  %1070 = vperm.xlu1 %1810, %v2253_v55   ;;  %v1088_v55 = vld [vmem:[#allocation6 + $0x18] sm:$0xff] }
 0x3ca   : > { %v1806_v62 = vpop.permute.xlu2 %1805 }
 0x3cb   : > { %v1808_v63 = vunpack.i.h.bf16 %v1806_v62  ;;  %v1807_v0 = vunpack.i.l.bf16 %v1806_v62 }
 0x3cd   : > { %v799_v2 = vrot.slane %v1808_v63, 4  ;;  %v787_v3 = vrot.slane %v1807_v0, 4 }
 0x3d1   : > { %v1033_v59 = vpop.xlane.xlu1 %1032 }
 0x3d2   : > { %v2268_v60 = vmax.f32 %v2265_v58, %v1033_v59 }
 0x3d4   : > { %v1043_v61 = vsub.f32 %v2265_v58, %v2268_v60  ;;  %1232 = vst.msk [vmem:[#allocation5 + $0x10] sm:$0xff] %vm909_vm9, %v2268_v60  ;;  %1065 = vperm.xlu0 %1809, %v2268_v60  }
 0x3e9   : > { %v1801_v1 = vpop.permute.xlu1 %1800 }
 0x3ea   : > { %v1803_v4 = vunpack.i.h.bf16 %v1801_v1  ;;  %v1802_v5 = vunpack.i.l.bf16 %v1801_v1 }
 0x3ec   : > { %v801_v6 = vrot.slane %v1803_v4, 4  ;;  %v788_v7 = vsel %vm526_vm5, %v787_v3, %v1802_v5  ;;  %v789_v9 = vrot.slane %v1802_v5, 4  ;;  %v800_v10 = vsel %vm526_vm5, %v799_v2, %v1803_v4 }
 0x3ed   : > { %v794_v11 = vperm.slane %v788_v7, %v2087_v42  ;;  %v806_v12 = vperm.slane %v800_v10, %v2087_v42 }
 0x3ee   : > { %v790_v13 = vsel %vm526_vm5, %v1807_v0, %v789_v9  ;;  %v802_v14 = vsel %vm526_vm5, %v1808_v63, %v801_v6 }
 0x3ef   : > { %v798_v15 = vperm.slane %v790_v13, %v2087_v42  ;;  %v810_v16 = vperm.slane %v802_v14, %v2087_v42  ;;  %v811_v17 = vrot.slane %v806_v12, 4  ;;  %v813_v18 = vrot.slane %v794_v11, 4 }
 0x3f1   : > { %v812_v19 = vsel %vm526_vm5, %v811_v17, %v794_v11  ;;  %v814_v20 = vsel %vm526_vm5, %v806_v12, %v813_v18  ;;  %v823_v21 = vrot.slane %v810_v16, 4  ;;  %v825_v22 = vrot.slane %v798_v15, 4 }
 0x3f2   : > { %v818_v23 = vperm.slane %v812_v19, %v2100_v52  ;;  %v822_v24 = vperm.slane %v814_v20, %v2100_v52 }
 0x3f3   : > { %v824_v26 = vsel %vm526_vm5, %v823_v21, %v798_v15  ;;  %v826_v28 = vsel %vm526_vm5, %v810_v16, %v825_v22 }
 0x3f4   : > { %v830_v29 = vperm.slane %v824_v26, %v2100_v52  ;;  %v834_v31 = vperm.slane %v826_v28, %v2100_v52  ;;  %v835_v32 = vrot.slane %v818_v23, 4  ;;  %v837_v33 = vrot.slane %v822_v24, 4 }
 0x3f6   : > { %v838_v35 = vsel %vm526_vm5, 0.0, %v837_v33  ;;  %v839_v36 = vrot.slane %v830_v29, 4  ;;  %v841_v37 = vrot.slane %v834_v31, 4  ;;  %v843_v40 = vsel %vm526_vm5, %v837_v33, %v818_v23 }
 0x3f7   : > { %v848_v41 = vrot.slane %v838_v35, 4  ;;  %v836_v43 = vsel %vm526_vm5, 0.0, %v835_v32  ;;  %v847_v46 = vperm.slane %v843_v40, %v2087_v42 }
 0x3f8   : > { %v842_v45 = vsel %vm526_vm5, 0.0, %v841_v37  ;;  %v854_v47 = vsel %vm526_vm5, %v841_v37, %v830_v29  ;;  %v840_v59 = vsel %vm526_vm5, 0.0, %v839_v36 }
 0x3f9   : > { %v849_v38 = vsel %vm526_vm5, %v848_v41, %v836_v43  ;;  %v858_v50 = vperm.slane %v854_v47, %v2087_v42  ;;  %v859_v54 = vrot.slane %v842_v45, 4  ;;  %v867_v63 = vrot.slane %v847_v46, 4 }
 0x3fa   : > { %v853_v62 = vperm.slane %v849_v38, %v2087_v42 }
 0x3fb   : > { %v860_v0 = vsel %vm526_vm5, %v859_v54, %v840_v59  ;;  %v879_v1 = vrot.slane %v858_v50, 4 }
 0x3fc   : > { %v864_v2 = vperm.slane %v860_v0, %v2087_v42  ;;  %v865_v3 = vrot.slane %v853_v62, 4  ;;  %v868_v4 = vsel %vm526_vm5, %v853_v62, %v867_v63 }
 0x3fd   : > { %v876_v5 = vperm.slane %v868_v4, %v2100_v52  ;;  %v1049_v4 = vmul.f32 1.442695, %v1043_v61  ;;  %v1086_v61 = vld [vmem:[#allocation6 + $0x8] sm:$0xff] }
 0x3fe   : > { %v866_v6 = vsel %vm526_vm5, %v865_v3, %v847_v46  ;;  %v877_v7 = vrot.slane %v864_v2, 4  ;;  %v880_v9 = vsel %vm526_vm5, %v864_v2, %v879_v1 }
 0x3ff   : > { %v872_v10 = vperm.slane %v866_v6, %v2100_v52  ;;  %v888_v11 = vperm.slane %v880_v9, %v2100_v52  ;;  %v895_v12 = vrot.slane %v876_v5, 4  ;;  %v1051_v9 = vmul.f32 1.442695, %v1044_v57 }
 0x400   : > { %v878_v13 = vsel %vm526_vm5, %v877_v7, %v858_v50  ;;  %v1047_v50 = vmul.f32 1.442695, %v1042_v56 }
 0x401   : > { %v884_v14 = vperm.slane %v878_v13, %v2100_v52  ;;  %v891_v42 = vrot.slane %v872_v10, 4  ;;  %v893_v15 = vrot.slane %v888_v11, 4  ;;  %v896_v16 = vsel %vm526_vm5, %v888_v11, %v895_v12  ;;  %v1085_v13 = vld [vmem:[#allocation6] sm:$0xff] }
 0x402   : > { %v900_v17 = vpack.c.bf16 %v896_v16, %v896_v16 }
 0x403   : > { %v889_v18 = vrot.slane %v884_v14, 4  ;;  %v892_v19 = vsel %vm526_vm5, %v884_v14, %v891_v42  ;;  %v894_v20 = vsel %vm526_vm5, %v893_v15, %v876_v5 }
 0x404   : > { %v898_v21 = vpack.c.bf16 %v892_v19, %v892_v19  ;;  %v899_v22 = vpack.c.bf16 %v894_v20, %v894_v20  ;;  %904 = vst.msk [vmem:[#allocation4 + $0xc] sm:$0xf] %vm640_vm6, %v900_v17 }
 0x405   : > { %v890_v23 = vsel %vm526_vm5, %v889_v18, %v872_v10 }
 0x406   : > { %v897_v24 = vpack.c.bf16 %v890_v23, %v890_v23  ;;  %902 = vst.msk [vmem:[#allocation4 + $0x4] sm:$0xf] %vm640_vm6, %v898_v21 }
 0x407   : > { %903 = vst.msk [vmem:[#allocation4 + $0x8] sm:$0xf] %vm640_vm6, %v899_v22 }
 0x408   : > { %901 = vst.msk [vmem:[#allocation4] sm:$0xf] %vm640_vm6, %v897_v24 }
 0x40b   : > { %v934_v52 = vld [vmem:[#allocation4 + $0xc] sm:$0xf] }
 0x40c   : > { %v1207_v26 = vsel %vm1148_vm10, %v934_v52, 0 }
 0x40d   : > { %1216 = vmatpush.bf16.msra.mxu0 %v1207_v26  ;;  %v932_v28 = vld [vmem:[#allocation4 + $0x4] sm:$0xf] }
 0x40e   : > { %v1169_v29 = vsel %vm1148_vm10, %v932_v28, 0  ;;  %v933_v31 = vld [vmem:[#allocation4 + $0x8] sm:$0xf] }
 0x40f   : > { %1178 = vmatpush.bf16.msra.mxu2 %v1169_v29  ;;  %v1188_v32 = vsel %vm1148_vm10, %v933_v31, 0  ;;  %v931_v33 = vld [vmem:[#allocation4] sm:$0xf] }
 0x410   : > { %1197 = vmatpush.bf16.msra.mxu3 %v1188_v32  ;;  %v1150_v35 = vsel %vm1148_vm10, %v931_v33, 0  ;;  %v1087_v31 = vld [vmem:[#allocation6 + $0x10] sm:$0xff] }
 0x411   : > { %1159 = vmatpush.bf16.msrb.mxu1 %v1150_v35 }
 0x41e   : > { %v1061_v36 = vpop.permute.xlu2 %1060 }
 0x41f   : > { %v1074_v37 = vsub.f32 %v2208_v30, %v1061_v36 }
 0x421   : > { %v1079_v40 = vmul.f32 1.442695, %v1074_v37 }
 0x423   : > { %1824 = vpow2.f32 %v1079_v40 }
 0x429   : > { %v1825_v41 = vpop.eup %1824 }
 0x42a   : > { %v1096_v43 = vsel %vm918_vm7, %v1825_v41, 0.0  ;;  %v1142_v45 = vpack.c.bf16 %v1825_v41, %v1825_v41 }
 0x42b   : > { %1097 = vadd.xlane.f32.xlu0 %v1096_v43 }
 0x42c   : > { %1671 = vmatmul.msk.bf16.vlgmr.msra.gmra.mxu2 %vm918_vm7, %v1142_v45 }
 0x42f   : > { %v1056_v46 = vpop.permute.xlu1 %1055 }
 0x430   : > { %v1073_v47 = vsub.f32 %v2200_v25, %v1056_v46 }
 0x432   : > { %v1077_v38 = vmul.f32 1.442695, %v1073_v47 }
 0x434   : > { %1826 = vpow2.f32 %v1077_v38 }
 0x435   : > { %1828 = vpow2.f32 %v1047_v50 }
 0x437   : > { %v1071_v54 = vpop.permute.xlu1 %1070 }
 0x438   : > { %v1076_v30 = vsub.f32 %v2205_v27, %v1071_v54 }
 0x43a   : > { %v1827_v59 = vpop.eup %1826  ;;  %v1083_v62 = vmul.f32 1.442695, %v1076_v30  ;;  %v1115_v30 = vld [vmem:[#allocation7 + $0x10] sm:$0xff] }
 0x43b   : > { %v1093_v63 = vsel %vm918_vm7, %v1827_v59, 0.0  ;;  %v1141_v0 = vpack.c.bf16 %v1827_v59, %v1827_v59  ;;  %v1829_v25 = vpop.eup %1828 }
 0x43c   : > { %1830 = vpow2.f32 %v1083_v62  ;;  %1094 = vadd.xlane.f32.xlu2 %v1093_v63  ;;  %v1090_v10 = vmul.f32 %v1829_v25, %v1086_v61 }
 0x43d   : > { %1670 = vmatmul.msk.bf16.vlgmr.msrb.gmra.mxu1 %vm918_vm7, %v1141_v0 }
 0x43f   : > { %1124 = vperm.xlu0 %1809, %v1829_v25  }
 0x442   : > { %v1831_v1 = vpop.eup %1830 }
 0x443   : > { %v1144_v2 = vpack.c.bf16 %v1831_v1, %v1831_v1  ;;  %v1102_v48 = vsel %vm918_vm7, %v1831_v1, 0.0 }
 0x444   : > { %1103 = vadd.xlane.f32.xlu2 %v1102_v48  ;;  %v1113_v48 = vld [vmem:[#allocation7] sm:$0xff] }
 0x445   : > { %1673 = vmatmul.msk.bf16.vlgmr.msra.gmra.mxu0 %vm918_vm7, %v1144_v2 }
 0x446   : > { %v1066_v53 = vpop.permute.xlu0 %1065 }
 0x447   : > { %v1075_v27 = vsub.f32 %v2219_v39, %v1066_v53  ;;  %v1045_v39 = vmul.f32 1.442695, %v1041_v51  ;;  %v1114_v51 = vld [vmem:[#allocation7 + $0x8] sm:$0xff] }
 0x449   : > { %v1081_v56 = vmul.f32 1.442695, %v1075_v27 }
 0x44b   : > { %1832 = vpow2.f32 %v1081_v56 }
 0x44c   : > { %1834 = vpow2.f32 %v1049_v4 }
 0x44d   : > { %1836 = vpow2.f32 %v1045_v39 }
 0x44e   : > { %1838 = vpow2.f32 %v1051_v9  ;;  %v1283_v9 = vld [vmem:[%s2469_s5] sm:$0xf] }
 0x451   : > { %v1833_v3 = vpop.eup %1832 }
 0x452   : > { %v1143_v5 = vpack.c.bf16 %v1833_v3, %v1833_v3  ;;  %v1099_v6 = vsel %vm918_vm7, %v1833_v3, 0.0  ;;  %v1835_v7 = vpop.eup %1834 }
 0x453   : > { %1100 = vadd.xlane.f32.xlu1 %v1099_v6  ;;  %v1837_v58 = vpop.eup %1836  ;;  %v1091_v33 = vmul.f32 %v1835_v7, %v1087_v31 }
 0x454   : > { %1672 = vmatmul.msk.bf16.vlgmr.msra.gmra.mxu3 %vm918_vm7, %v1143_v5  ;;  %v1839_v60 = vpop.eup %1838  ;;  %v1089_v14 = vmul.f32 %v1837_v58, %v1085_v13  ;;  %v1116_v5 = vld [vmem:[#allocation7 + $0x18] sm:$0xff] }
 0x455   : > { %v1092_v16 = vmul.f32 %v1839_v60, %v1088_v55  ;;  %v1679_v13 = vld [vmem:[%s2469_s5 + $0xc] sm:$0xf] }
 0x45c   : > { %1129 = vperm.xlu2 %1811, %v1835_v7  }
 0x46c   : > { %1119 = vperm.xlu1 %1810, %v1837_v58   ;;  %v1310_v58 = vsel %vm1148_vm10, %v1283_v9, 0  ;;  %v1737_v9 = vld [vmem:[%s2475_s11 + $0x30] sm:$0xff] }
 0x46d   : > { %1319 = vmatpush.bf16.msrb.mxu2 %v1310_v58  ;;  %v1818_v58 = vld [vmem:[%s2474_s10] ss:$0 sm:$0xff] }
 0x474   : > { %1134 = vperm.xlu1 %1810, %v1839_v60   ;;  %v1674_v60 = vld [vmem:[%s2469_s5 + $0x4] sm:$0xf] }
 0x475   : > { %v1291_v61 = vsel %vm1148_vm10, %v1674_v60, 0 }
 0x476   : > { %1300 = vmatpush.bf16.msra.mxu1 %v1291_v61  ;;  %v1736_v61 = vld [vmem:[%s2475_s11 + $0x28] sm:$0xff] }
 0x49e   : > { %v1098_v11 = vpop.xlane.xlu0 %1097 }
 0x49f   : > { %v1106_v12 = vadd.f32 %v1098_v11, %v1090_v10 }
 0x4a1   : > { %1110 = vst.msk [vmem:[#allocation6 + $0x8] sm:$0xff] %vm909_vm9, %v1106_v12 }
 0x4a8   : > { %v1239_v21 = vld [vmem:[#allocation6 + $0x8] sm:$0xff] }
 0x4af   : > { %v1180_v34 = vpop.f32.mrf.mxu2  ;;  %v1095_v44 = vpop.xlane.xlu2 %1094 }
 0x4b0   : > { %v1105_v42 = vadd.f32 %v1095_v44, %v1089_v14  ;;  %v1677_v44 = vld [vmem:[%s2469_s5 + $0x8] sm:$0xf] }
 0x4b1   : > { %v1125_v15 = vpop.permute.xlu0 %1124 }
 0x4b2   : > { %1109 = vst.msk [vmem:[#allocation6] sm:$0xff] %vm909_vm9, %v1105_v42  ;;  %v1138_v49 = vmul.f32 %v1125_v15, %v1114_v51  ;;  %v1332_v51 = vsel %vm1148_vm10, %v1677_v44, 0  ;;  %v1734_v44 = vld [vmem:[%s2475_s11 + $0x18] sm:$0xff] }
 0x4b3   : > { %1341 = vmatpush.bf16.msrb.mxu3 %v1332_v51 }
 0x4b4   : > { %v1223_v57 = vadd.f32 %v1180_v34, %v1138_v49  ;;  %v1355_v34 = vsel %vm1148_vm10, %v1679_v13, 0 }
 0x4b5   : > { %1364 = vmatpush.bf16.msrb.mxu0 %v1355_v34 }
 0x4b6   : > { %1227 = vst.msk [vmem:[#allocation7 + $0x8] sm:$0xff] %vm918_vm7, %v1223_v57 }
 0x4b7   : > { %v1182_v17 = vpop.f32.mrf.mxu2  ;;  %v1104_v18 = vpop.xlane.xlu2 %1103 }
 0x4b8   : > { %v1108_v19 = vadd.f32 %v1104_v18, %v1092_v16 }
 0x4b9   : > { %v1238_v20 = vld [vmem:[#allocation6] sm:$0xff] }
 0x4ba   : > { %1112 = vst.msk [vmem:[#allocation6 + $0x18] sm:$0xff] %vm909_vm9, %v1108_v19  ;;  %v1161_v22 = vpop.f32.mrf.mxu1  ;;  %1840 = vrcp.f32 %v1238_v20 }
 0x4bb   : > { %1842 = vrcp.f32 %v1239_v21 }
 0x4bd   : > { %v1235_v15 = vld [vmem:[#allocation7 + $0x8] sm:$0xff] }
 0x4bf   : > { %v1130_v59 = vpop.permute.xlu2 %1129 }
 0x4c0   : > { %v1841_v23 = vpop.eup %1840  ;;  %v1139_v62 = vmul.f32 %v1130_v59, %v1115_v30  ;;  %v1730_v30 = vld [vmem:[%s2473_s9 + $0x8] sm:$0xff]  ;;  %v1729_v59 = vld [vmem:[%s2473_s9] sm:$0xff] }
 0x4c1   : > { %v1246_v24 = vmul.f32 %v1841_v23, %v1238_v20  ;;  %v1241_v52 = vld [vmem:[#allocation6 + $0x18] sm:$0xff]  ;;  %v1843_v26 = vpop.eup %1842  ;;  %1440 = vmatpush.bf16.msrb.mxu1 %v1730_v30 }
 0x4c2   : > { %v1163_v28 = vpop.f32.mrf.mxu1  ;;  %v1218_v29 = vpop.f32.mrf.mxu0  ;;  %1844 = vrcp.f32 %v1241_v52  ;;  %v1247_v36 = vmul.f32 %v1843_v26, %v1239_v21 }
 0x4c3   : > { %v1250_v32 = vsub.f32 2.0, %v1246_v24 }
 0x4c4   : > { %v1251_v43 = vsub.f32 2.0, %v1247_v36  ;;  %v1815_v36 = vld [vmem:[%s2470_s6] ss:$0 sm:$0xff] }
 0x4c5   : > { %v1254_v35 = vmul.f32 %v1841_v23, %v1250_v32  ;;  %1441 = vmatpush.bf16.msrb.mxu1 %v1729_v59 }
 0x4c6   : > { %v1101_v37 = vpop.xlane.xlu1 %1100  ;;  %v1255_v38 = vmul.f32 %v1843_v26, %v1251_v43 }
 0x4c7   : > { %v1107_v40 = vadd.f32 %v1101_v37, %v1091_v33  ;;  %1260 = vperm.xlu2 %1811, %v1254_v35   ;;  %v1852_v37 = vld [vmem:[%s2051_s24] sm:$0xff]  ;;  %s429_s24 = sand.u32 1, %s1907_s26  }
 0x4c8   : > { %v1845_v41 = vpop.eup %1844  ;;  %s1655_s23 = sshll.u32 %s429_s24, 3  ;;  %s1577_s29 = scalar_lea.sflag [#allocation9], %s429_s24 }
 0x4c9   : > { %1111 = vst.msk [vmem:[#allocation6 + $0x10] sm:$0xff] %vm909_vm9, %v1107_v40  ;;  %v1249_v45 = vmul.f32 %v1845_v41, %v1241_v52  ;;  %s431_s0 = scalar_lea.vmem [#allocation8], %s1655_s23  ;;  %s1873_s23 = scalar_lea.hbm %s2477_s13, 16 }
 0x4ca   : > { %v1220_v46 = vpop.f32.mrf.mxu0  ;;  %s1589_s1 = sshll.u32 %s431_s0, 4  ;;  %p1875_p1 = scmp.lt.s32.totalorder %s1873_s23, %s1869_s30  ;;  %s1590_s1 = int_to_ptr.vmem [resolvable:$true] %s1589_s1 }
 0x4cb   : > { %v1253_v47 = vsub.f32 2.0, %v1249_v45 }
 0x4cc   : > { %p1876_p2 = por %p1875_p1, %p1874_p0 }
 0x4cd   : > { %v1257_v50 = vmul.f32 %v1845_v41, %v1253_v47 }
 0x4ce   : > { %p1877_p3 = pnand %p1876_p2, %p1872_p13 }
 0x4cf   : > { %1265 = vperm.xlu2 %1811, %v1255_v38   ;;  %1275 = vperm.xlu0 %1809, %v1257_v50  }
 0x4d0   : > { %v1240_v54 = vld [vmem:[#allocation6 + $0x10] sm:$0xff] }
 0x4d1   : > { %1846 = vrcp.f32 %v1240_v54 }
 0x4d7   : > { %v1847_v63 = vpop.eup %1846  ;;  %v1199_v0 = vpop.f32.mrf.mxu3 }
 0x4d8   : > { %v1224_v25 = vadd.f32 %v1199_v0, %v1139_v62  ;;  %v1248_v1 = vmul.f32 %v1847_v63, %v1240_v54 }
 0x4da   : > { %1228 = vst.msk [vmem:[#allocation7 + $0x10] sm:$0xff] %vm918_vm7, %v1224_v25  ;;  %v1252_v2 = vsub.f32 2.0, %v1248_v1 }
 0x4dc   : > { %v1256_v53 = vmul.f32 %v1847_v63, %v1252_v2 }
 0x4de   : > { %v1120_v27 = vpop.permute.xlu1 %1119  ;;  %1270 = vperm.xlu1 %1810, %v1256_v53  }
 0x4df   : > { %v1137_v56 = vmul.f32 %v1120_v27, %v1113_v48  ;;  %v1201_v3 = vpop.f32.mrf.mxu3 }
 0x4e1   : > { %v1222_v4 = vadd.f32 %v1161_v22, %v1137_v56  ;;  %v1236_v20 = vld [vmem:[#allocation7 + $0x10] sm:$0xff] }
 0x4e2   : > { %v1816_v56 = vld [vmem:[%s2471_s7] ss:$0 sm:$0xff] }
 0x4e3   : > { %1226 = vst.msk [vmem:[#allocation7] sm:$0xff] %vm918_vm7, %v1222_v4 }
 0x4e6   : > { %v1135_v6 = vpop.permute.xlu1 %1134 }
 0x4e7   : > { %v1140_v7 = vmul.f32 %v1135_v6, %v1116_v5 }
 0x4e9   : > { %v1225_v39 = vadd.f32 %v1218_v29, %v1140_v7 }
 0x4ea   : > { %v1234_v11 = vld [vmem:[#allocation7] sm:$0xff] }
 0x4eb   : > { %1229 = vst.msk [vmem:[#allocation7 + $0x18] sm:$0xff] %vm918_vm7, %v1225_v39  ;;  %v1738_v39 = vld [vmem:[%s2475_s11 + $0x38] sm:$0xff] }
 0x4ec   : > { %1556 = vmatpush.bf16.msra.mxu2 %v1738_v39 }
 0x4f0   : > { %1557 = vmatpush.bf16.msra.mxu2 %v1737_v9 }
 0x4f2   : > { %v1237_v16 = vld [vmem:[#allocation7 + $0x18] sm:$0xff] }
 0x4f4   : > { %1558 = vmatpush.bf16.msra.mxu2 %v1736_v61 }
 0x521   : > { %v1261_v10 = vpop.permute.xlu2 %1260 }
 0x522   : > { %v1278_v12 = vmul.f32 %v1261_v10, %v1234_v11 }
 0x524   : > { %v1282_v14 = vpack.c.bf16 %v1278_v12, %v1278_v12  ;;  %v1735_v12 = vld [vmem:[%s2475_s11 + $0x20] sm:$0xff] }
 0x525   : > { %1559 = vmatpush.bf16.msra.mxu2 %v1735_v12 }
 0x526   : > { %1676 = vmatmul.msk.bf16.vlgmr.msrb.gmra.mxu2 %vm918_vm7, %v1282_v14 }
 0x529   : > { %v1266_v42 = vpop.permute.xlu2 %1265  ;;  %1560 = vmatpush.bf16.msra.mxu2 %v1734_v44 }
 0x52a   : > { %v1279_v49 = vmul.f32 %v1266_v42, %v1235_v15 }
 0x52c   : > { %v1284_v55 = vpack.c.bf16 %v1279_v49, %v1279_v49 }
 0x52e   : > { %1675 = vmatmul.msk.bf16.vlgmr.msra.gmra.mxu1 %vm918_vm7, %v1284_v55  ;;  %v1733_v55 = vld [vmem:[%s2475_s11 + $0x10] sm:$0xff] }
 0x52f   : > { %1561 = vmatpush.bf16.msra.mxu2 %v1733_v55 }
 0x541   : > { %v1276_v57 = vpop.permute.xlu0 %1275 }
 0x542   : > { %v1281_v17 = vmul.f32 %v1276_v57, %v1237_v16 }
 0x544   : > { %v1348_v18 = vpack.c.bf16 %v1281_v17, %v1281_v17 }
 0x546   : > { %1680 = vmatmul.msk.bf16.vlgmr.msrb.gmra.mxu0 %vm918_vm7, %v1348_v18 }
 0x550   : > { %v1271_v19 = vpop.permute.xlu1 %1270 }
 0x551   : > { %v1280_v21 = vmul.f32 %v1271_v19, %v1236_v20  ;;  %v1732_v19 = vld [vmem:[%s2475_s11 + $0x8] sm:$0xff] }
 0x552   : > { %1562 = vmatpush.bf16.msra.mxu2 %v1732_v19 }
 0x553   : > { %v1325_v22 = vpack.c.bf16 %v1280_v21, %v1280_v21 }
 0x555   : > { %1678 = vmatmul.msk.bf16.vlgmr.msrb.gmra.mxu3 %vm918_vm7, %v1325_v22 }
 0x5a9   : > { %v1321_v23 = vpop.f32.mrf.mxu2 }
 0x5ab   : > { %v1302_v24 = vpop.f32.mrf.mxu1 }
 0x5ac   : > { %v1322_v31 = vadd.f32 %v1321_v23, %v1302_v24  ;;  %v1731_v23 = vld [vmem:[%s2475_s11] sm:$0xff] }
 0x5ad   : > { %1563 = vmatpush.bf16.msra.mxu2 %v1731_v23 }
 0x5b1   : > { %v1323_v52 = vpop.f32.mrf.mxu2 }
 0x5b3   : > { %v1304_v26 = vpop.f32.mrf.mxu1 }
 0x5c3   : > { %v1366_v28 = vpop.f32.mrf.mxu0 }
 0x5cb   : > { %v1368_v29 = vpop.f32.mrf.mxu0 }
 0x5d8   : > { %v1343_v32 = vpop.f32.mrf.mxu3 }
 0x5d9   : > { %v1347_v33 = vadd.f32 %v1343_v32, %v1322_v31 }
 0x5db   : > { %v1370_v35 = vadd.f32 %v1366_v28, %v1347_v33 }
 0x5dd   : > { %v1372_v40 = vadd.f32 %v1852_v37, %v1370_v35 }
 0x5df   : > { %v2379_v41 = vadd.f32 %v1815_v36, %v1372_v40 }
 0x5e0   : > { %v1345_v43 = vpop.f32.mrf.mxu3 }
 0x5e1   : > { %v1380_v45 = vsel %vm440_vm0, %v2379_v41, 0.0 }
 0x5e2   : > { %1381 = vadd.xlane.f32.xlu1 %v1380_v45 }
 0x655   : > { %v1382_v46 = vpop.xlane.xlu1 %1381 }
 0x656   : > { %v1383_v47 = vmul.f32 %v1382_v46, %v2055_v8 }
 0x658   : > { %v1384_v38 = vsub.f32 %v2379_v41, %v1383_v47 }
 0x65a   : > { %v1385_v50 = vmul.f32 %v1384_v38, %v1384_v38 }
 0x65c   : > { %v1386_v54 = vsel %vm440_vm0, %v1385_v50, 0.0 }
 0x65d   : > { %1387 = vadd.xlane.f32.xlu2 %v1386_v54 }
 0x6d0   : > { %v1388_v62 = vpop.xlane.xlu2 %1387 }
 0x6d1   : > { %v1389_v63 = vmul.f32 %v1388_v62, %v2055_v8  ;;  %v1817_v8 = vld [vmem:[%s2472_s8] ss:$0 sm:$0xff] }
 0x6d3   : > { %v1390_v0 = vadd.f32 1e-05, %v1389_v63 }
 0x6d5   : > { %1848 = vrsqrt.f32 %v1390_v0  ;;  %vm1397_vm12 = vweird.f32 %v1390_v0 }
 0x6db   : > { %v1849_v25 = vpop.eup %1848 }
 0x6dc   : > { %v1392_v1 = vmul.f32 %v1849_v25, %v1390_v0  ;;  %vm1398_vm11 = vweird.f32 %v1849_v25 }
 0x6dd   : > { %vm1399_vm13 = vmor %vm1397_vm12, %vm1398_vm11 }
 0x6de   : > { %v1393_v2 = vmul.f32 %v1849_v25, %v1392_v1 }
 0x6e0   : > { %v1394_v48 = vmul.f32 0.5, %v1393_v2  ;;  %v1819_v2 = vld [vmem:[%s2476_s12] ss:$0 sm:$0xff] }
 0x6e2   : > { %v1395_v53 = vsub.f32 1.5, %v1394_v48 }
 0x6e4   : > { %v1396_v27 = vmul.f32 %v1849_v25, %v1395_v53 }
 0x6e6   : > { %v1400_v3 = vsel %vm1399_vm13, %v1849_v25, %v1396_v27 }
 0x6e7   : > { %v1401_v4 = vmul.f32 %v1400_v3, %v1384_v38 }
 0x6e9   : > { %v1405_v5 = vmul.f32 %v1816_v56, %v1401_v4 }
 0x6eb   : > { %v1409_v6 = vadd.f32 %v1817_v8, %v1405_v5 }
 0x6ed   : > { %v1410_v7 = vpack.c.bf16 %v1409_v6, %v1409_v6 }
 0x6ef   : > { %1689 = vmatmul.msk.bf16.vlgmr.msrb.gmra.mxu1 %vm440_vm0, %v1410_v7 }
 0x76c   : > { %v1443_v60 = vpop.f32.mrf.mxu1 }
 0x76d   : > { %v1444_v10 = vadd.f32 %v1818_v58, %v1443_v60 }
 0x76f   : > { %v1448_v11 = vmul.f32 0.70710677, %v1444_v10  ;;  %v1447_v63 = vmul.f32 0.5, %v1444_v10 }
 0x771   : > { %v1449_v13 = vmul.f32 %v1448_v11, %v1448_v11 }
 0x773   : > { %v1450_v14 = vmin.f32 %v1449_v13, 16.0 }
 0x774   : > { %v1445_v34 = vpop.f32.mrf.mxu1 }
 0x775   : > { %v1451_v51 = vmul.f32 2.1237322e-06, %v1450_v14  ;;  %v1462_v42 = vmul.f32 3.8918573e-05, %v1450_v14 }
 0x777   : > { %v1452_v15 = vadd.f32 0.00028619796, %v1451_v51  ;;  %v1463_v49 = vadd.f32 0.001143296, %v1462_v42 }
 0x779   : > { %v1453_v57 = vmul.f32 %v1452_v15, %v1450_v14  ;;  %v1464_v16 = vmul.f32 %v1463_v49, %v1450_v14 }
 0x77b   : > { %v1465_v17 = vadd.f32 0.014752088, %v1464_v16  ;;  %v1454_v18 = vadd.f32 0.0036580483, %v1453_v57 }
 0x77d   : > { %v1466_v20 = vmul.f32 %v1465_v17, %v1450_v14  ;;  %v1455_v22 = vmul.f32 %v1454_v18, %v1450_v14 }
 0x77f   : > { %v1467_v21 = vadd.f32 0.112945676, %v1466_v20  ;;  %v1456_v26 = vadd.f32 0.05243302, %v1455_v22 }
 0x781   : > { %v1468_v24 = vmul.f32 %v1467_v21, %v1450_v14  ;;  %v1457_v31 = vmul.f32 %v1456_v26, %v1450_v14 }
 0x783   : > { %v1469_v52 = vadd.f32 0.4994258, %v1468_v24  ;;  %v1458_v32 = vadd.f32 0.18741608, %v1457_v31 }
 0x785   : > { %v1470_v28 = vmul.f32 %v1469_v52, %v1450_v14  ;;  %v1459_v35 = vmul.f32 %v1458_v32, %v1450_v14 }
 0x787   : > { %v1471_v29 = vadd.f32 1.0, %v1470_v28  ;;  %v1460_v43 = vadd.f32 1.1283791, %v1459_v35 }
 0x789   : > { %1850 = vrcp.f32 %v1471_v29  ;;  %v1483_v40 = vand.u32 2147483648, %v1471_v29  ;;  %v1481_v46 = vand.u32 2147483647, %v1471_v29  ;;  %vm1477_vm15 = vweird.f32 %v1471_v29 }
 0x78a   : > { %v1461_v50 = vmul.f32 %v1460_v43, %v1448_v11 }
 0x78b   : > { %v1484_v38 = vor.u32 1.1754944e-38, %v1483_v40  ;;  %vm1482_vm2 = vcmp.eq.f32.partialorder %v1481_v46, 8.507059e+37 }
 0x78f   : > { %v1851_v33 = vpop.eup %1850 }
 0x790   : > { %v1473_v36 = vmul.f32 %v1851_v33, %v1471_v29  ;;  %vm1478_vm14 = vweird.f32 %v1851_v33 }
 0x791   : > { %vm1479_vm1 = vmor %vm1477_vm15, %vm1478_vm14 }
 0x792   : > { %v1474_v37 = vsub.f32 1.0, %v1473_v36 }
 0x794   : > { %v1475_v45 = vmul.f32 %v1851_v33, %v1474_v37 }
 0x796   : > { %v1476_v47 = vadd.f32 %v1851_v33, %v1475_v45 }
 0x798   : > { %v1480_v54 = vsel %vm1479_vm1, %v1851_v33, %v1476_v47 }
 0x799   : > { %v1485_v30 = vsel %vm1482_vm2, %v1484_v38, %v1480_v54 }
 0x79a   : > { %v1486_v59 = vmul.f32 %v1485_v30, %v1461_v50 }
 0x79c   : > { %v1690_v62 = vclamps-f32 %v1486_v59, 1.0 }
 0x79e   : > { %v1489_v0 = vadd.f32 1.0, %v1690_v62 }
 0x7a0   : > { %v1490_v25 = vmul.f32 %v1489_v0, %v1447_v63 }
 0x7a2   : > { %v1491_v1 = vpack.c.bf16 %v1490_v25, %v1490_v25 }
 0x7a4   : > { %1564 = vmatmul.bf16.vlgmr.msra.gmra.mxu2 %v1491_v1 }
 0x827   : > { %v1565_v48 = vpop.f32.mrf.mxu2 }
 0x828   : > { %v1569_v53 = vadd.f32 %v1565_v48, %v2379_v41 }
 0x82a   : > { %v1574_v27 = vadd.f32 %v1819_v2, %v1569_v53 }
 0x82c   : > { %1575 = vst.msk [vmem:[%s431_s0] sm:$0xff] %vm440_vm0, %v1574_v27 }
 0x82d   : > { %1880 = shalt.err (!%p1877_p3)
}
 0x82e   : > { %1739 = dma.vmem_to_hbm [thread:$0]  (%p2036_p5), %s1590_s1, 128, %s1592_s2, %s1577_s29  }
 0x82f   : > { %v1567_v41 = vpop.f32.mrf.mxu2 }
 0x830 PF: > { %p1745_p4 = scmp.ge.s32.totalorder %s1915_s28, 2  ;;  %s1603_s0 = sand.u32 1, %s1903_s25  }
 0x831   : > { %s1604_s24 = scalar_lea.sflag [#allocation9], %s1603_s0 }
 0x832   : > { %p1742_p7 = pnand %p1745_p4, %p2040_p6 }
 0x834   : > { %p1743_p8 = pneg %p1742_p7 }
 0x836   : > { %1898 = dma.done.wait (%p1743_p8), %s1604_s24, 128  }
 0x837   : > { %1900 = vsyncadd (%p1743_p8), %s1604_s24, 4294967168  ;;  %p23_p9 = scmp.ge.s32.totalorder %s2023_s14, 4   ;;  %s2488_s25 = smov %s1907_s26 }
 0x838   : > { %s2489_s26 = smov %s1911_s27  ;;  %s2490_s27 = smov %s2034_s17 }
 0x839   : > { %s2491_s28 = smov %s2023_s14  ;;  %25 = sbr.rel (!%p23_p9) target bundleno = 8 (0x8), region = 110 }
 0x83e   :  { %1610 = vsyncpa [#allocation9], 1 }
 0x83f   :  { %1612 = vsyncpa [#allocation9 + $0x1], 1 }

// kernel: tpu_custom_call.1
= control target key start
LH: loop header
LB: loop body
LE: loop exit
PB: predicated region body
PF: predicated region fallthrough
CT: control target
= control target key end

     0   :  { %s2464_s0 = inlined_call_operand.vmem [shape: f32[2,8,32], index: 0, kind: input, shape index: {}]   ;;  %s2465_s1 = inlined_call_operand.vmem [shape: f32[1,32], index: 1, kind: input, shape index: {}]   ;;  %s2466_s2 = inlined_call_operand.vmem [shape: f32[1,32], index: 2, kind: input, shape index: {}]   ;;  %s2467_s3 = inlined_call_operand.vmem [shape: bf16[32,96], index: 3, kind: input, shape index: {}]   ;;  %s2468_s4 = inlined_call_operand.vmem [shape: f32[1,96], index: 4, kind: input, shape index: {}]   ;;  %s2469_s5 = inlined_call_operand.vmem [shape: bf16[4,8,32], index: 5, kind: input, shape index: {}]   ;;  %s2470_s6 = inlined_call_operand.vmem [shape: f32[1,32], index: 6, kind: input, shape index: {}]   ;;  %s2471_s7 = inlined_call_operand.vmem [shape: f32[1,32], index: 7, kind: input, shape index: {}]   ;;  %s2472_s8 = inlined_call_operand.vmem [shape: f32[1,32], index: 8, kind: input, shape index: {}]   ;;  %s2473_s9 = inlined_call_operand.vmem [shape: bf16[32,128], index: 9, kind: input, shape index: {}]   ;;  %s2474_s10 = inlined_call_operand.vmem [shape: f32[1,128], index: 10, kind: input, shape index: {}]   ;;  %s2475_s11 = inlined_call_operand.vmem [shape: bf16[128,32], index: 11, kind: input, shape index: {}]   ;;  %s2476_s12 = inlined_call_operand.vmem [shape: f32[1,32], index: 12, kind: input, shape index: {}]   ;;  %s2477_s13 = inlined_call_operand.hbm [shape: f32[2,8,32], index: 13, kind: output, shape index: {}]  }
   0x1   :  { %2478 = sst [smem:[#allocation11_spill]] %s2464_s0 }
   0x2   :  { %2479 = sst [smem:[#allocation12_spill]] %s2465_s1 }
   0x3   :  { %2480 = sst [smem:[#allocation13_spill]] %s2466_s2 }
   0x4   :  { %2481 = sst [smem:[#allocation14_spill]] %s2467_s3 }
   0x5   :  { %18 = vsyncpa [#allocation9], 0 }
   0x6   :  { %20 = vsyncpa [#allocation9 + $0x1], 0  ;;  %s1998_s25 = smov 0   ;;  %s2000_s26 = smov 0  }
   0x7   :  { %s2002_s27 = smov 0   ;;  %s2004_s28 = smov 0  }
   0x8 LB: > { %s2019_s29 = sadd.s32 4294967295, %s1915_s28   ;;  %s1651_s30 = sadd.s32 4294967294, %s1915_s28   ;;  %s1915_s28 = sphi %s2004_s28, %s2491_s28   ;;  %s1911_s27 = sphi %s2002_s27, %s2490_s27   ;;  %s1907_s26 = sphi %s2000_s26, %s2489_s26   ;;  %s1903_s25 = sphi %s1998_s25, %s2488_s25  }
   0x9   : > { %s2023_s14 = sadd.s32 1, %s1915_s28   ;;  %s311_s15 = sadd.s32 1, %s1911_s27 }
   0xa   : > { %s308_s16 = ssub.s32 %s1915_s28, %s2023_s14  ;;  %p321_p0 = scmp.ne.s32.totalorder %s1911_s27, %s1907_s26 }
   0xb   : > { %p309_p1 = scmp.eq.s32.totalorder %s308_s16, 0  ;;  %p322_p2 = scmp.eq.s32.totalorder %s2019_s29, 1 }
   0xc   : > { %p327_p3 = scmp.ne.s32.totalorder %s1907_s26, %s1903_s25  ;;  %p328_p4 = scmp.eq.s32.totalorder %s1651_s30, 1 }
   0xd   : > { %s2034_s17 = scalar_select %p309_p1, %s1911_s27, %s311_s15  }
   0xe   : > { %p2036_p5 = por %p322_p2, %p321_p0  ;;  %p2040_p6 = por %p328_p4, %p327_p3 }
   0xf   : > { %p1654_p7 = scmp.ge.s32.totalorder %s1915_s28, 1  ;;  %p389_p8 = scmp.lt.s32.totalorder %s1915_s28, 3 }
  0x11   : > { %p390_p9 = pnand %p1654_p7, %p389_p8 }
  0x12   : > { %p432_p10 = scmp.lt.s32.totalorder (!%p390_p9), %s2019_s29, 1  ;;  %s2484_s0 = sld [smem:[#allocation11_spill]] (!%p390_p9) }
  0x13   : > { %393 = sbr.rel (%p390_p9) target bundleno = 2096 (0x830), region = 72  ;;  %s2485_s3 = sld [smem:[#allocation14_spill]] (!%p390_p9) }
  0x14   : > { %s2486_s1 = sld [smem:[#allocation12_spill]] (!%p390_p9)  ;;  %s1920_s22 = smov (!%p390_p9), 104  }
  0x15   : > { %s2487_s2 = sld [smem:[#allocation13_spill]] (!%p390_p9)  ;;  %s1922_s23 = smov (!%p390_p9), 96  }
  0x16   : > { %s1925_s30 = smov (!%p390_p9), 64  }
  0x18   : > { %s433_s20 = scalar_select %p432_p10, %s2019_s29, 1  ;;  %vm440_vm0 = vcmask 261120   ;;  %v1917_v2 = vmov 32.0   ;;  %v1814_v32 = vld [vmem:[%s2468_s4] ss:$0 sm:$0xff]  ;;  %vm526_vm5 = vcmask 1047556  }
  0x19   : > { %1820 = vrcp.f32 %v1917_v2  ;;  %v1728_v14 = vld [vmem:[%s2485_s3 + $0x8] sm:$0xff]  ;;  %v1727_v15 = vld [vmem:[%s2485_s3] sm:$0xff]  ;;  %v1921_v36 = vmov 1983009808   ;;  %v1923_v46 = vmov 1934713408  }
  0x1a   : > { %s1656_s21 = sshll.u32 %s433_s20, 3  ;;  %508 = vmatpush.bf16.msra.mxu0 %v1728_v14  ;;  %v1812_v25 = vld [vmem:[%s2486_s1] ss:$0 sm:$0xff]  ;;  %s1918_s20 = smov 120   ;;  %v531_v37 = vunpack.c.l.s4 %v1921_v36  ;;  %v555_v47 = vunpack.c.l.s4 %v1923_v46  ;;  %vm640_vm6 = vcmask 60416   ;;  %vm918_vm7 = vcmask 64512  }
  0x1b   : > { %s2051_s24 = scalar_lea.vmem %s2484_s0, %s1656_s21  ;;  %v1813_v28 = vld [vmem:[%s2487_s2] ss:$0 sm:$0xff]  ;;  %s1919_s21 = smov 112   ;;  %vm909_vm9 = vcmask 7168   ;;  %vm1148_vm10 = vcmask 1043456  }
  0x1c   : > { %v437_v0 = vld [vmem:[%s2051_s24] sm:$0xff]  ;;  %v2087_v42 = vunpack.c.0.s8 %v531_v37  ;;  %v2100_v52 = vunpack.c.0.s8 %v555_v47 }
  0x1d   : > { %v441_v1 = vsel %vm440_vm0, %v437_v0, 0.0 }
  0x1e   : > { %442 = vadd.xlane.f32.xlu0 %v441_v1  ;;  %509 = vmatpush.bf16.msra.mxu0 %v1727_v15 }
  0x1f   : > { %v1821_v3 = vpop.eup %1820 }
  0x20   : > { %v445_v4 = vmul.f32 32.0, %v1821_v3  ;;  %vm449_vm1 = vweird.f32 %v1821_v3 }
  0x22   : > { %v446_v5 = vsub.f32 1.0, %v445_v4 }
  0x24   : > { %v447_v6 = vmul.f32 %v1821_v3, %v446_v5 }
  0x26   : > { %v448_v7 = vadd.f32 %v1821_v3, %v447_v6 }
  0x28   : > { %v2055_v8 = vsel %vm449_vm1, %v1821_v3, %v448_v7 }
  0x91   : > { %v443_v9 = vpop.xlane.xlu0 %442 }
  0x92   : > { %v451_v10 = vmul.f32 %v2055_v8, %v443_v9 }
  0x94   : > { %v452_v11 = vsub.f32 %v437_v0, %v451_v10 }
  0x96   : > { %v453_v12 = vmul.f32 %v452_v11, %v452_v11 }
  0x98   : > { %v454_v13 = vsel %vm440_vm0, %v453_v12, 0.0 }
  0x99   : > { %455 = vadd.xlane.f32.xlu0 %v454_v13 }
 0x10c   : > { %v456_v16 = vpop.xlane.xlu0 %455 }
 0x10d   : > { %v457_v17 = vmul.f32 %v456_v16, %v2055_v8 }
 0x10f   : > { %v458_v18 = vadd.f32 1e-05, %v457_v17 }
 0x111   : > { %1822 = vrsqrt.f32 %v458_v18  ;;  %vm465_vm3 = vweird.f32 %v458_v18 }
 0x117   : > { %v1823_v19 = vpop.eup %1822 }
 0x118   : > { %v460_v20 = vmul.f32 %v1823_v19, %v458_v18  ;;  %vm466_vm2 = vweird.f32 %v1823_v19 }
 0x119   : > { %vm467_vm4 = vmor %vm465_vm3, %vm466_vm2 }
 0x11a   : > { %v461_v21 = vmul.f32 %v1823_v19, %v460_v20 }
 0x11c   : > { %v462_v22 = vmul.f32 0.5, %v461_v21 }
 0x11e   : > { %v463_v23 = vsub.f32 1.5, %v462_v22 }
 0x120   : > { %v464_v24 = vmul.f32 %v1823_v19, %v463_v23 }
 0x122   : > { %v468_v26 = vsel %vm467_vm4, %v1823_v19, %v464_v24 }
 0x123   : > { %v469_v27 = vmul.f32 %v468_v26, %v452_v11 }
 0x125   : > { %v473_v29 = vmul.f32 %v1812_v25, %v469_v27 }
 0x127   : > { %v477_v30 = vadd.f32 %v1813_v28, %v473_v29 }
 0x129   : > { %v478_v31 = vpack.c.bf16 %v477_v30, %v477_v30 }
 0x12b   : > { %1665 = vmatmul.msk.bf16.vlgmr.msra.gmra.mxu0 %vm440_vm0, %v478_v31 }
 0x1a8   : > { %v511_v33 = vpop.f32.mrf.mxu0 }
 0x1a9   : > { %v2076_v34 = vadd.f32 %v1814_v32, %v511_v33 }
 0x1ab   : > { %516 = vrot.lane.b32.xlu2 %v2076_v34, %s1918_s20  ;;  %519 = vrot.lane.b32.xlu1 %v2076_v34, %s1919_s21  ;;  %v528_v40 = vrot.slane %v2076_v34, 4 }
 0x1b0   : > { %v513_v35 = vpop.f32.mrf.mxu0 }
 0x1b3   : > { %522 = vrot.lane.b32.xlu1 %v2076_v34, %s1920_s22 }
 0x205   : > { %v2091_v44 = vpop.permute.xlu2 %516 }
 0x206   : > { %v540_v49 = vrot.slane %v2091_v44, 4 }
 0x21d   : > { %v2081_v38 = vpop.permute.xlu1 %519 }
 0x21e   : > { %v525_v39 = vrot.slane %v2081_v38, 4  ;;  %v1789_v41 = vpack.i.bf16 %v2076_v34, %v2081_v38  ;;  %v529_v43 = vsel %vm526_vm5, %v2081_v38, %v528_v40 }
 0x21f   : > { %v537_v48 = vperm.slane %v529_v43, %v2087_v42 }
 0x220   : > { %1790 = vrot.lane.b32.xlu2 %v1789_v41, %s1922_s23  ;;  %v527_v45 = vsel %vm526_vm5, %v525_v39, %v2076_v34 }
 0x221   : > { %v533_v50 = vperm.slane %v527_v45, %v2087_v42  ;;  %v564_v56 = vrot.slane %v537_v48, 4 }
 0x223   : > { %v552_v59 = vrot.slane %v533_v50, 4 }
 0x225   : > { %v2098_v51 = vpop.permute.xlu1 %522 }
 0x226   : > { %v538_v53 = vrot.slane %v2098_v51, 4  ;;  %v541_v54 = vsel %vm526_vm5, %v2098_v51, %v540_v49  ;;  %v1794_v55 = vpack.i.bf16 %v2091_v44, %v2098_v51 }
 0x227   : > { %v549_v57 = vperm.slane %v541_v54, %v2087_v42 }
 0x228   : > { %v539_v58 = vsel %vm526_vm5, %v538_v53, %v2091_v44  ;;  %1795 = vrot.lane.b32.xlu0 %v1794_v55, %s1922_s23 }
 0x229   : > { %v545_v60 = vperm.slane %v539_v58, %v2087_v42  ;;  %v562_v61 = vrot.slane %v549_v57, 4  ;;  %v565_v62 = vsel %vm526_vm5, %v549_v57, %v564_v56 }
 0x22a   : > { %v573_v63 = vperm.slane %v565_v62, %v2100_v52 }
 0x22b   : > { %v550_v0 = vrot.slane %v545_v60, 4  ;;  %v553_v1 = vsel %vm526_vm5, %v545_v60, %v552_v59  ;;  %v563_v2 = vsel %vm526_vm5, %v562_v61, %v537_v48 }
 0x22c   : > { %v561_v3 = vperm.slane %v553_v1, %v2100_v52  ;;  %v569_v4 = vperm.slane %v563_v2, %v2100_v52  ;;  %v580_v5 = vrot.slane %v573_v63, 4 }
 0x22d   : > { %v551_v6 = vsel %vm526_vm5, %v550_v0, %v533_v50 }
 0x22e   : > { %v557_v7 = vperm.slane %v551_v6, %v2100_v52  ;;  %v576_v9 = vrot.slane %v561_v3, 4  ;;  %v578_v10 = vrot.slane %v569_v4, 4  ;;  %v581_v11 = vsel %vm526_vm5, 0.0, %v580_v5 }
 0x22f   : > { %v593_v12 = vsel %vm526_vm5, %v580_v5, %v569_v4  ;;  %v598_v13 = vrot.slane %v581_v11, 4 }
 0x230   : > { %v574_v14 = vrot.slane %v557_v7, 4  ;;  %v577_v15 = vsel %vm526_vm5, 0.0, %v576_v9  ;;  %v579_v16 = vsel %vm526_vm5, 0.0, %v578_v10  ;;  %v582_v17 = vsel %vm526_vm5, %v576_v9, %v557_v7 }
 0x231   : > { %v586_v18 = vperm.slane %v582_v17, %v2087_v42  ;;  %v587_v19 = vrot.slane %v577_v15, 4  ;;  %v597_v20 = vperm.slane %v593_v12, %v2087_v42  ;;  %v599_v21 = vsel %vm526_vm5, %v598_v13, %v579_v16 }
 0x232   : > { %v575_v22 = vsel %vm526_vm5, 0.0, %v574_v14  ;;  %v603_v23 = vperm.slane %v599_v21, %v2087_v42 }
 0x233   : > { %v588_v24 = vsel %vm526_vm5, %v587_v19, %v575_v22  ;;  %v606_v25 = vrot.slane %v586_v18, 4  ;;  %v618_v26 = vrot.slane %v597_v20, 4 }
 0x234   : > { %v592_v27 = vperm.slane %v588_v24, %v2087_v42  ;;  %v616_v28 = vrot.slane %v603_v23, 4 }
 0x235   : > { %v619_v29 = vsel %vm526_vm5, %v603_v23, %v618_v26 }
 0x236   : > { %v604_v30 = vrot.slane %v592_v27, 4  ;;  %v607_v31 = vsel %vm526_vm5, %v592_v27, %v606_v25  ;;  %v617_v32 = vsel %vm526_vm5, %v616_v28, %v597_v20  ;;  %v627_v33 = vperm.slane %v619_v29, %v2100_v52 }
 0x237   : > { %v615_v35 = vperm.slane %v607_v31, %v2100_v52  ;;  %v623_v36 = vperm.slane %v617_v32, %v2100_v52 }
 0x238   : > { %v605_v37 = vsel %vm526_vm5, %v604_v30, %v586_v18  ;;  %v632_v39 = vrot.slane %v627_v33, 4 }
 0x239   : > { %v611_v40 = vperm.slane %v605_v37, %v2100_v52  ;;  %v628_v41 = vrot.slane %v623_v36, 4  ;;  %v634_v43 = vrot.slane %v615_v35, 4 }
 0x23a   : > { %v633_v45 = vsel %vm526_vm5, %v632_v39, %v615_v35 }
 0x23b   : > { %v629_v46 = vsel %vm526_vm5, %v628_v41, %v611_v40  ;;  %v630_v47 = vrot.slane %v611_v40, 4  ;;  %v635_v48 = vsel %vm526_vm5, %v627_v33, %v634_v43  ;;  %v638_v49 = vpack.c.bf16 %v633_v45, %v633_v45 }
 0x23c   : > { %v636_v50 = vpack.c.bf16 %v629_v46, %v629_v46  ;;  %v639_v53 = vpack.c.bf16 %v635_v48, %v635_v48 }
 0x23d   : > { %v631_v54 = vsel %vm526_vm5, %v623_v36, %v630_v47  ;;  %643 = vst.msk [vmem:[#allocation2 + $0x8] sm:$0xf] %vm640_vm6, %v638_v49 }
 0x23e   : > { %v637_v55 = vpack.c.bf16 %v631_v54, %v631_v54  ;;  %641 = vst.msk [vmem:[#allocation2] sm:$0xf] %vm640_vm6, %v636_v50 }
 0x23f   : > { %644 = vst.msk [vmem:[#allocation2 + $0xc] sm:$0xf] %vm640_vm6, %v639_v53 }
 0x240   : > { %642 = vst.msk [vmem:[#allocation2 + $0x4] sm:$0xf] %vm640_vm6, %v637_v55 }
 0x27a   : > { %v1791_v56 = vpop.permute.xlu2 %1790 }
 0x27b   : > { %v1793_v57 = vunpack.i.h.bf16 %v1791_v56  ;;  %v1792_v58 = vunpack.i.l.bf16 %v1791_v56 }
 0x27d   : > { %v659_v59 = vrot.slane %v1793_v57, 4  ;;  %v657_v60 = vrot.slane %v1792_v58, 4 }
 0x27f   : > { %v658_v61 = vsel %vm526_vm5, %v657_v60, %v1793_v57  ;;  %v660_v62 = vsel %vm526_vm5, %v1792_v58, %v659_v59 }
 0x280   : > { %v664_v2 = vperm.slane %v658_v61, %v2087_v42  ;;  %v668_v3 = vperm.slane %v660_v62, %v2087_v42 }
 0x282   : > { %v683_v9 = vrot.slane %v664_v2, 4  ;;  %v695_v10 = vrot.slane %v668_v3, 4 }
 0x29a   : > { %v1796_v63 = vpop.permute.xlu0 %1795 }
 0x29b   : > { %v1798_v0 = vunpack.i.h.bf16 %v1796_v63  ;;  %v1797_v1 = vunpack.i.l.bf16 %v1796_v63 }
 0x29d   : > { %v671_v4 = vrot.slane %v1798_v0, 4  ;;  %v669_v5 = vrot.slane %v1797_v1, 4 }
 0x29f   : > { %v670_v6 = vsel %vm526_vm5, %v669_v5, %v1798_v0  ;;  %v672_v7 = vsel %vm526_vm5, %v1797_v1, %v671_v4 }
 0x2a0   : > { %v676_v11 = vperm.slane %v670_v6, %v2087_v42  ;;  %v680_v12 = vperm.slane %v672_v7, %v2087_v42 }
 0x2a2   : > { %v681_v13 = vrot.slane %v676_v11, 4  ;;  %v684_v14 = vsel %vm526_vm5, %v676_v11, %v683_v9  ;;  %v693_v15 = vrot.slane %v680_v12, 4  ;;  %v696_v16 = vsel %vm526_vm5, %v680_v12, %v695_v10 }
 0x2a3   : > { %v692_v17 = vperm.slane %v684_v14, %v2100_v52  ;;  %v704_v18 = vperm.slane %v696_v16, %v2100_v52  ;;  %v908_v16 = vld [vmem:[#allocation2 + $0xc] sm:$0xf] }
 0x2a4   : > { %v682_v19 = vsel %vm526_vm5, %v681_v13, %v664_v2  ;;  %v694_v20 = vsel %vm526_vm5, %v693_v15, %v668_v3 }
 0x2a5   : > { %v688_v21 = vperm.slane %v682_v19, %v2100_v52  ;;  %v700_v22 = vperm.slane %v694_v20, %v2100_v52  ;;  %v707_v23 = vrot.slane %v692_v17, 4  ;;  %v711_v24 = vrot.slane %v704_v18, 4  ;;  %v905_v17 = vld [vmem:[#allocation2] sm:$0xf]  ;;  %v906_v18 = vld [vmem:[#allocation2 + $0x4] sm:$0xf] }
 0x2a6   : > { %v907_v19 = vld [vmem:[#allocation2 + $0x8] sm:$0xf]  ;;  %v923_v20 = vlaneseq }
 0x2a7   : > { %v705_v25 = vrot.slane %v688_v21, 4  ;;  %v708_v26 = vsel %vm526_vm5, 0.0, %v707_v23  ;;  %v709_v27 = vrot.slane %v700_v22, 4  ;;  %v712_v28 = vsel %vm526_vm5, 0.0, %v711_v24 }
 0x2a8   : > { %v713_v29 = vsel %vm526_vm5, %v707_v23, %v688_v21  ;;  %v718_v30 = vrot.slane %v708_v26, 4  ;;  %v724_v31 = vsel %vm526_vm5, %v711_v24, %v700_v22  ;;  %v729_v32 = vrot.slane %v712_v28, 4 }
 0x2a9   : > { %v706_v33 = vsel %vm526_vm5, 0.0, %v705_v25  ;;  %v710_v35 = vsel %vm526_vm5, 0.0, %v709_v27  ;;  %v717_v36 = vperm.slane %v713_v29, %v2087_v42  ;;  %v728_v37 = vperm.slane %v724_v31, %v2087_v42 }
 0x2aa   : > { %v719_v39 = vsel %vm526_vm5, %v718_v30, %v706_v33  ;;  %v730_v40 = vsel %vm526_vm5, %v729_v32, %v710_v35  ;;  %v924_v21 = vshrl.u32 %v923_v20, 7  ;;  %v1012_v22 = vand.u32 127, %v923_v20 }
 0x2ab   : > { %v723_v41 = vperm.slane %v719_v39, %v2087_v42  ;;  %v734_v43 = vperm.slane %v730_v40, %v2087_v42  ;;  %v737_v45 = vrot.slane %v717_v36, 4  ;;  %v749_v46 = vrot.slane %v728_v37, 4 }
 0x2ac   : > { %vm1014_vm8 = vcmp.le.s32.totalorder %v1012_v22, %v924_v21 }
 0x2ad   : > { %v735_v47 = vrot.slane %v723_v41, 4  ;;  %v738_v48 = vsel %vm526_vm5, %v723_v41, %v737_v45  ;;  %v747_v49 = vrot.slane %v734_v43, 4  ;;  %v750_v50 = vsel %vm526_vm5, %v734_v43, %v749_v46 }
 0x2ae   : > { %v746_v53 = vperm.slane %v738_v48, %v2100_v52  ;;  %v758_v54 = vperm.slane %v750_v50, %v2100_v52  ;;  %v1804_v43 = vpack.i.bf16 %v2098_v51, %v2081_v38  ;;  %v1799_v45 = vpack.i.bf16 %v2091_v44, %v2076_v34 }
 0x2af   : > { %v736_v55 = vsel %vm526_vm5, %v735_v47, %v717_v36  ;;  %v748_v56 = vsel %vm526_vm5, %v747_v49, %v728_v37  ;;  %v1924_v36 = vmov -1e+30   ;;  %v1926_v46 = vmov 0  }
 0x2b0   : > { %v742_v57 = vperm.slane %v736_v55, %v2100_v52  ;;  %v754_v58 = vperm.slane %v748_v56, %v2100_v52  ;;  %v763_v59 = vrot.slane %v758_v54, 4  ;;  %v765_v60 = vrot.slane %v746_v53, 4  ;;  %910 = vst.msk [vmem:[#allocation5] sm:$0xff] %vm909_vm9, %v1924_v36  ;;  %1810 = vset.pattern.permute.xlu1 %v1926_v46  ;;  %1811 = vset.pattern.permute.xlu2 %v1926_v46 }
 0x2b1   : > { %911 = vst.msk [vmem:[#allocation5 + $0x8] sm:$0xff] %vm909_vm9, %v1924_v36  ;;  %1809 = vset.pattern.permute.xlu0 %v1926_v46  ;;  %v1927_v47 = vmov 0.0  }
 0x2b2   : > { %v759_v61 = vrot.slane %v754_v58, 4  ;;  %v761_v62 = vrot.slane %v742_v57, 4  ;;  %v764_v63 = vsel %vm526_vm5, %v763_v59, %v746_v53  ;;  %v766_v0 = vsel %vm526_vm5, %v758_v54, %v765_v60  ;;  %912 = vst.msk [vmem:[#allocation5 + $0x10] sm:$0xff] %vm909_vm9, %v1924_v36 }
 0x2b3   : > { %v769_v1 = vpack.c.bf16 %v764_v63, %v764_v63  ;;  %v770_v2 = vpack.c.bf16 %v766_v0, %v766_v0  ;;  %913 = vst.msk [vmem:[#allocation5 + $0x18] sm:$0xff] %vm909_vm9, %v1924_v36 }
 0x2b4   : > { %v760_v3 = vsel %vm526_vm5, %v759_v61, %v742_v57  ;;  %v762_v4 = vsel %vm526_vm5, %v754_v58, %v761_v62  ;;  %915 = vst.msk [vmem:[#allocation6 + $0x8] sm:$0xff] %vm909_vm9, %v1927_v47 }
 0x2b5   : > { %v767_v5 = vpack.c.bf16 %v760_v3, %v760_v3  ;;  %v768_v6 = vpack.c.bf16 %v762_v4, %v762_v4  ;;  %773 = vst.msk [vmem:[#allocation3 + $0x8] sm:$0xf] %vm640_vm6, %v769_v1 }
 0x2b6   : > { %774 = vst.msk [vmem:[#allocation3 + $0xc] sm:$0xf] %vm640_vm6, %v770_v2 }
 0x2b7   : > { %771 = vst.msk [vmem:[#allocation3] sm:$0xf] %vm640_vm6, %v767_v5  ;;  %v2235_v34 = vld [vmem:[#allocation5] sm:$0xff] }
 0x2b8   : > { %772 = vst.msk [vmem:[#allocation3 + $0x4] sm:$0xf] %vm640_vm6, %v768_v6  ;;  %v2245_v48 = vld [vmem:[#allocation5 + $0x8] sm:$0xff] }
 0x2b9   : > { %914 = vst.msk [vmem:[#allocation6] sm:$0xff] %vm909_vm9, %v1927_v47  ;;  %v2265_v58 = vld [vmem:[#allocation5 + $0x10] sm:$0xff] }
 0x2ba   : > { %916 = vst.msk [vmem:[#allocation6 + $0x10] sm:$0xff] %vm909_vm9, %v1927_v47  ;;  %v2247_v49 = vld [vmem:[#allocation5 + $0x18] sm:$0xff] }
 0x2bb   : > { %917 = vst.msk [vmem:[#allocation6 + $0x18] sm:$0xff] %vm909_vm9, %v1927_v47 }
 0x2bc   : > { %v929_v11 = vld [vmem:[#allocation3 + $0x8] sm:$0xf]  ;;  %919 = vst.msk [vmem:[#allocation7] sm:$0xff] %vm918_vm7, %v1927_v47 }
 0x2bd   : > { %v930_v7 = vld [vmem:[#allocation3 + $0xc] sm:$0xf]  ;;  %v977_v15 = vsel %vm918_vm7, %v929_v11, 0  ;;  %920 = vst.msk [vmem:[#allocation7 + $0x8] sm:$0xff] %vm918_vm7, %v1927_v47 }
 0x2be   : > { %v996_v9 = vsel %vm918_vm7, %v930_v7, 0  ;;  %v927_v10 = vld [vmem:[#allocation3] sm:$0xf]  ;;  %921 = vst.msk [vmem:[#allocation7 + $0x10] sm:$0xff] %vm918_vm7, %v1927_v47 }
 0x2bf   : > { %1005 = vmatpush.bf16.xpose.msrb.mxu0 %v996_v9  ;;  %v939_v12 = vsel %vm918_vm7, %v927_v10, 0  ;;  %v928_v13 = vld [vmem:[#allocation3 + $0x4] sm:$0xf]  ;;  %922 = vst.msk [vmem:[#allocation7 + $0x18] sm:$0xff] %vm918_vm7, %v1927_v47 }
 0x2c0   : > { %948 = vmatpush.bf16.xpose.msra.mxu1 %v939_v12  ;;  %v958_v14 = vsel %vm918_vm7, %v928_v13, 0 }
 0x2c1   : > { %967 = vmatpush.bf16.xpose.msra.mxu3 %v958_v14 }
 0x2c6   : > { %1669 = vmatmul.msk.bf16.vlgmr.msrb.gmra.mxu0 %vm918_vm7, %v908_v16 }
 0x2c7   : > { %1666 = vmatmul.msk.bf16.vlgmr.msra.gmra.mxu1 %vm918_vm7, %v905_v17 }
 0x2c8   : > { %1667 = vmatmul.msk.bf16.vlgmr.msra.gmra.mxu3 %vm918_vm7, %v906_v18 }
 0x2c9   : > { %986 = vmatpush.bf16.xpose.msrb.mxu3 %v977_v15 }
 0x2d8   : > { %1668 = vmatmul.msk.bf16.vlgmr.msrb.gmra.mxu3 %vm918_vm7, %v907_v19 }
 0x343   : > { %v1007_v23 = vpop.f32.mrf.mxu0 }
 0x344   : > { %v950_v24 = vpop.f32.mrf.mxu1  ;;  %v2205_v27 = vsel %vm1014_vm8, %v1007_v23, -1e+30 }
 0x345   : > { %v2200_v25 = vsel %vm1014_vm8, %v950_v24, -1e+30  ;;  %v1034_v33 = vsel %vm918_vm7, %v2205_v27, -inf }
 0x346   : > { %v1025_v26 = vsel %vm918_vm7, %v2200_v25, -inf }
 0x347   : > { %1026 = vmax.xlane.f32.xlu2 %v1025_v26 }
 0x34b   : > { %v969_v28 = vpop.f32.mrf.mxu3  ;;  %v1009_v29 = vpop.f32.mrf.mxu0 }
 0x34c   : > { %v2208_v30 = vsel %vm1014_vm8, %v969_v28, -1e+30  ;;  %v952_v31 = vpop.f32.mrf.mxu1 }
 0x34d   : > { %v1028_v32 = vsel %vm918_vm7, %v2208_v30, -inf }
 0x34e   : > { %1029 = vmax.xlane.f32.xlu0 %v1028_v32 }
 0x34f   : > { %1035 = vmax.xlane.f32.xlu2 %v1034_v33 }
 0x353   : > { %v971_v35 = vpop.f32.mrf.mxu3 }
 0x35b   : > { %v988_v37 = vpop.f32.mrf.mxu3 }
 0x35c   : > { %v2219_v39 = vsel %vm1014_vm8, %v988_v37, -1e+30 }
 0x35d   : > { %v1031_v40 = vsel %vm918_vm7, %v2219_v39, -inf }
 0x35e   : > { %1032 = vmax.xlane.f32.xlu1 %v1031_v40 }
 0x363   : > { %v990_v41 = vpop.f32.mrf.mxu3 }
 0x367   : > { %1805 = vrot.lane.b32.xlu2 %v1804_v43, %s1925_s30 }
 0x377   : > { %1800 = vrot.lane.b32.xlu1 %v1799_v45, %s1925_s30  ;;  %s1724_s30 = sshll.u32 %s2019_s29, 3 }
 0x378   : > { %s1587_s20 = scalar_lea.hbm %s2477_s13, %s1724_s30 }
 0x379   : > { %s1591_s2 = sshll.u32 %s1587_s20, 4  ;;  %s1592_s2 = int_to_ptr.hbm [resolvable:$true] %s1591_s2 }
 0x37a   : > { %s1867_s3 = sshra.s32 %s1592_s2, 4  ;;  %s1868_s3 = int_to_ptr.hbm [resolvable:$true] %s1867_s3 }
 0x37b   : > { %s1869_s30 = scalar_lea.hbm %s1868_s3, 8  ;;  %p1874_p0 = scmp.lt.s32.totalorder %s1868_s3, %s2477_s13 }
 0x37c   : > { %p1870_p11 = scmp.ne.s32.totalorder %s1868_s3, %s1869_s30 }
 0x37e   : > { %p1871_p12 = pnand %p1870_p11, %p2036_p5 }
 0x380   : > { %p1872_p13 = pneg %p1871_p12 }
 0x3ba   : > { %v1027_v38 = vpop.xlane.xlu2 %1026 }
 0x3bb   : > { %v2238_v44 = vmax.f32 %v2235_v34, %v1027_v38 }
 0x3bd   : > { %v1041_v51 = vsub.f32 %v2235_v34, %v2238_v44  ;;  %1230 = vst.msk [vmem:[#allocation5] sm:$0xff] %vm909_vm9, %v2238_v44  ;;  %1055 = vperm.xlu1 %1810, %v2238_v44  }
 0x3c1   : > { %v1030_v50 = vpop.xlane.xlu0 %1029 }
 0x3c2   : > { %v2250_v53 = vmax.f32 %v2245_v48, %v1030_v50  ;;  %v1036_v54 = vpop.xlane.xlu2 %1035 }
 0x3c3   : > { %v2253_v55 = vmax.f32 %v2247_v49, %v1036_v54 }
 0x3c4   : > { %v1042_v56 = vsub.f32 %v2245_v48, %v2250_v53  ;;  %1231 = vst.msk [vmem:[#allocation5 + $0x8] sm:$0xff] %vm909_vm9, %v2250_v53  ;;  %1060 = vperm.xlu2 %1811, %v2250_v53  }
 0x3c5   : > { %v1044_v57 = vsub.f32 %v2247_v49, %v2253_v55  ;;  %1233 = vst.msk [vmem:[#allocation5 + $0x18] sm:$0xff] %vm909_vm9, %v2253_v55  ;;  %1070 = vperm.xlu1 %1810, %v2253_v55   ;;  %v1088_v55 = vld [vmem:[#allocation6 + $0x18] sm:$0xff] }
 0x3ca   : > { %v1806_v62 = vpop.permute.xlu2 %1805 }
 0x3cb   : > { %v1808_v63 = vunpack.i.h.bf16 %v1806_v62  ;;  %v1807_v0 = vunpack.i.l.bf16 %v1806_v62 }
 0x3cd   : > { %v799_v2 = vrot.slane %v1808_v63, 4  ;;  %v787_v3 = vrot.slane %v1807_v0, 4 }
 0x3d1   : > { %v1033_v59 = vpop.xlane.xlu1 %1032 }
 0x3d2   : > { %v2268_v60 = vmax.f32 %v2265_v58, %v1033_v59 }
 0x3d4   : > { %v1043_v61 = vsub.f32 %v2265_v58, %v2268_v60  ;;  %1232 = vst.msk [vmem:[#allocation5 + $0x10] sm:$0xff] %vm909_vm9, %v2268_v60  ;;  %1065 = vperm.xlu0 %1809, %v2268_v60  }
 0x3e9   : > { %v1801_v1 = vpop.permute.xlu1 %1800 }
 0x3ea   : > { %v1803_v4 = vunpack.i.h.bf16 %v1801_v1  ;;  %v1802_v5 = vunpack.i.l.bf16 %v1801_v1 }
 0x3ec   : > { %v801_v6 = vrot.slane %v1803_v4, 4  ;;  %v788_v7 = vsel %vm526_vm5, %v787_v3, %v1802_v5  ;;  %v789_v9 = vrot.slane %v1802_v5, 4  ;;  %v800_v10 = vsel %vm526_vm5, %v799_v2, %v1803_v4 }
 0x3ed   : > { %v794_v11 = vperm.slane %v788_v7, %v2087_v42  ;;  %v806_v12 = vperm.slane %v800_v10, %v2087_v42 }
 0x3ee   : > { %v790_v13 = vsel %vm526_vm5, %v1807_v0, %v789_v9  ;;  %v802_v14 = vsel %vm526_vm5, %v1808_v63, %v801_v6 }
 0x3ef   : > { %v798_v15 = vperm.slane %v790_v13, %v2087_v42  ;;  %v810_v16 = vperm.slane %v802_v14, %v2087_v42  ;;  %v811_v17 = vrot.slane %v806_v12, 4  ;;  %v813_v18 = vrot.slane %v794_v11, 4 }
 0x3f1   : > { %v812_v19 = vsel %vm526_vm5, %v811_v17, %v794_v11  ;;  %v814_v20 = vsel %vm526_vm5, %v806_v12, %v813_v18  ;;  %v823_v21 = vrot.slane %v810_v16, 4  ;;  %v825_v22 = vrot.slane %v798_v15, 4 }
 0x3f2   : > { %v818_v23 = vperm.slane %v812_v19, %v2100_v52  ;;  %v822_v24 = vperm.slane %v814_v20, %v2100_v52 }
 0x3f3   : > { %v824_v26 = vsel %vm526_vm5, %v823_v21, %v798_v15  ;;  %v826_v28 = vsel %vm526_vm5, %v810_v16, %v825_v22 }
 0x3f4   : > { %v830_v29 = vperm.slane %v824_v26, %v2100_v52  ;;  %v834_v31 = vperm.slane %v826_v28, %v2100_v52  ;;  %v835_v32 = vrot.slane %v818_v23, 4  ;;  %v837_v33 = vrot.slane %v822_v24, 4 }
 0x3f6   : > { %v838_v35 = vsel %vm526_vm5, 0.0, %v837_v33  ;;  %v839_v36 = vrot.slane %v830_v29, 4  ;;  %v841_v37 = vrot.slane %v834_v31, 4  ;;  %v843_v40 = vsel %vm526_vm5, %v837_v33, %v818_v23 }
 0x3f7   : > { %v848_v41 = vrot.slane %v838_v35, 4  ;;  %v836_v43 = vsel %vm526_vm5, 0.0, %v835_v32  ;;  %v847_v46 = vperm.slane %v843_v40, %v2087_v42 }
 0x3f8   : > { %v842_v45 = vsel %vm526_vm5, 0.0, %v841_v37  ;;  %v854_v47 = vsel %vm526_vm5, %v841_v37, %v830_v29  ;;  %v840_v59 = vsel %vm526_vm5, 0.0, %v839_v36 }
 0x3f9   : > { %v849_v38 = vsel %vm526_vm5, %v848_v41, %v836_v43  ;;  %v858_v50 = vperm.slane %v854_v47, %v2087_v42  ;;  %v859_v54 = vrot.slane %v842_v45, 4  ;;  %v867_v63 = vrot.slane %v847_v46, 4 }
 0x3fa   : > { %v853_v62 = vperm.slane %v849_v38, %v2087_v42 }
 0x3fb   : > { %v860_v0 = vsel %vm526_vm5, %v859_v54, %v840_v59  ;;  %v879_v1 = vrot.slane %v858_v50, 4 }
 0x3fc   : > { %v864_v2 = vperm.slane %v860_v0, %v2087_v42  ;;  %v865_v3 = vrot.slane %v853_v62, 4  ;;  %v868_v4 = vsel %vm526_vm5, %v853_v62, %v867_v63 }
 0x3fd   : > { %v876_v5 = vperm.slane %v868_v4, %v2100_v52  ;;  %v1049_v4 = vmul.f32 1.442695, %v1043_v61  ;;  %v1086_v61 = vld [vmem:[#allocation6 + $0x8] sm:$0xff] }
 0x3fe   : > { %v866_v6 = vsel %vm526_vm5, %v865_v3, %v847_v46  ;;  %v877_v7 = vrot.slane %v864_v2, 4  ;;  %v880_v9 = vsel %vm526_vm5, %v864_v2, %v879_v1 }
 0x3ff   : > { %v872_v10 = vperm.slane %v866_v6, %v2100_v52  ;;  %v888_v11 = vperm.slane %v880_v9, %v2100_v52  ;;  %v895_v12 = vrot.slane %v876_v5, 4  ;;  %v1051_v9 = vmul.f32 1.442695, %v1044_v57 }
 0x400   : > { %v878_v13 = vsel %vm526_vm5, %v877_v7, %v858_v50  ;;  %v1047_v50 = vmul.f32 1.442695, %v1042_v56 }
 0x401   : > { %v884_v14 = vperm.slane %v878_v13, %v2100_v52  ;;  %v891_v42 = vrot.slane %v872_v10, 4  ;;  %v893_v15 = vrot.slane %v888_v11, 4  ;;  %v896_v16 = vsel %vm526_vm5, %v888_v11, %v895_v12  ;;  %v1085_v13 = vld [vmem:[#allocation6] sm:$0xff] }
 0x402   : > { %v900_v17 = vpack.c.bf16 %v896_v16, %v896_v16 }
 0x403   : > { %v889_v18 = vrot.slane %v884_v14, 4  ;;  %v892_v19 = vsel %vm526_vm5, %v884_v14, %v891_v42  ;;  %v894_v20 = vsel %vm526_vm5, %v893_v15, %v876_v5 }
 0x404   : > { %v898_v21 = vpack.c.bf16 %v892_v19, %v892_v19  ;;  %v899_v22 = vpack.c.bf16 %v894_v20, %v894_v20  ;;  %904 = vst.msk [vmem:[#allocation4 + $0xc] sm:$0xf] %vm640_vm6, %v900_v17 }
 0x405   : > { %v890_v23 = vsel %vm526_vm5, %v889_v18, %v872_v10 }
 0x406   : > { %v897_v24 = vpack.c.bf16 %v890_v23, %v890_v23  ;;  %902 = vst.msk [vmem:[#allocation4 + $0x4] sm:$0xf] %vm640_vm6, %v898_v21 }
 0x407   : > { %903 = vst.msk [vmem:[#allocation4 + $0x8] sm:$0xf] %vm640_vm6, %v899_v22 }
 0x408   : > { %901 = vst.msk [vmem:[#allocation4] sm:$0xf] %vm640_vm6, %v897_v24 }
 0x40b   : > { %v934_v52 = vld [vmem:[#allocation4 + $0xc] sm:$0xf] }
 0x40c   : > { %v1207_v26 = vsel %vm1148_vm10, %v934_v52, 0 }
 0x40d   : > { %1216 = vmatpush.bf16.msra.mxu0 %v1207_v26  ;;  %v932_v28 = vld [vmem:[#allocation4 + $0x4] sm:$0xf] }
 0x40e   : > { %v1169_v29 = vsel %vm1148_vm10, %v932_v28, 0  ;;  %v933_v31 = vld [vmem:[#allocation4 + $0x8] sm:$0xf] }
 0x40f   : > { %1178 = vmatpush.bf16.msra.mxu2 %v1169_v29  ;;  %v1188_v32 = vsel %vm1148_vm10, %v933_v31, 0  ;;  %v931_v33 = vld [vmem:[#allocation4] sm:$0xf] }
 0x410   : > { %1197 = vmatpush.bf16.msra.mxu3 %v1188_v32  ;;  %v1150_v35 = vsel %vm1148_vm10, %v931_v33, 0  ;;  %v1087_v31 = vld [vmem:[#allocation6 + $0x10] sm:$0xff] }
 0x411   : > { %1159 = vmatpush.bf16.msrb.mxu1 %v1150_v35 }
 0x41e   : > { %v1061_v36 = vpop.permute.xlu2 %1060 }
 0x41f   : > { %v1074_v37 = vsub.f32 %v2208_v30, %v1061_v36 }
 0x421   : > { %v1079_v40 = vmul.f32 1.442695, %v1074_v37 }
 0x423   : > { %1824 = vpow2.f32 %v1079_v40 }
 0x429   : > { %v1825_v41 = vpop.eup %1824 }
 0x42a   : > { %v1096_v43 = vsel %vm918_vm7, %v1825_v41, 0.0  ;;  %v1142_v45 = vpack.c.bf16 %v1825_v41, %v1825_v41 }
 0x42b   : > { %1097 = vadd.xlane.f32.xlu0 %v1096_v43 }
 0x42c   : > { %1671 = vmatmul.msk.bf16.vlgmr.msra.gmra.mxu2 %vm918_vm7, %v1142_v45 }
 0x42f   : > { %v1056_v46 = vpop.permute.xlu1 %1055 }
 0x430   : > { %v1073_v47 = vsub.f32 %v2200_v25, %v1056_v46 }
 0x432   : > { %v1077_v38 = vmul.f32 1.442695, %v1073_v47 }
 0x434   : > { %1826 = vpow2.f32 %v1077_v38 }
 0x435   : > { %1828 = vpow2.f32 %v1047_v50 }
 0x437   : > { %v1071_v54 = vpop.permute.xlu1 %1070 }
 0x438   : > { %v1076_v30 = vsub.f32 %v2205_v27, %v1071_v54 }
 0x43a   : > { %v1827_v59 = vpop.eup %1826  ;;  %v1083_v62 = vmul.f32 1.442695, %v1076_v30  ;;  %v1115_v30 = vld [vmem:[#allocation7 + $0x10] sm:$0xff] }
 0x43b   : > { %v1093_v63 = vsel %vm918_vm7, %v1827_v59, 0.0  ;;  %v1141_v0 = vpack.c.bf16 %v1827_v59, %v1827_v59  ;;  %v1829_v25 = vpop.eup %1828 }
 0x43c   : > { %1830 = vpow2.f32 %v1083_v62  ;;  %1094 = vadd.xlane.f32.xlu2 %v1093_v63  ;;  %v1090_v10 = vmul.f32 %v1829_v25, %v1086_v61 }
 0x43d   : > { %1670 = vmatmul.msk.bf16.vlgmr.msrb.gmra.mxu1 %vm918_vm7, %v1141_v0 }
 0x43f   : > { %1124 = vperm.xlu0 %1809, %v1829_v25  }
 0x442   : > { %v1831_v1 = vpop.eup %1830 }
 0x443   : > { %v1144_v2 = vpack.c.bf16 %v1831_v1, %v1831_v1  ;;  %v1102_v48 = vsel %vm918_vm7, %v1831_v1, 0.0 }
 0x444   : > { %1103 = vadd.xlane.f32.xlu2 %v1102_v48  ;;  %v1113_v48 = vld [vmem:[#allocation7] sm:$0xff] }
 0x445   : > { %1673 = vmatmul.msk.bf16.vlgmr.msra.gmra.mxu0 %vm918_vm7, %v1144_v2 }
 0x446   : > { %v1066_v53 = vpop.permute.xlu0 %1065 }
 0x447   : > { %v1075_v27 = vsub.f32 %v2219_v39, %v1066_v53  ;;  %v1045_v39 = vmul.f32 1.442695, %v1041_v51  ;;  %v1114_v51 = vld [vmem:[#allocation7 + $0x8] sm:$0xff] }
 0x449   : > { %v1081_v56 = vmul.f32 1.442695, %v1075_v27 }
 0x44b   : > { %1832 = vpow2.f32 %v1081_v56 }
 0x44c   : > { %1834 = vpow2.f32 %v1049_v4 }
 0x44d   : > { %1836 = vpow2.f32 %v1045_v39 }
 0x44e   : > { %1838 = vpow2.f32 %v1051_v9  ;;  %v1283_v9 = vld [vmem:[%s2469_s5] sm:$0xf] }
 0x451   : > { %v1833_v3 = vpop.eup %1832 }
 0x452   : > { %v1143_v5 = vpack.c.bf16 %v1833_v3, %v1833_v3  ;;  %v1099_v6 = vsel %vm918_vm7, %v1833_v3, 0.0  ;;  %v1835_v7 = vpop.eup %1834 }
 0x453   : > { %1100 = vadd.xlane.f32.xlu1 %v1099_v6  ;;  %v1837_v58 = vpop.eup %1836  ;;  %v1091_v33 = vmul.f32 %v1835_v7, %v1087_v31 }
 0x454   : > { %1672 = vmatmul.msk.bf16.vlgmr.msra.gmra.mxu3 %vm918_vm7, %v1143_v5  ;;  %v1839_v60 = vpop.eup %1838  ;;  %v1089_v14 = vmul.f32 %v1837_v58, %v1085_v13  ;;  %v1116_v5 = vld [vmem:[#allocation7 + $0x18] sm:$0xff] }
 0x455   : > { %v1092_v16 = vmul.f32 %v1839_v60, %v1088_v55  ;;  %v1679_v13 = vld [vmem:[%s2469_s5 + $0xc] sm:$0xf] }
 0x45c   : > { %1129 = vperm.xlu2 %1811, %v1835_v7  }
 0x46c   : > { %1119 = vperm.xlu1 %1810, %v1837_v58   ;;  %v1310_v58 = vsel %vm1148_vm10, %v1283_v9, 0  ;;  %v1737_v9 = vld [vmem:[%s2475_s11 + $0x30] sm:$0xff] }
 0x46d   : > { %1319 = vmatpush.bf16.msrb.mxu2 %v1310_v58  ;;  %v1818_v58 = vld [vmem:[%s2474_s10] ss:$0 sm:$0xff] }
 0x474   : > { %1134 = vperm.xlu1 %1810, %v1839_v60   ;;  %v1674_v60 = vld [vmem:[%s2469_s5 + $0x4] sm:$0xf] }
 0x475   : > { %v1291_v61 = vsel %vm1148_vm10, %v1674_v60, 0 }
 0x476   : > { %1300 = vmatpush.bf16.msra.mxu1 %v1291_v61  ;;  %v1736_v61 = vld [vmem:[%s2475_s11 + $0x28] sm:$0xff] }
 0x49e   : > { %v1098_v11 = vpop.xlane.xlu0 %1097 }
 0x49f   : > { %v1106_v12 = vadd.f32 %v1098_v11, %v1090_v10 }
 0x4a1   : > { %1110 = vst.msk [vmem:[#allocation6 + $0x8] sm:$0xff] %vm909_vm9, %v1106_v12 }
 0x4a8   : > { %v1239_v21 = vld [vmem:[#allocation6 + $0x8] sm:$0xff] }
 0x4af   : > { %v1180_v34 = vpop.f32.mrf.mxu2  ;;  %v1095_v44 = vpop.xlane.xlu2 %1094 }
 0x4b0   : > { %v1105_v42 = vadd.f32 %v1095_v44, %v1089_v14  ;;  %v1677_v44 = vld [vmem:[%s2469_s5 + $0x8] sm:$0xf] }
 0x4b1   : > { %v1125_v15 = vpop.permute.xlu0 %1124 }
 0x4b2   : > { %1109 = vst.msk [vmem:[#allocation6] sm:$0xff] %vm909_vm9, %v1105_v42  ;;  %v1138_v49 = vmul.f32 %v1125_v15, %v1114_v51  ;;  %v1332_v51 = vsel %vm1148_vm10, %v1677_v44, 0  ;;  %v1734_v44 = vld [vmem:[%s2475_s11 + $0x18] sm:$0xff] }
 0x4b3   : > { %1341 = vmatpush.bf16.msrb.mxu3 %v1332_v51 }
 0x4b4   : > { %v1223_v57 = vadd.f32 %v1180_v34, %v1138_v49  ;;  %v1355_v34 = vsel %vm1148_vm10, %v1679_v13, 0 }
 0x4b5   : > { %1364 = vmatpush.bf16.msrb.mxu0 %v1355_v34 }
 0x4b6   : > { %1227 = vst.msk [vmem:[#allocation7 + $0x8] sm:$0xff] %vm918_vm7, %v1223_v57 }
 0x4b7   : > { %v1182_v17 = vpop.f32.mrf.mxu2  ;;  %v1104_v18 = vpop.xlane.xlu2 %1103 }
 0x4b8   : > { %v1108_v19 = vadd.f32 %v1104_v18, %v1092_v16 }
 0x4b9   : > { %v1238_v20 = vld [vmem:[#allocation6] sm:$0xff] }
 0x4ba   : > { %1112 = vst.msk [vmem:[#allocation6 + $0x18] sm:$0xff] %vm909_vm9, %v1108_v19  ;;  %v1161_v22 = vpop.f32.mrf.mxu1  ;;  %1840 = vrcp.f32 %v1238_v20 }
 0x4bb   : > { %1842 = vrcp.f32 %v1239_v21 }
 0x4bd   : > { %v1235_v15 = vld [vmem:[#allocation7 + $0x8] sm:$0xff] }
 0x4bf   : > { %v1130_v59 = vpop.permute.xlu2 %1129 }
 0x4c0   : > { %v1841_v23 = vpop.eup %1840  ;;  %v1139_v62 = vmul.f32 %v1130_v59, %v1115_v30  ;;  %v1730_v30 = vld [vmem:[%s2473_s9 + $0x8] sm:$0xff]  ;;  %v1729_v59 = vld [vmem:[%s2473_s9] sm:$0xff] }
 0x4c1   : > { %v1246_v24 = vmul.f32 %v1841_v23, %v1238_v20  ;;  %v1241_v52 = vld [vmem:[#allocation6 + $0x18] sm:$0xff]  ;;  %v1843_v26 = vpop.eup %1842  ;;  %1440 = vmatpush.bf16.msrb.mxu1 %v1730_v30 }
 0x4c2   : > { %v1163_v28 = vpop.f32.mrf.mxu1  ;;  %v1218_v29 = vpop.f32.mrf.mxu0  ;;  %1844 = vrcp.f32 %v1241_v52  ;;  %v1247_v36 = vmul.f32 %v1843_v26, %v1239_v21 }
 0x4c3   : > { %v1250_v32 = vsub.f32 2.0, %v1246_v24 }
 0x4c4   : > { %v1251_v43 = vsub.f32 2.0, %v1247_v36  ;;  %v1815_v36 = vld [vmem:[%s2470_s6] ss:$0 sm:$0xff] }
 0x4c5   : > { %v1254_v35 = vmul.f32 %v1841_v23, %v1250_v32  ;;  %1441 = vmatpush.bf16.msrb.mxu1 %v1729_v59 }
 0x4c6   : > { %v1101_v37 = vpop.xlane.xlu1 %1100  ;;  %v1255_v38 = vmul.f32 %v1843_v26, %v1251_v43 }
 0x4c7   : > { %v1107_v40 = vadd.f32 %v1101_v37, %v1091_v33  ;;  %1260 = vperm.xlu2 %1811, %v1254_v35   ;;  %v1852_v37 = vld [vmem:[%s2051_s24] sm:$0xff]  ;;  %s429_s24 = sand.u32 1, %s1907_s26  }
 0x4c8   : > { %v1845_v41 = vpop.eup %1844  ;;  %s1655_s23 = sshll.u32 %s429_s24, 3  ;;  %s1577_s29 = scalar_lea.sflag [#allocation9], %s429_s24 }
 0x4c9   : > { %1111 = vst.msk [vmem:[#allocation6 + $0x10] sm:$0xff] %vm909_vm9, %v1107_v40  ;;  %v1249_v45 = vmul.f32 %v1845_v41, %v1241_v52  ;;  %s431_s0 = scalar_lea.vmem [#allocation8], %s1655_s23  ;;  %s1873_s23 = scalar_lea.hbm %s2477_s13, 16 }
 0x4ca   : > { %v1220_v46 = vpop.f32.mrf.mxu0  ;;  %s1589_s1 = sshll.u32 %s431_s0, 4  ;;  %p1875_p1 = scmp.lt.s32.totalorder %s1873_s23, %s1869_s30  ;;  %s1590_s1 = int_to_ptr.vmem [resolvable:$true] %s1589_s1 }
 0x4cb   : > { %v1253_v47 = vsub.f32 2.0, %v1249_v45 }
 0x4cc   : > { %p1876_p2 = por %p1875_p1, %p1874_p0 }
 0x4cd   : > { %v1257_v50 = vmul.f32 %v1845_v41, %v1253_v47 }
 0x4ce   : > { %p1877_p3 = pnand %p1876_p2, %p1872_p13 }
 0x4cf   : > { %1265 = vperm.xlu2 %1811, %v1255_v38   ;;  %1275 = vperm.xlu0 %1809, %v1257_v50  }
 0x4d0   : > { %v1240_v54 = vld [vmem:[#allocation6 + $0x10] sm:$0xff] }
 0x4d1   : > { %1846 = vrcp.f32 %v1240_v54 }
 0x4d7   : > { %v1847_v63 = vpop.eup %1846  ;;  %v1199_v0 = vpop.f32.mrf.mxu3 }
 0x4d8   : > { %v1224_v25 = vadd.f32 %v1199_v0, %v1139_v62  ;;  %v1248_v1 = vmul.f32 %v1847_v63, %v1240_v54 }
 0x4da   : > { %1228 = vst.msk [vmem:[#allocation7 + $0x10] sm:$0xff] %vm918_vm7, %v1224_v25  ;;  %v1252_v2 = vsub.f32 2.0, %v1248_v1 }
 0x4dc   : > { %v1256_v53 = vmul.f32 %v1847_v63, %v1252_v2 }
 0x4de   : > { %v1120_v27 = vpop.permute.xlu1 %1119  ;;  %1270 = vperm.xlu1 %1810, %v1256_v53  }
 0x4df   : > { %v1137_v56 = vmul.f32 %v1120_v27, %v1113_v48  ;;  %v1201_v3 = vpop.f32.mrf.mxu3 }
 0x4e1   : > { %v1222_v4 = vadd.f32 %v1161_v22, %v1137_v56  ;;  %v1236_v20 = vld [vmem:[#allocation7 + $0x10] sm:$0xff] }
 0x4e2   : > { %v1816_v56 = vld [vmem:[%s2471_s7] ss:$0 sm:$0xff] }
 0x4e3   : > { %1226 = vst.msk [vmem:[#allocation7] sm:$0xff] %vm918_vm7, %v1222_v4 }
 0x4e6   : > { %v1135_v6 = vpop.permute.xlu1 %1134 }
 0x4e7   : > { %v1140_v7 = vmul.f32 %v1135_v6, %v1116_v5 }
 0x4e9   : > { %v1225_v39 = vadd.f32 %v1218_v29, %v1140_v7 }
 0x4ea   : > { %v1234_v11 = vld [vmem:[#allocation7] sm:$0xff] }
 0x4eb   : > { %1229 = vst.msk [vmem:[#allocation7 + $0x18] sm:$0xff] %vm918_vm7, %v1225_v39  ;;  %v1738_v39 = vld [vmem:[%s2475_s11 + $0x38] sm:$0xff] }
 0x4ec   : > { %1556 = vmatpush.bf16.msra.mxu2 %v1738_v39 }
 0x4f0   : > { %1557 = vmatpush.bf16.msra.mxu2 %v1737_v9 }
 0x4f2   : > { %v1237_v16 = vld [vmem:[#allocation7 + $0x18] sm:$0xff] }
 0x4f4   : > { %1558 = vmatpush.bf16.msra.mxu2 %v1736_v61 }
 0x521   : > { %v1261_v10 = vpop.permute.xlu2 %1260 }
 0x522   : > { %v1278_v12 = vmul.f32 %v1261_v10, %v1234_v11 }
 0x524   : > { %v1282_v14 = vpack.c.bf16 %v1278_v12, %v1278_v12  ;;  %v1735_v12 = vld [vmem:[%s2475_s11 + $0x20] sm:$0xff] }
 0x525   : > { %1559 = vmatpush.bf16.msra.mxu2 %v1735_v12 }
 0x526   : > { %1676 = vmatmul.msk.bf16.vlgmr.msrb.gmra.mxu2 %vm918_vm7, %v1282_v14 }
 0x529   : > { %v1266_v42 = vpop.permute.xlu2 %1265  ;;  %1560 = vmatpush.bf16.msra.mxu2 %v1734_v44 }
 0x52a   : > { %v1279_v49 = vmul.f32 %v1266_v42, %v1235_v15 }
 0x52c   : > { %v1284_v55 = vpack.c.bf16 %v1279_v49, %v1279_v49 }
 0x52e   : > { %1675 = vmatmul.msk.bf16.vlgmr.msra.gmra.mxu1 %vm918_vm7, %v1284_v55  ;;  %v1733_v55 = vld [vmem:[%s2475_s11 + $0x10] sm:$0xff] }
 0x52f   : > { %1561 = vmatpush.bf16.msra.mxu2 %v1733_v55 }
 0x541   : > { %v1276_v57 = vpop.permute.xlu0 %1275 }
 0x542   : > { %v1281_v17 = vmul.f32 %v1276_v57, %v1237_v16 }
 0x544   : > { %v1348_v18 = vpack.c.bf16 %v1281_v17, %v1281_v17 }
 0x546   : > { %1680 = vmatmul.msk.bf16.vlgmr.msrb.gmra.mxu0 %vm918_vm7, %v1348_v18 }
 0x550   : > { %v1271_v19 = vpop.permute.xlu1 %1270 }
 0x551   : > { %v1280_v21 = vmul.f32 %v1271_v19, %v1236_v20  ;;  %v1732_v19 = vld [vmem:[%s2475_s11 + $0x8] sm:$0xff] }
 0x552   : > { %1562 = vmatpush.bf16.msra.mxu2 %v1732_v19 }
 0x553   : > { %v1325_v22 = vpack.c.bf16 %v1280_v21, %v1280_v21 }
 0x555   : > { %1678 = vmatmul.msk.bf16.vlgmr.msrb.gmra.mxu3 %vm918_vm7, %v1325_v22 }
 0x5a9   : > { %v1321_v23 = vpop.f32.mrf.mxu2 }
 0x5ab   : > { %v1302_v24 = vpop.f32.mrf.mxu1 }
 0x5ac   : > { %v1322_v31 = vadd.f32 %v1321_v23, %v1302_v24  ;;  %v1731_v23 = vld [vmem:[%s2475_s11] sm:$0xff] }
 0x5ad   : > { %1563 = vmatpush.bf16.msra.mxu2 %v1731_v23 }
 0x5b1   : > { %v1323_v52 = vpop.f32.mrf.mxu2 }
 0x5b3   : > { %v1304_v26 = vpop.f32.mrf.mxu1 }
 0x5c3   : > { %v1366_v28 = vpop.f32.mrf.mxu0 }
 0x5cb   : > { %v1368_v29 = vpop.f32.mrf.mxu0 }
 0x5d8   : > { %v1343_v32 = vpop.f32.mrf.mxu3 }
 0x5d9   : > { %v1347_v33 = vadd.f32 %v1343_v32, %v1322_v31 }
 0x5db   : > { %v1370_v35 = vadd.f32 %v1366_v28, %v1347_v33 }
 0x5dd   : > { %v1372_v40 = vadd.f32 %v1852_v37, %v1370_v35 }
 0x5df   : > { %v2379_v41 = vadd.f32 %v1815_v36, %v1372_v40 }
 0x5e0   : > { %v1345_v43 = vpop.f32.mrf.mxu3 }
 0x5e1   : > { %v1380_v45 = vsel %vm440_vm0, %v2379_v41, 0.0 }
 0x5e2   : > { %1381 = vadd.xlane.f32.xlu1 %v1380_v45 }
 0x655   : > { %v1382_v46 = vpop.xlane.xlu1 %1381 }
 0x656   : > { %v1383_v47 = vmul.f32 %v1382_v46, %v2055_v8 }
 0x658   : > { %v1384_v38 = vsub.f32 %v2379_v41, %v1383_v47 }
 0x65a   : > { %v1385_v50 = vmul.f32 %v1384_v38, %v1384_v38 }
 0x65c   : > { %v1386_v54 = vsel %vm440_vm0, %v1385_v50, 0.0 }
 0x65d   : > { %1387 = vadd.xlane.f32.xlu2 %v1386_v54 }
 0x6d0   : > { %v1388_v62 = vpop.xlane.xlu2 %1387 }
 0x6d1   : > { %v1389_v63 = vmul.f32 %v1388_v62, %v2055_v8  ;;  %v1817_v8 = vld [vmem:[%s2472_s8] ss:$0 sm:$0xff] }
 0x6d3   : > { %v1390_v0 = vadd.f32 1e-05, %v1389_v63 }
 0x6d5   : > { %1848 = vrsqrt.f32 %v1390_v0  ;;  %vm1397_vm12 = vweird.f32 %v1390_v0 }
 0x6db   : > { %v1849_v25 = vpop.eup %1848 }
 0x6dc   : > { %v1392_v1 = vmul.f32 %v1849_v25, %v1390_v0  ;;  %vm1398_vm11 = vweird.f32 %v1849_v25 }
 0x6dd   : > { %vm1399_vm13 = vmor %vm1397_vm12, %vm1398_vm11 }
 0x6de   : > { %v1393_v2 = vmul.f32 %v1849_v25, %v1392_v1 }
 0x6e0   : > { %v1394_v48 = vmul.f32 0.5, %v1393_v2  ;;  %v1819_v2 = vld [vmem:[%s2476_s12] ss:$0 sm:$0xff] }
 0x6e2   : > { %v1395_v53 = vsub.f32 1.5, %v1394_v48 }
 0x6e4   : > { %v1396_v27 = vmul.f32 %v1849_v25, %v1395_v53 }
 0x6e6   : > { %v1400_v3 = vsel %vm1399_vm13, %v1849_v25, %v1396_v27 }
 0x6e7   : > { %v1401_v4 = vmul.f32 %v1400_v3, %v1384_v38 }
 0x6e9   : > { %v1405_v5 = vmul.f32 %v1816_v56, %v1401_v4 }
 0x6eb   : > { %v1409_v6 = vadd.f32 %v1817_v8, %v1405_v5 }
 0x6ed   : > { %v1410_v7 = vpack.c.bf16 %v1409_v6, %v1409_v6 }
 0x6ef   : > { %1689 = vmatmul.msk.bf16.vlgmr.msrb.gmra.mxu1 %vm440_vm0, %v1410_v7 }
 0x76c   : > { %v1443_v60 = vpop.f32.mrf.mxu1 }
 0x76d   : > { %v1444_v10 = vadd.f32 %v1818_v58, %v1443_v60 }
 0x76f   : > { %v1448_v11 = vmul.f32 0.70710677, %v1444_v10  ;;  %v1447_v63 = vmul.f32 0.5, %v1444_v10 }
 0x771   : > { %v1449_v13 = vmul.f32 %v1448_v11, %v1448_v11 }
 0x773   : > { %v1450_v14 = vmin.f32 %v1449_v13, 16.0 }
 0x774   : > { %v1445_v34 = vpop.f32.mrf.mxu1 }
 0x775   : > { %v1451_v51 = vmul.f32 2.1237322e-06, %v1450_v14  ;;  %v1462_v42 = vmul.f32 3.8918573e-05, %v1450_v14 }
 0x777   : > { %v1452_v15 = vadd.f32 0.00028619796, %v1451_v51  ;;  %v1463_v49 = vadd.f32 0.001143296, %v1462_v42 }
 0x779   : > { %v1453_v57 = vmul.f32 %v1452_v15, %v1450_v14  ;;  %v1464_v16 = vmul.f32 %v1463_v49, %v1450_v14 }
 0x77b   : > { %v1465_v17 = vadd.f32 0.014752088, %v1464_v16  ;;  %v1454_v18 = vadd.f32 0.0036580483, %v1453_v57 }
 0x77d   : > { %v1466_v20 = vmul.f32 %v1465_v17, %v1450_v14  ;;  %v1455_v22 = vmul.f32 %v1454_v18, %v1450_v14 }
 0x77f   : > { %v1467_v21 = vadd.f32 0.112945676, %v1466_v20  ;;  %v1456_v26 = vadd.f32 0.05243302, %v1455_v22 }
 0x781   : > { %v1468_v24 = vmul.f32 %v1467_v21, %v1450_v14  ;;  %v1457_v31 = vmul.f32 %v1456_v26, %v1450_v14 }
 0x783   : > { %v1469_v52 = vadd.f32 0.4994258, %v1468_v24  ;;  %v1458_v32 = vadd.f32 0.18741608, %v1457_v31 }
 0x785   : > { %v1470_v28 = vmul.f32 %v1469_v52, %v1450_v14  ;;  %v1459_v35 = vmul.f32 %v1458_v32, %v1450_v14 }
 0x787   : > { %v1471_v29 = vadd.f32 1.0, %v1470_v28  ;;  %v1460_v43 = vadd.f32 1.1283791, %v1459_v35 }
 0x789   : > { %1850 = vrcp.f32 %v1471_v29  ;;  %v1483_v40 = vand.u32 2147483648, %v1471_v29  ;;  %v1481_v46 = vand.u32 2147483647, %v1471_v29  ;;  %vm1477_vm15 = vweird.f32 %v1471_v29 }
 0x78a   : > { %v1461_v50 = vmul.f32 %v1460_v43, %v1448_v11 }
 0x78b   : > { %v1484_v38 = vor.u32 1.1754944e-38, %v1483_v40  ;;  %vm1482_vm2 = vcmp.eq.f32.partialorder %v1481_v46, 8.507059e+37 }
 0x78f   : > { %v1851_v33 = vpop.eup %1850 }
 0x790   : > { %v1473_v36 = vmul.f32 %v1851_v33, %v1471_v29  ;;  %vm1478_vm14 = vweird.f32 %v1851_v33 }
 0x791   : > { %vm1479_vm1 = vmor %vm1477_vm15, %vm1478_vm14 }
 0x792   : > { %v1474_v37 = vsub.f32 1.0, %v1473_v36 }
 0x794   : > { %v1475_v45 = vmul.f32 %v1851_v33, %v1474_v37 }
 0x796   : > { %v1476_v47 = vadd.f32 %v1851_v33, %v1475_v45 }
 0x798   : > { %v1480_v54 = vsel %vm1479_vm1, %v1851_v33, %v1476_v47 }
 0x799   : > { %v1485_v30 = vsel %vm1482_vm2, %v1484_v38, %v1480_v54 }
 0x79a   : > { %v1486_v59 = vmul.f32 %v1485_v30, %v1461_v50 }
 0x79c   : > { %v1690_v62 = vclamps-f32 %v1486_v59, 1.0 }
 0x79e   : > { %v1489_v0 = vadd.f32 1.0, %v1690_v62 }
 0x7a0   : > { %v1490_v25 = vmul.f32 %v1489_v0, %v1447_v63 }
 0x7a2   : > { %v1491_v1 = vpack.c.bf16 %v1490_v25, %v1490_v25 }
 0x7a4   : > { %1564 = vmatmul.bf16.vlgmr.msra.gmra.mxu2 %v1491_v1 }
 0x827   : > { %v1565_v48 = vpop.f32.mrf.mxu2 }
 0x828   : > { %v1569_v53 = vadd.f32 %v1565_v48, %v2379_v41 }
 0x82a   : > { %v1574_v27 = vadd.f32 %v1819_v2, %v1569_v53 }
 0x82c   : > { %1575 = vst.msk [vmem:[%s431_s0] sm:$0xff] %vm440_vm0, %v1574_v27 }
 0x82d   : > { %1880 = shalt.err (!%p1877_p3)
}
 0x82e   : > { %1739 = dma.vmem_to_hbm [thread:$0]  (%p2036_p5), %s1590_s1, 128, %s1592_s2, %s1577_s29  }
 0x82f   : > { %v1567_v41 = vpop.f32.mrf.mxu2 }
 0x830 PF: > { %p1745_p4 = scmp.ge.s32.totalorder %s1915_s28, 2  ;;  %s1603_s0 = sand.u32 1, %s1903_s25  }
 0x831   : > { %s1604_s24 = scalar_lea.sflag [#allocation9], %s1603_s0 }
 0x832   : > { %p1742_p7 = pnand %p1745_p4, %p2040_p6 }
 0x834   : > { %p1743_p8 = pneg %p1742_p7 }
 0x836   : > { %1898 = dma.done.wait (%p1743_p8), %s1604_s24, 128  }
 0x837   : > { %1900 = vsyncadd (%p1743_p8), %s1604_s24, 4294967168  ;;  %p23_p9 = scmp.ge.s32.totalorder %s2023_s14, 4   ;;  %s2488_s25 = smov %s1907_s26 }
 0x838   : > { %s2489_s26 = smov %s1911_s27  ;;  %s2490_s27 = smov %s2034_s17 }
 0x839   : > { %s2491_s28 = smov %s2023_s14  ;;  %25 = sbr.rel (!%p23_p9) target bundleno = 8 (0x8), region = 110 }
 0x83e   :  { %1610 = vsyncpa [#allocation9], 1 }
 0x83f   :  { %1612 = vsyncpa [#allocation9 + $0x1], 1 }

</bundles_post_ra>
